<compile_context>
chip_gen: v7x
topology: tpu7x:2x2x1
jax: 0.10.0
libtpu: 0.0.40
codegen_flags: <defaults>
</compile_context>

<pallas_src>
import functools

import jax
import jax.numpy as jnp
from jax.experimental import pallas as pl
from jax.experimental.pallas import tpu as pltpu


# ----------------------------------------------------------------------------
# Fused Pallas matmul kernel: O = act(A @ B + bias), bf16 operands, f32 acc
# ----------------------------------------------------------------------------
TM = 128  # M tile; keep >=2 M blocks for megacore sharding on v7x


def _round_up(x, m):
    return (x + m - 1) // m * m


def _pick_tk(kp, max_tk=1024):
    """Largest multiple of 128 that divides kp and is <= max_tk."""
    best = 128
    for cand in range(128, min(kp, max_tk) + 1, 128):
        if kp % cand == 0:
            best = cand
    return best


def _matmul_bias_act_kernel(a_ref, b_ref, bias_ref, o_ref, acc_ref, *, apply_relu):
    @pl.when(pl.program_id(2) == 0)
    def _():
        acc_ref[...] = jnp.zeros_like(acc_ref)

    acc_ref[...] += jnp.dot(a_ref[...], b_ref[...],
                            preferred_element_type=jnp.float32)

    @pl.when(pl.program_id(2) == pl.num_programs(2) - 1)
    def _():
        y = acc_ref[...] + bias_ref[...]
        if apply_relu:                       # static flag, resolved at trace time
            y = jnp.maximum(y, 0.0)
        o_ref[...] = y.astype(o_ref.dtype)


def _fused_matmul(a_p, b_p, bias_p, *, tm, tn, tk, apply_relu):
    """a_p: (Mp, Kp) bf16, b_p: (Kp, Np) bf16, bias_p: (1, Np) f32 -> (Mp, Np) f32."""
    Mp, Kp = a_p.shape
    Kp2, Np = b_p.shape
    assert Kp == Kp2 and Mp % tm == 0 and Np % tn == 0 and Kp % tk == 0

    kernel = functools.partial(_matmul_bias_act_kernel, apply_relu=apply_relu)
    cost = pl.CostEstimate(
        flops=2 * Mp * Np * Kp,
        transcendentals=0,
        bytes_accessed=Mp * Kp * 2 + Kp * Np * 2 + Mp * Np * 4 + Np * 4)

    return pl.pallas_call(
        kernel,
        out_shape=jax.ShapeDtypeStruct((Mp, Np), jnp.float32),
        grid_spec=pltpu.PrefetchScalarGridSpec(
            num_scalar_prefetch=0,
            grid=(Mp // tm, Np // tn, Kp // tk),
            in_specs=[
                pl.BlockSpec((tm, tk), lambda i, j, k: (i, k)),
                pl.BlockSpec((tk, tn), lambda i, j, k: (k, j)),
                pl.BlockSpec((1, tn), lambda i, j, k: (0, j)),
            ],
            out_specs=pl.BlockSpec((tm, tn), lambda i, j, k: (i, j)),
            scratch_shapes=[pltpu.VMEM((tm, tn), jnp.float32)],
        ),
        compiler_params=pltpu.CompilerParams(
            dimension_semantics=("parallel", "parallel", "arbitrary")),
        cost_estimate=cost,
    )(a_p, b_p, bias_p)


# ----------------------------------------------------------------------------
# Conv2d = (reshape | im2col, bf16) + fused Pallas matmul (bias + ReLU epilogue)
# ----------------------------------------------------------------------------
def conv2d(x, p, *, apply_relu):
    """Stride-1 Conv2d + bias (+ ReLU) as one fused Pallas matmul.

    x: NHWC array, or a list of NHWC arrays (implicit channel concat in list
       order -- avoids materializing torch.cat before the conv).
    """
    xs = list(x) if isinstance(x, (list, tuple)) else [x]
    xs = [xi.astype(jnp.bfloat16) for xi in xs]          # bf16 MXU operands
    kh, kw = p["kh"], p["kw"]
    ph, pw = p["pad"]
    n, h, w, _ = xs[0].shape
    oh = h + 2 * ph - kh + 1
    ow = w + 2 * pw - kw + 1

    if kh == 1 and kw == 1 and ph == 0 and pw == 0:
        # 1x1 conv: pure matmul, no im2col inflation.
        patches = xs[0] if len(xs) == 1 else jnp.concatenate(xs, axis=-1)
        patches = patches.reshape(n * oh * ow, -1)
    else:
        # TODO(synk): im2col still materializes kh*kw shifted copies in HBM (bf16);
        # a halo-block in-kernel conv would cut this remaining traffic further.
        xps = [jnp.pad(xi, ((0, 0), (ph, ph), (pw, pw), (0, 0))) for xi in xs]
        cols = []
        for i in range(kh):
            for j in range(kw):
                for xp in xps:               # per-tap channel order matches weights
                    cols.append(xp[:, i:i + oh, j:j + ow, :])
        patches = jnp.concatenate(cols, axis=-1).reshape(n * oh * ow, -1)

    M, K = patches.shape
    Mp = _round_up(M, TM)
    patches = jnp.pad(patches, ((0, Mp - M), (0, p["Kp"] - K)))
    out = _fused_matmul(patches, p["w_packed"], p["b_packed"],
                        tm=TM, tn=p["tn"], tk=p["tk"], apply_relu=apply_relu)
    return out[:M, :p["cout"]].reshape(n, oh, ow, p["cout"])


# ----------------------------------------------------------------------------
# Deterministic, pre-packed conv parameters (PyTorch-style init)
# ----------------------------------------------------------------------------
class ParamGen:
    def __init__(self, seed=0):
        self._key = jax.random.PRNGKey(seed)

    def _next(self):
        self._key, k = jax.random.split(self._key)
        return k

    def conv(self, kh, kw, cin, cout, padding):
        fan_in = kh * kw * cin
        bound = 1.0 / float(fan_in) ** 0.5
        w = jax.random.uniform(self._next(), (kh, kw, cin, cout), jnp.float32,
                               -bound, bound)
        b = jax.random.uniform(self._next(), (cout,), jnp.float32, -bound, bound)

        # Pack once: (K, Cout) -> pad to tile multiples -> bf16.
        K = kh * kw * cin
        Kp = _round_up(K, 128)
        Np = _round_up(cout, 128)
        tk = _pick_tk(Kp)
        tn = 256 if Np % 256 == 0 else 128
        w_packed = jnp.pad(w.reshape(K, cout),
                           ((0, Kp - K), (0, Np - cout))).astype(jnp.bfloat16)
        b_packed = jnp.pad(b, (0, Np - cout)).reshape(1, Np).astype(jnp.float32)
        ph, pw = (padding, padding) if isinstance(padding, int) else padding
        return {
            "w_packed": w_packed, "b_packed": b_packed,
            "w_f32": w, "b_f32": b,                    # kept for the f32 reference
            "kh": kh, "kw": kw, "pad": (ph, pw),
            "cout": cout, "Kp": Kp, "tk": tk, "tn": tn,
        }


# ----------------------------------------------------------------------------
# BasicMotionEncoder
# ----------------------------------------------------------------------------
class BasicMotionEncoderPallas:
    """Pallas/TPU forward of RAFT/ERAFT BasicMotionEncoder (NCHW in / NCHW out)."""

    def __init__(self, corr_levels, corr_radius, seed=0):
        cor_planes = corr_levels * (2 * corr_radius + 1) ** 2
        pg = ParamGen(seed)
        self.convc1 = pg.conv(1, 1, cor_planes, 256, 0)
        self.convc2 = pg.conv(3, 3, 256, 192, 1)
        self.convf1 = pg.conv(7, 7, 2, 128, 3)
        self.convf2 = pg.conv(3, 3, 128, 64, 1)
        self.conv = pg.conv(3, 3, 64 + 192, 128 - 2, 1)
        self._jit_fwd = jax.jit(self._forward)

    def _forward(self, flow_nchw, corr_nchw):
        flow = jnp.transpose(flow_nchw, (0, 2, 3, 1)).astype(jnp.float32)
        corr = jnp.transpose(corr_nchw, (0, 2, 3, 1)).astype(jnp.float32)
        cor = conv2d(corr, self.convc1, apply_relu=True)
        cor = conv2d(cor, self.convc2, apply_relu=True)
        flo = conv2d(flow, self.convf1, apply_relu=True)
        flo = conv2d(flo, self.convf2, apply_relu=True)
        out = conv2d([cor, flo], self.conv, apply_relu=True)   # concat folded in
        out = jnp.concatenate([out, flow], axis=-1)            # cat([out, flow])
        return jnp.transpose(out, (0, 3, 1, 2))

    def __call__(self, flow_nchw, corr_nchw):
        return self._jit_fwd(flow_nchw, corr_nchw)

    # Plain-JAX f32 reference (XLA convs) used only for validation in __main__.
    def reference(self, flow_nchw, corr_nchw):
        def conv_ref(x, p):
            y = jax.lax.conv_general_dilated(
                x, p["w_f32"], (1, 1),
                [(p["pad"][0], p["pad"][0]), (p["pad"][1], p["pad"][1])],
                dimension_numbers=("NHWC", "HWIO", "NHWC"))
            return jnp.maximum(y + p["b_f32"], 0.0)

        flow = jnp.transpose(flow_nchw, (0, 2, 3, 1)).astype(jnp.float32)
        corr = jnp.transpose(corr_nchw, (0, 2, 3, 1)).astype(jnp.float32)
        cor = conv_ref(conv_ref(corr, self.convc1), self.convc2)
        flo = conv_ref(conv_ref(flow, self.convf1), self.convf2)
        out = conv_ref(jnp.concatenate([cor, flo], axis=-1), self.conv)
        out = jnp.concatenate([out, flow], axis=-1)
        return jnp.transpose(out, (0, 3, 1, 2))


# ----------------------------------------------------------------------------
if __name__ == "__main__":
    key = jax.random.PRNGKey(0)
    k1, k2 = jax.random.split(key)

    B, H, W = 2, 16, 16
    corr_levels, corr_radius = 2, 2
    cor_planes = corr_levels * (2 * corr_radius + 1) ** 2   # 50

    flow = jax.random.normal(k1, (B, 2, H, W), jnp.float32)
    corr = jax.random.normal(k2, (B, cor_planes, H, W), jnp.float32)

    enc = BasicMotionEncoderPallas(corr_levels, corr_radius, seed=0)
    out = enc(flow, corr)
    jax.block_until_ready(out)

    assert out.shape == (B, 128, H, W), out.shape
    assert bool(jnp.all(jnp.isfinite(out)))
    # Last 2 channels are the pass-through flow (torch.cat([out, flow], dim=1)).
    assert bool(jnp.allclose(out[:, 126:], flow, atol=1e-6))

    # Sanity vs an f32 XLA reference (bf16 MXU operands -> loose tolerance).
    ref = enc.reference(flow, corr)
    jax.block_until_ready(ref)
    err = float(jnp.max(jnp.abs(out - ref)) / (jnp.max(jnp.abs(ref)) + 1e-6))
    assert err < 5e-2, f"relative error too large: {err}"

    print("KERNEL_OK")
</pallas_src>

<mosaic_0001>
module attributes {stable_mosaic.version = 11 : i64} {
  func.func @_matmul_bias_act_kernel(%arg0: i32, %arg1: i32, %arg2: i32, %arg3: memref<128x128xbf16, #tpu.memory_space<vmem>>, %arg4: memref<128x128xbf16, #tpu.memory_space<vmem>>, %arg5: memref<1x128xf32, #tpu.memory_space<vmem>>, %arg6: memref<128x128xf32, #tpu.memory_space<vmem>>, %arg7: memref<128x128xf32, #tpu.memory_space<vmem>>) attributes {dimension_semantics = [#tpu.dimension_semantics<parallel>, #tpu.dimension_semantics<parallel>, #tpu.dimension_semantics<arbitrary>], iteration_bounds = array<i64: 4, 1, 1>, scalar_prefetch = 0 : i64, scratch_operands = 1 : i64, tpu.core_type = #tpu.core_type<tc>, window_params = [{transform_indices = @transform_0, window_bounds = array<i64: 128, 128>}, {transform_indices = @transform_1, window_bounds = array<i64: 128, 128>}, {transform_indices = @transform_2, window_bounds = array<i64: 1, 128>}, {transform_indices = @transform_3, window_bounds = array<i64: 128, 128>}]} {
    %c0_i32 = arith.constant 0 : i32
    %0 = arith.cmpi eq, %arg2, %c0_i32 : i32
    %1 = arith.extui %0 : i1 to i32
    %c0_i32_0 = arith.constant 0 : i32
    %2 = arith.cmpi ne, %1, %c0_i32_0 : i32
    scf.if %2 {
      %cst_10 = arith.constant 0.000000e+00 : f32
      %12 = vector.broadcast %cst_10 : f32 to vector<128x128xf32>
      %c0_11 = arith.constant 0 : index
      %c0_12 = arith.constant 0 : index
      %13 = vector.load %arg7[%c0_11, %c0_12] : memref<128x128xf32, #tpu.memory_space<vmem>>, vector<128x128xf32>
      tpu.vector_store %arg7[%c0_11, %c0_12], %12 {strides = array<i32>} : memref<128x128xf32, #tpu.memory_space<vmem>>, vector<128x128xf32>,
    } else {
    }
    %c0 = arith.constant 0 : index
    %c0_1 = arith.constant 0 : index
    %3 = vector.load %arg7[%c0, %c0_1] : memref<128x128xf32, #tpu.memory_space<vmem>>, vector<128x128xf32>
    %c0_2 = arith.constant 0 : index
    %c0_3 = arith.constant 0 : index
    %4 = vector.load %arg3[%c0_2, %c0_3] : memref<128x128xbf16, #tpu.memory_space<vmem>>, vector<128x128xbf16>
    %c0_4 = arith.constant 0 : index
    %c0_5 = arith.constant 0 : index
    %5 = vector.load %arg4[%c0_4, %c0_5] : memref<128x128xbf16, #tpu.memory_space<vmem>>, vector<128x128xbf16>
    %cst = arith.constant dense<0.000000e+00> : vector<128x128xf32>
    %6 = tpu.matmul %4, %5, %cst {dimension_numbers = #tpu.dot_dimension_numbers<[1], [0], [0], [1], [0, 0, 1, 1], [], []>} : vector<128x128xbf16>, vector<128x128xbf16>, vector<128x128xf32> -> vector<128x128xf32>
    %7 = arith.addf %3, %6 : vector<128x128xf32>
    %c0_6 = arith.constant 0 : index
    %c0_7 = arith.constant 0 : index
    %8 = vector.load %arg7[%c0_6, %c0_7] : memref<128x128xf32, #tpu.memory_space<vmem>>, vector<128x128xf32>
    tpu.vector_store %arg7[%c0_6, %c0_7], %7 {strides = array<i32>} : memref<128x128xf32, #tpu.memory_space<vmem>>, vector<128x128xf32>,
    %c0_i32_8 = arith.constant 0 : i32
    %9 = arith.cmpi eq, %arg2, %c0_i32_8 : i32
    %10 = arith.extui %9 : i1 to i32
    %c0_i32_9 = arith.constant 0 : i32
    %11 = arith.cmpi ne, %10, %c0_i32_9 : i32
    scf.if %11 {
      %c0_10 = arith.constant 0 : index
      %c0_11 = arith.constant 0 : index
      %12 = vector.load %arg7[%c0_10, %c0_11] : memref<128x128xf32, #tpu.memory_space<vmem>>, vector<128x128xf32>
      %c0_12 = arith.constant 0 : index
      %c0_13 = arith.constant 0 : index
      %13 = vector.load %arg5[%c0_12, %c0_13] : memref<1x128xf32, #tpu.memory_space<vmem>>, vector<1x128xf32>
      %14 = vector.broadcast %13 : vector<1x128xf32> to vector<128x128xf32>
      %15 = arith.addf %12, %14 : vector<128x128xf32>
      %cst_14 = arith.constant 0.000000e+00 : f32
      %16 = vector.broadcast %cst_14 : f32 to vector<128x128xf32>
      %17 = arith.maximumf %15, %16 : vector<128x128xf32>
      %c0_15 = arith.constant 0 : index
      %c0_16 = arith.constant 0 : index
      %18 = vector.load %arg6[%c0_15, %c0_16] : memref<128x128xf32, #tpu.memory_space<vmem>>, vector<128x128xf32>
      tpu.vector_store %arg6[%c0_15, %c0_16], %17 {strides = array<i32>} : memref<128x128xf32, #tpu.memory_space<vmem>>, vector<128x128xf32>,
    } else {
    }
    return
  }
  func.func @transform_0(%arg0: i32, %arg1: i32, %arg2: i32) -> (i32, i32) {
    %c0_i32 = arith.constant 0 : i32
    return %arg0, %arg2 : i32, i32
  }
  func.func @transform_1(%arg0: i32, %arg1: i32, %arg2: i32) -> (i32, i32) {
    %c0_i32 = arith.constant 0 : i32
    return %arg2, %arg1 : i32, i32
  }
  func.func @transform_2(%arg0: i32, %arg1: i32, %arg2: i32) -> (i32, i32) {
    %c0_i32 = arith.constant 0 : i32
    %c0_i32_0 = arith.constant 0 : i32
    return %c0_i32, %arg1 : i32, i32
  }
  func.func @transform_3(%arg0: i32, %arg1: i32, %arg2: i32) -> (i32, i32) {
    %c0_i32 = arith.constant 0 : i32
    return %arg0, %arg1 : i32, i32
  }
}

module attributes {stable_mosaic.version = 11 : i64} {
  func.func @_matmul_bias_act_kernel(%arg0: i32, %arg1: i32, %arg2: i32, %arg3: memref<128x384xbf16, #tpu.memory_space<vmem>>, %arg4: memref<384x128xbf16, #tpu.memory_space<vmem>>, %arg5: memref<1x128xf32, #tpu.memory_space<vmem>>, %arg6: memref<128x128xf32, #tpu.memory_space<vmem>>, %arg7: memref<128x128xf32, #tpu.memory_space<vmem>>) attributes {dimension_semantics = [#tpu.dimension_semantics<parallel>, #tpu.dimension_semantics<parallel>, #tpu.dimension_semantics<arbitrary>], iteration_bounds = array<i64: 4, 1, 3>, scalar_prefetch = 0 : i64, scratch_operands = 1 : i64, tpu.core_type = #tpu.core_type<tc>, window_params = [{transform_indices = @transform_0, window_bounds = array<i64: 128, 384>}, {transform_indices = @transform_1, window_bounds = array<i64: 384, 128>}, {transform_indices = @transform_2, window_bounds = array<i64: 1, 128>}, {transform_indices = @transform_3, window_bounds = array<i64: 128, 128>}]} {
    %c0_i32 = arith.constant 0 : i32
    %0 = arith.cmpi eq, %arg2, %c0_i32 : i32
    %1 = arith.extui %0 : i1 to i32
    %c0_i32_0 = arith.constant 0 : i32
    %2 = arith.cmpi ne, %1, %c0_i32_0 : i32
    scf.if %2 {
      %cst_9 = arith.constant 0.000000e+00 : f32
      %12 = vector.broadcast %cst_9 : f32 to vector<128x128xf32>
      %c0_10 = arith.constant 0 : index
      %c0_11 = arith.constant 0 : index
      %13 = vector.load %arg7[%c0_10, %c0_11] : memref<128x128xf32, #tpu.memory_space<vmem>>, vector<128x128xf32>
      tpu.vector_store %arg7[%c0_10, %c0_11], %12 {strides = array<i32>} : memref<128x128xf32, #tpu.memory_space<vmem>>, vector<128x128xf32>,
    } else {
    }
    %c0 = arith.constant 0 : index
    %c0_1 = arith.constant 0 : index
    %3 = vector.load %arg7[%c0, %c0_1] : memref<128x128xf32, #tpu.memory_space<vmem>>, vector<128x128xf32>
    %c0_2 = arith.constant 0 : index
    %c0_3 = arith.constant 0 : index
    %4 = vector.load %arg3[%c0_2, %c0_3] : memref<128x384xbf16, #tpu.memory_space<vmem>>, vector<128x384xbf16>
    %c0_4 = arith.constant 0 : index
    %c0_5 = arith.constant 0 : index
    %5 = vector.load %arg4[%c0_4, %c0_5] : memref<384x128xbf16, #tpu.memory_space<vmem>>, vector<384x128xbf16>
    %cst = arith.constant dense<0.000000e+00> : vector<128x128xf32>
    %6 = tpu.matmul %4, %5, %cst {dimension_numbers = #tpu.dot_dimension_numbers<[1], [0], [0], [1], [0, 0, 1, 1], [], []>} : vector<128x384xbf16>, vector<384x128xbf16>, vector<128x128xf32> -> vector<128x128xf32>
    %7 = arith.addf %3, %6 : vector<128x128xf32>
    %c0_6 = arith.constant 0 : index
    %c0_7 = arith.constant 0 : index
    %8 = vector.load %arg7[%c0_6, %c0_7] : memref<128x128xf32, #tpu.memory_space<vmem>>, vector<128x128xf32>
    tpu.vector_store %arg7[%c0_6, %c0_7], %7 {strides = array<i32>} : memref<128x128xf32, #tpu.memory_space<vmem>>, vector<128x128xf32>,
    %c2_i32 = arith.constant 2 : i32
    %9 = arith.cmpi eq, %arg2, %c2_i32 : i32
    %10 = arith.extui %9 : i1 to i32
    %c0_i32_8 = arith.constant 0 : i32
    %11 = arith.cmpi ne, %10, %c0_i32_8 : i32
    scf.if %11 {
      %c0_9 = arith.constant 0 : index
      %c0_10 = arith.constant 0 : index
      %12 = vector.load %arg7[%c0_9, %c0_10] : memref<128x128xf32, #tpu.memory_space<vmem>>, vector<128x128xf32>
      %c0_11 = arith.constant 0 : index
      %c0_12 = arith.constant 0 : index
      %13 = vector.load %arg5[%c0_11, %c0_12] : memref<1x128xf32, #tpu.memory_space<vmem>>, vector<1x128xf32>
      %14 = vector.broadcast %13 : vector<1x128xf32> to vector<128x128xf32>
      %15 = arith.addf %12, %14 : vector<128x128xf32>
      %cst_13 = arith.constant 0.000000e+00 : f32
      %16 = vector.broadcast %cst_13 : f32 to vector<128x128xf32>
      %17 = arith.maximumf %15, %16 : vector<128x128xf32>
      %c0_14 = arith.constant 0 : index
      %c0_15 = arith.constant 0 : index
      %18 = vector.load %arg6[%c0_14, %c0_15] : memref<128x128xf32, #tpu.memory_space<vmem>>, vector<128x128xf32>
      tpu.vector_store %arg6[%c0_14, %c0_15], %17 {strides = array<i32>} : memref<128x128xf32, #tpu.memory_space<vmem>>, vector<128x128xf32>,
    } else {
    }
    return
  }
  func.func @transform_0(%arg0: i32, %arg1: i32, %arg2: i32) -> (i32, i32) {
    %c0_i32 = arith.constant 0 : i32
    return %arg0, %arg2 : i32, i32
  }
  func.func @transform_1(%arg0: i32, %arg1: i32, %arg2: i32) -> (i32, i32) {
    %c0_i32 = arith.constant 0 : i32
    return %arg2, %arg1 : i32, i32
  }
  func.func @transform_2(%arg0: i32, %arg1: i32, %arg2: i32) -> (i32, i32) {
    %c0_i32 = arith.constant 0 : i32
    %c0_i32_0 = arith.constant 0 : i32
    return %c0_i32, %arg1 : i32, i32
  }
  func.func @transform_3(%arg0: i32, %arg1: i32, %arg2: i32) -> (i32, i32) {
    %c0_i32 = arith.constant 0 : i32
    return %arg0, %arg1 : i32, i32
  }
}

module attributes {stable_mosaic.version = 11 : i64} {
  func.func @_matmul_bias_act_kernel(%arg0: i32, %arg1: i32, %arg2: i32, %arg3: memref<128x128xbf16, #tpu.memory_space<vmem>>, %arg4: memref<128x256xbf16, #tpu.memory_space<vmem>>, %arg5: memref<1x256xf32, #tpu.memory_space<vmem>>, %arg6: memref<128x256xf32, #tpu.memory_space<vmem>>, %arg7: memref<128x256xf32, #tpu.memory_space<vmem>>) attributes {dimension_semantics = [#tpu.dimension_semantics<parallel>, #tpu.dimension_semantics<parallel>, #tpu.dimension_semantics<arbitrary>], iteration_bounds = array<i64: 4, 1, 1>, scalar_prefetch = 0 : i64, scratch_operands = 1 : i64, tpu.core_type = #tpu.core_type<tc>, window_params = [{transform_indices = @transform_0, window_bounds = array<i64: 128, 128>}, {transform_indices = @transform_1, window_bounds = array<i64: 128, 256>}, {transform_indices = @transform_2, window_bounds = array<i64: 1, 256>}, {transform_indices = @transform_3, window_bounds = array<i64: 128, 256>}]} {
    %c0_i32 = arith.constant 0 : i32
    %0 = arith.cmpi eq, %arg2, %c0_i32 : i32
    %1 = arith.extui %0 : i1 to i32
    %c0_i32_0 = arith.constant 0 : i32
    %2 = arith.cmpi ne, %1, %c0_i32_0 : i32
    scf.if %2 {
      %cst_10 = arith.constant 0.000000e+00 : f32
      %12 = vector.broadcast %cst_10 : f32 to vector<128x256xf32>
      %c0_11 = arith.constant 0 : index
      %c0_12 = arith.constant 0 : index
      %13 = vector.load %arg7[%c0_11, %c0_12] : memref<128x256xf32, #tpu.memory_space<vmem>>, vector<128x256xf32>
      tpu.vector_store %arg7[%c0_11, %c0_12], %12 {strides = array<i32>} : memref<128x256xf32, #tpu.memory_space<vmem>>, vector<128x256xf32>,
    } else {
    }
    %c0 = arith.constant 0 : index
    %c0_1 = arith.constant 0 : index
    %3 = vector.load %arg7[%c0, %c0_1] : memref<128x256xf32, #tpu.memory_space<vmem>>, vector<128x256xf32>
    %c0_2 = arith.constant 0 : index
    %c0_3 = arith.constant 0 : index
    %4 = vector.load %arg3[%c0_2, %c0_3] : memref<128x128xbf16, #tpu.memory_space<vmem>>, vector<128x128xbf16>
    %c0_4 = arith.constant 0 : index
    %c0_5 = arith.constant 0 : index
    %5 = vector.load %arg4[%c0_4, %c0_5] : memref<128x256xbf16, #tpu.memory_space<vmem>>, vector<128x256xbf16>
    %cst = arith.constant dense<0.000000e+00> : vector<128x256xf32>
    %6 = tpu.matmul %4, %5, %cst {dimension_numbers = #tpu.dot_dimension_numbers<[1], [0], [0], [1], [0, 0, 1, 1], [], []>} : vector<128x128xbf16>, vector<128x256xbf16>, vector<128x256xf32> -> vector<128x256xf32>
    %7 = arith.addf %3, %6 : vector<128x256xf32>
    %c0_6 = arith.constant 0 : index
    %c0_7 = arith.constant 0 : index
    %8 = vector.load %arg7[%c0_6, %c0_7] : memref<128x256xf32, #tpu.memory_space<vmem>>, vector<128x256xf32>
    tpu.vector_store %arg7[%c0_6, %c0_7], %7 {strides = array<i32>} : memref<128x256xf32, #tpu.memory_space<vmem>>, vector<128x256xf32>,
    %c0_i32_8 = arith.constant 0 : i32
    %9 = arith.cmpi eq, %arg2, %c0_i32_8 : i32
    %10 = arith.extui %9 : i1 to i32
    %c0_i32_9 = arith.constant 0 : i32
    %11 = arith.cmpi ne, %10, %c0_i32_9 : i32
    scf.if %11 {
      %c0_10 = arith.constant 0 : index
      %c0_11 = arith.constant 0 : index
      %12 = vector.load %arg7[%c0_10, %c0_11] : memref<128x256xf32, #tpu.memory_space<vmem>>, vector<128x256xf32>
      %c0_12 = arith.constant 0 : index
      %c0_13 = arith.constant 0 : index
      %13 = vector.load %arg5[%c0_12, %c0_13] : memref<1x256xf32, #tpu.memory_space<vmem>>, vector<1x256xf32>
      %14 = vector.broadcast %13 : vector<1x256xf32> to vector<128x256xf32>
      %15 = arith.addf %12, %14 : vector<128x256xf32>
      %cst_14 = arith.constant 0.000000e+00 : f32
      %16 = vector.broadcast %cst_14 : f32 to vector<128x256xf32>
      %17 = arith.maximumf %15, %16 : vector<128x256xf32>
      %c0_15 = arith.constant 0 : index
      %c0_16 = arith.constant 0 : index
      %18 = vector.load %arg6[%c0_15, %c0_16] : memref<128x256xf32, #tpu.memory_space<vmem>>, vector<128x256xf32>
      tpu.vector_store %arg6[%c0_15, %c0_16], %17 {strides = array<i32>} : memref<128x256xf32, #tpu.memory_space<vmem>>, vector<128x256xf32>,
    } else {
    }
    return
  }
  func.func @transform_0(%arg0: i32, %arg1: i32, %arg2: i32) -> (i32, i32) {
    %c0_i32 = arith.constant 0 : i32
    return %arg0, %arg2 : i32, i32
  }
  func.func @transform_1(%arg0: i32, %arg1: i32, %arg2: i32) -> (i32, i32) {
    %c0_i32 = arith.constant 0 : i32
    return %arg2, %arg1 : i32, i32
  }
  func.func @transform_2(%arg0: i32, %arg1: i32, %arg2: i32) -> (i32, i32) {
    %c0_i32 = arith.constant 0 : i32
    %c0_i32_0 = arith.constant 0 : i32
    return %c0_i32, %arg1 : i32, i32
  }
  func.func @transform_3(%arg0: i32, %arg1: i32, %arg2: i32) -> (i32, i32) {
    %c0_i32 = arith.constant 0 : i32
    return %arg0, %arg1 : i32, i32
  }
}

module attributes {stable_mosaic.version = 11 : i64} {
  func.func @_matmul_bias_act_kernel(%arg0: i32, %arg1: i32, %arg2: i32, %arg3: memref<128x768xbf16, #tpu.memory_space<vmem>>, %arg4: memref<768x256xbf16, #tpu.memory_space<vmem>>, %arg5: memref<1x256xf32, #tpu.memory_space<vmem>>, %arg6: memref<128x256xf32, #tpu.memory_space<vmem>>, %arg7: memref<128x256xf32, #tpu.memory_space<vmem>>) attributes {dimension_semantics = [#tpu.dimension_semantics<parallel>, #tpu.dimension_semantics<parallel>, #tpu.dimension_semantics<arbitrary>], iteration_bounds = array<i64: 4, 1, 3>, scalar_prefetch = 0 : i64, scratch_operands = 1 : i64, tpu.core_type = #tpu.core_type<tc>, window_params = [{transform_indices = @transform_0, window_bounds = array<i64: 128, 768>}, {transform_indices = @transform_1, window_bounds = array<i64: 768, 256>}, {transform_indices = @transform_2, window_bounds = array<i64: 1, 256>}, {transform_indices = @transform_3, window_bounds = array<i64: 128, 256>}]} {
    %c0_i32 = arith.constant 0 : i32
    %0 = arith.cmpi eq, %arg2, %c0_i32 : i32
    %1 = arith.extui %0 : i1 to i32
    %c0_i32_0 = arith.constant 0 : i32
    %2 = arith.cmpi ne, %1, %c0_i32_0 : i32
    scf.if %2 {
      %cst_9 = arith.constant 0.000000e+00 : f32
      %12 = vector.broadcast %cst_9 : f32 to vector<128x256xf32>
      %c0_10 = arith.constant 0 : index
      %c0_11 = arith.constant 0 : index
      %13 = vector.load %arg7[%c0_10, %c0_11] : memref<128x256xf32, #tpu.memory_space<vmem>>, vector<128x256xf32>
      tpu.vector_store %arg7[%c0_10, %c0_11], %12 {strides = array<i32>} : memref<128x256xf32, #tpu.memory_space<vmem>>, vector<128x256xf32>,
    } else {
    }
    %c0 = arith.constant 0 : index
    %c0_1 = arith.constant 0 : index
    %3 = vector.load %arg7[%c0, %c0_1] : memref<128x256xf32, #tpu.memory_space<vmem>>, vector<128x256xf32>
    %c0_2 = arith.constant 0 : index
    %c0_3 = arith.constant 0 : index
    %4 = vector.load %arg3[%c0_2, %c0_3] : memref<128x768xbf16, #tpu.memory_space<vmem>>, vector<128x768xbf16>
    %c0_4 = arith.constant 0 : index
    %c0_5 = arith.constant 0 : index
    %5 = vector.load %arg4[%c0_4, %c0_5] : memref<768x256xbf16, #tpu.memory_space<vmem>>, vector<768x256xbf16>
    %cst = arith.constant dense<0.000000e+00> : vector<128x256xf32>
    %6 = tpu.matmul %4, %5, %cst {dimension_numbers = #tpu.dot_dimension_numbers<[1], [0], [0], [1], [0, 0, 1, 1], [], []>} : vector<128x768xbf16>, vector<768x256xbf16>, vector<128x256xf32> -> vector<128x256xf32>
    %7 = arith.addf %3, %6 : vector<128x256xf32>
    %c0_6 = arith.constant 0 : index
    %c0_7 = arith.constant 0 : index
    %8 = vector.load %arg7[%c0_6, %c0_7] : memref<128x256xf32, #tpu.memory_space<vmem>>, vector<128x256xf32>
    tpu.vector_store %arg7[%c0_6, %c0_7], %7 {strides = array<i32>} : memref<128x256xf32, #tpu.memory_space<vmem>>, vector<128x256xf32>,
    %c2_i32 = arith.constant 2 : i32
    %9 = arith.cmpi eq, %arg2, %c2_i32 : i32
    %10 = arith.extui %9 : i1 to i32
    %c0_i32_8 = arith.constant 0 : i32
    %11 = arith.cmpi ne, %10, %c0_i32_8 : i32
    scf.if %11 {
      %c0_9 = arith.constant 0 : index
      %c0_10 = arith.constant 0 : index
      %12 = vector.load %arg7[%c0_9, %c0_10] : memref<128x256xf32, #tpu.memory_space<vmem>>, vector<128x256xf32>
      %c0_11 = arith.constant 0 : index
      %c0_12 = arith.constant 0 : index
      %13 = vector.load %arg5[%c0_11, %c0_12] : memref<1x256xf32, #tpu.memory_space<vmem>>, vector<1x256xf32>
      %14 = vector.broadcast %13 : vector<1x256xf32> to vector<128x256xf32>
      %15 = arith.addf %12, %14 : vector<128x256xf32>
      %cst_13 = arith.constant 0.000000e+00 : f32
      %16 = vector.broadcast %cst_13 : f32 to vector<128x256xf32>
      %17 = arith.maximumf %15, %16 : vector<128x256xf32>
      %c0_14 = arith.constant 0 : index
      %c0_15 = arith.constant 0 : index
      %18 = vector.load %arg6[%c0_14, %c0_15] : memref<128x256xf32, #tpu.memory_space<vmem>>, vector<128x256xf32>
      tpu.vector_store %arg6[%c0_14, %c0_15], %17 {strides = array<i32>} : memref<128x256xf32, #tpu.memory_space<vmem>>, vector<128x256xf32>,
    } else {
    }
    return
  }
  func.func @transform_0(%arg0: i32, %arg1: i32, %arg2: i32) -> (i32, i32) {
    %c0_i32 = arith.constant 0 : i32
    return %arg0, %arg2 : i32, i32
  }
  func.func @transform_1(%arg0: i32, %arg1: i32, %arg2: i32) -> (i32, i32) {
    %c0_i32 = arith.constant 0 : i32
    return %arg2, %arg1 : i32, i32
  }
  func.func @transform_2(%arg0: i32, %arg1: i32, %arg2: i32) -> (i32, i32) {
    %c0_i32 = arith.constant 0 : i32
    %c0_i32_0 = arith.constant 0 : i32
    return %c0_i32, %arg1 : i32, i32
  }
  func.func @transform_3(%arg0: i32, %arg1: i32, %arg2: i32) -> (i32, i32) {
    %c0_i32 = arith.constant 0 : i32
    return %arg0, %arg1 : i32, i32
  }
}

module attributes {stable_mosaic.version = 11 : i64} {
  func.func @_matmul_bias_act_kernel(%arg0: i32, %arg1: i32, %arg2: i32, %arg3: memref<128x768xbf16, #tpu.memory_space<vmem>>, %arg4: memref<768x128xbf16, #tpu.memory_space<vmem>>, %arg5: memref<1x128xf32, #tpu.memory_space<vmem>>, %arg6: memref<128x128xf32, #tpu.memory_space<vmem>>, %arg7: memref<128x128xf32, #tpu.memory_space<vmem>>) attributes {dimension_semantics = [#tpu.dimension_semantics<parallel>, #tpu.dimension_semantics<parallel>, #tpu.dimension_semantics<arbitrary>], iteration_bounds = array<i64: 4, 1, 3>, scalar_prefetch = 0 : i64, scratch_operands = 1 : i64, tpu.core_type = #tpu.core_type<tc>, window_params = [{transform_indices = @transform_0, window_bounds = array<i64: 128, 768>}, {transform_indices = @transform_1, window_bounds = array<i64: 768, 128>}, {transform_indices = @transform_2, window_bounds = array<i64: 1, 128>}, {transform_indices = @transform_3, window_bounds = array<i64: 128, 128>}]} {
    %c0_i32 = arith.constant 0 : i32
    %0 = arith.cmpi eq, %arg2, %c0_i32 : i32
    %1 = arith.extui %0 : i1 to i32
    %c0_i32_0 = arith.constant 0 : i32
    %2 = arith.cmpi ne, %1, %c0_i32_0 : i32
    scf.if %2 {
      %cst_9 = arith.constant 0.000000e+00 : f32
      %12 = vector.broadcast %cst_9 : f32 to vector<128x128xf32>
      %c0_10 = arith.constant 0 : index
      %c0_11 = arith.constant 0 : index
      %13 = vector.load %arg7[%c0_10, %c0_11] : memref<128x128xf32, #tpu.memory_space<vmem>>, vector<128x128xf32>
      tpu.vector_store %arg7[%c0_10, %c0_11], %12 {strides = array<i32>} : memref<128x128xf32, #tpu.memory_space<vmem>>, vector<128x128xf32>,
    } else {
    }
    %c0 = arith.constant 0 : index
    %c0_1 = arith.constant 0 : index
    %3 = vector.load %arg7[%c0, %c0_1] : memref<128x128xf32, #tpu.memory_space<vmem>>, vector<128x128xf32>
    %c0_2 = arith.constant 0 : index
    %c0_3 = arith.constant 0 : index
    %4 = vector.load %arg3[%c0_2, %c0_3] : memref<128x768xbf16, #tpu.memory_space<vmem>>, vector<128x768xbf16>
    %c0_4 = arith.constant 0 : index
    %c0_5 = arith.constant 0 : index
    %5 = vector.load %arg4[%c0_4, %c0_5] : memref<768x128xbf16, #tpu.memory_space<vmem>>, vector<768x128xbf16>
    %cst = arith.constant dense<0.000000e+00> : vector<128x128xf32>
    %6 = tpu.matmul %4, %5, %cst {dimension_numbers = #tpu.dot_dimension_numbers<[1], [0], [0], [1], [0, 0, 1, 1], [], []>} : vector<128x768xbf16>, vector<768x128xbf16>, vector<128x128xf32> -> vector<128x128xf32>
    %7 = arith.addf %3, %6 : vector<128x128xf32>
    %c0_6 = arith.constant 0 : index
    %c0_7 = arith.constant 0 : index
    %8 = vector.load %arg7[%c0_6, %c0_7] : memref<128x128xf32, #tpu.memory_space<vmem>>, vector<128x128xf32>
    tpu.vector_store %arg7[%c0_6, %c0_7], %7 {strides = array<i32>} : memref<128x128xf32, #tpu.memory_space<vmem>>, vector<128x128xf32>,
    %c2_i32 = arith.constant 2 : i32
    %9 = arith.cmpi eq, %arg2, %c2_i32 : i32
    %10 = arith.extui %9 : i1 to i32
    %c0_i32_8 = arith.constant 0 : i32
    %11 = arith.cmpi ne, %10, %c0_i32_8 : i32
    scf.if %11 {
      %c0_9 = arith.constant 0 : index
      %c0_10 = arith.constant 0 : index
      %12 = vector.load %arg7[%c0_9, %c0_10] : memref<128x128xf32, #tpu.memory_space<vmem>>, vector<128x128xf32>
      %c0_11 = arith.constant 0 : index
      %c0_12 = arith.constant 0 : index
      %13 = vector.load %arg5[%c0_11, %c0_12] : memref<1x128xf32, #tpu.memory_space<vmem>>, vector<1x128xf32>
      %14 = vector.broadcast %13 : vector<1x128xf32> to vector<128x128xf32>
      %15 = arith.addf %12, %14 : vector<128x128xf32>
      %cst_13 = arith.constant 0.000000e+00 : f32
      %16 = vector.broadcast %cst_13 : f32 to vector<128x128xf32>
      %17 = arith.maximumf %15, %16 : vector<128x128xf32>
      %c0_14 = arith.constant 0 : index
      %c0_15 = arith.constant 0 : index
      %18 = vector.load %arg6[%c0_14, %c0_15] : memref<128x128xf32, #tpu.memory_space<vmem>>, vector<128x128xf32>
      tpu.vector_store %arg6[%c0_14, %c0_15], %17 {strides = array<i32>} : memref<128x128xf32, #tpu.memory_space<vmem>>, vector<128x128xf32>,
    } else {
    }
    return
  }
  func.func @transform_0(%arg0: i32, %arg1: i32, %arg2: i32) -> (i32, i32) {
    %c0_i32 = arith.constant 0 : i32
    return %arg0, %arg2 : i32, i32
  }
  func.func @transform_1(%arg0: i32, %arg1: i32, %arg2: i32) -> (i32, i32) {
    %c0_i32 = arith.constant 0 : i32
    return %arg2, %arg1 : i32, i32
  }
  func.func @transform_2(%arg0: i32, %arg1: i32, %arg2: i32) -> (i32, i32) {
    %c0_i32 = arith.constant 0 : i32
    %c0_i32_0 = arith.constant 0 : i32
    return %c0_i32, %arg1 : i32, i32
  }
  func.func @transform_3(%arg0: i32, %arg1: i32, %arg2: i32) -> (i32, i32) {
    %c0_i32 = arith.constant 0 : i32
    return %arg0, %arg1 : i32, i32
  }
}

</mosaic_0001>

<bundles_post_ra>
// kernel: _forward.7
= control target key start
LH: loop header
LB: loop body
LE: loop exit
PB: predicated region body
PF: predicated region fallthrough
CT: control target
= control target key end

     0   :  { %s916_s12 = smov 0   ;;  %s918_s13 = smov 0   ;;  %s1008_s0 = inlined_call_operand.vmem [shape: bf16[512,128], index: 0, kind: input, shape index: {}]   ;;  %s1009_s1 = inlined_call_operand.vmem [shape: bf16[128,128], index: 1, kind: input, shape index: {}]   ;;  %s1010_s2 = inlined_call_operand.vmem [shape: f32[1,128], index: 2, kind: input, shape index: {}]   ;;  %s1011_s3 = inlined_call_operand.vmem [shape: f32[512,128], index: 3, kind: output, shape index: {}]  }
   0x1   :  { %s920_s14 = smov 0  }
   0x2 LB: > { %s32_s15 = sadd.s32 1, %s890_s13  ;;  %p744_p0 = scmp.ge.s32.totalorder %s894_s14, 1  ;;  %s894_s14 = sphi %s920_s14, %s13_s14   ;;  %s890_s13 = sphi %s918_s13, %s1013_s13   ;;  %s886_s12 = sphi %s916_s12, %s1012_s12  }
   0x3   : > { %p34_p1 = scmp.ge.s32.totalorder %s32_s15, 4  ;;  %p188_p2 = scmp.lt.s32.totalorder %s894_s14, 5 }
   0x5   : > { %s1015_s15 = smov (%p34_p1, %s32_s15), 0  ;;  %p189_p3 = pnand %p744_p0, %p188_p2 }
   0x6   : > { %v856_v0 = vld [vmem:[%s1009_s1] sm:$0xff] (!%p189_p3)   ;;  %s745_s18 = sshll.u32 (!%p189_p3), %s886_s12, 4  ;;  %v857_v1 = vld [vmem:[%s1009_s1 + $0x8] sm:$0xff] (!%p189_p3)   ;;  %v858_v2 = vld [vmem:[%s1009_s1 + $0x10] sm:$0xff] (!%p189_p3)  }
   0x7   : > { %192 = sbr.rel (%p189_p3) target bundleno = 267 (0x10b), region = 32  ;;  %p230_p4 = scmp.lt.s32.totalorder (!%p189_p3), %s745_s18, 63  ;;  %784 = vmatprep.subr.bf16.mxu0 (!%p189_p3), %v856_v0  ;;  %816 = vmatprep.subr.bf16.mxu1 (!%p189_p3), %v856_v0  ;;  %v859_v3 = vld [vmem:[%s1009_s1 + $0x18] sm:$0xff] (!%p189_p3)   ;;  %v860_v6 = vld [vmem:[%s1009_s1 + $0x20] sm:$0xff] (!%p189_p3)   ;;  %v861_v7 = vld [vmem:[%s1009_s1 + $0x28] sm:$0xff] (!%p189_p3)  }
   0x8   : > { %785 = vmatpush3.bf16.msra.mxu0 (!%p189_p3), %v856_v0  ;;  %824 = vmatpush3.bf16.msra.mxu1 (!%p189_p3), %v856_v0  ;;  %v862_v8 = vld [vmem:[%s1009_s1 + $0x30] sm:$0xff] (!%p189_p3)   ;;  %v863_v9 = vld [vmem:[%s1009_s1 + $0x38] sm:$0xff] (!%p189_p3)   ;;  %v765_v16 = vld [vmem:[%s1010_s2] ss:$0 sm:$0xff] (!%p189_p3) }
   0x9   : > { %786 = vmatprep.subr.bf16.mxu0 (!%p189_p3), %v857_v1  ;;  %817 = vmatprep.subr.bf16.mxu1 (!%p189_p3), %v857_v1 }
   0xc   : > { %787 = vmatpush3.bf16.msra.mxu0 (!%p189_p3), %v857_v1  ;;  %825 = vmatpush3.bf16.msra.mxu1 (!%p189_p3), %v857_v1 }
   0xd   : > { %788 = vmatprep.subr.bf16.mxu0 (!%p189_p3), %v858_v2  ;;  %818 = vmatprep.subr.bf16.mxu1 (!%p189_p3), %v858_v2 }
   0xe   : > { %s1017_s18 = smov (!%p230_p4, %s745_s18), 63 }
   0xf   : > { %s746_s23 = sshll.u32 %s1017_s18, 2  ;;  %s748_s12 = sshll.u32 %s1017_s18, 3 }
  0x10   : > { %s949_s26 = scalar_lea.vmem %s1008_s0, %s746_s23  ;;  %789 = vmatpush3.bf16.msra.mxu0 %v858_v2  ;;  %826 = vmatpush3.bf16.msra.mxu1 %v858_v2  ;;  %s981_s19 = scalar_lea.vmem %s1011_s3, %s748_s12 }
  0x11   : > { %v864_v4 = vld [vmem:[%s949_s26] sm:$0xff]   ;;  %790 = vmatprep.subr.bf16.mxu0 %v859_v3  ;;  %819 = vmatprep.subr.bf16.mxu1 %v859_v3  ;;  %v866_v10 = vld [vmem:[%s949_s26 + $0x8] sm:$0xff]   ;;  %v868_v12 = vld [vmem:[%s949_s26 + $0x10] sm:$0xff]  }
  0x12   : > { %v865_v5 = vld [vmem:[%s949_s26 + $0x20] sm:$0xff]   ;;  %800 = vmatprep.mubr.bf16.mxu0 %v864_v4  ;;  %v867_v11 = vld [vmem:[%s949_s26 + $0x28] sm:$0xff]   ;;  %v869_v13 = vld [vmem:[%s949_s26 + $0x30] sm:$0xff]  }
  0x13   : > { %808 = vmatprep.mubr.bf16.mxu1 %v865_v5  ;;  %v870_v14 = vld [vmem:[%s949_s26 + $0x18] sm:$0xff]  }
  0x14   : > { %791 = vmatpush3.bf16.msra.mxu0 %v859_v3  ;;  %827 = vmatpush3.bf16.msra.mxu1 %v859_v3  ;;  %v871_v15 = vld [vmem:[%s949_s26 + $0x38] sm:$0xff]  }
  0x15   : > { %792 = vmatprep.subr.bf16.mxu0 %v860_v6  ;;  %820 = vmatprep.subr.bf16.mxu1 %v860_v6 }
  0x18   : > { %793 = vmatpush3.bf16.msra.mxu0 %v860_v6  ;;  %828 = vmatpush3.bf16.msra.mxu1 %v860_v6 }
  0x19   : > { %794 = vmatprep.subr.bf16.mxu0 %v861_v7  ;;  %821 = vmatprep.subr.bf16.mxu1 %v861_v7 }
  0x1c   : > { %795 = vmatpush3.bf16.msra.mxu0 %v861_v7  ;;  %829 = vmatpush3.bf16.msra.mxu1 %v861_v7 }
  0x1d   : > { %796 = vmatprep.subr.bf16.mxu0 %v862_v8  ;;  %822 = vmatprep.subr.bf16.mxu1 %v862_v8 }
  0x20   : > { %797 = vmatpush3.bf16.msra.mxu0 %v862_v8  ;;  %830 = vmatpush3.bf16.msra.mxu1 %v862_v8 }
  0x21   : > { %798 = vmatprep.subr.bf16.mxu0 %v863_v9  ;;  %823 = vmatprep.subr.bf16.mxu1 %v863_v9 }
  0x24   : > { %799 = vmatpush3.bf16.msra.mxu0 %v863_v9  ;;  %831 = vmatpush3.bf16.msra.mxu1 %v863_v9 }
  0x27   : > { %801 = vmatmul.mubr.bf16.vlgmr.msra.gmra.mrb[0].mxu0 %v866_v10  ;;  %809 = vmatmul.mubr.bf16.vlgmr.msra.gmra.mrb[0].mxu1 %v867_v11 }
  0x28   : > { %804 = vmatprep.mubr.bf16.mxu0 %v868_v12  ;;  %812 = vmatprep.mubr.bf16.mxu1 %v869_v13 }
  0x2f   : > { %805 = vmatmul.mubr.bf16.gmra.mrb[4].mxu0 %v870_v14  ;;  %813 = vmatmul.mubr.bf16.gmra.mrb[4].mxu1 %v871_v15 }
  0xfa   : > { %v802_v17 = vpop.f32.mrb[0].mxu0  ;;  %v810_v18 = vpop.f32.mrb[0].mxu1 }
  0xfb   : > { %v581_v19 = vadd.f32 %v802_v17, %v765_v16  ;;  %v589_v20 = vadd.f32 %v810_v18, %v765_v16  ;;  %v458_v21 = vpop.f32.mrb[1].mxu0  ;;  %v490_v22 = vpop.f32.mrb[1].mxu1 }
  0xfc   : > { %v579_v23 = vadd.f32 %v765_v16, %v458_v21  ;;  %v587_v24 = vadd.f32 %v765_v16, %v490_v22  ;;  %v803_v25 = vpop.f32.mrb[2].mxu0  ;;  %v811_v26 = vpop.f32.mrb[2].mxu1 }
  0xfd   : > { %v597_v27 = vmax.f32 %v581_v19, 0.0  ;;  %v605_v28 = vmax.f32 %v589_v20, 0.0  ;;  %v582_v29 = vadd.f32 %v803_v25, %v765_v16  ;;  %v590_v30 = vadd.f32 %v811_v26, %v765_v16  ;;  %v461_v31 = vpop.f32.mrb[3].mxu0  ;;  %v493_v32 = vpop.f32.mrb[3].mxu1 }
  0xfe   : > { %v595_v33 = vmax.f32 %v579_v23, 0.0  ;;  %v603_v34 = vmax.f32 %v587_v24, 0.0  ;;  %v580_v35 = vadd.f32 %v765_v16, %v461_v31  ;;  %v588_v36 = vadd.f32 %v765_v16, %v493_v32 }
  0xff   : > { %613 = vst [vmem:[%s981_s19 + $0x10] sm:$0xff] %v597_v27  ;;  %621 = vst [vmem:[%s981_s19 + $0x50] sm:$0xff] %v605_v28  ;;  %v598_v37 = vmax.f32 %v582_v29, 0.0  ;;  %v606_v38 = vmax.f32 %v590_v30, 0.0 }
 0x100   : > { %611 = vst [vmem:[%s981_s19] sm:$0xff] %v595_v33  ;;  %619 = vst [vmem:[%s981_s19 + $0x40] sm:$0xff] %v603_v34  ;;  %v596_v39 = vmax.f32 %v580_v35, 0.0  ;;  %v604_v40 = vmax.f32 %v588_v36, 0.0 }
 0x101   : > { %614 = vst [vmem:[%s981_s19 + $0x18] sm:$0xff] %v598_v37  ;;  %622 = vst [vmem:[%s981_s19 + $0x58] sm:$0xff] %v606_v38 }
 0x102   : > { %612 = vst [vmem:[%s981_s19 + $0x8] sm:$0xff] %v596_v39  ;;  %620 = vst [vmem:[%s981_s19 + $0x48] sm:$0xff] %v604_v40  ;;  %v806_v41 = vpop.f32.mrb[4].mxu0  ;;  %v814_v42 = vpop.f32.mrb[4].mxu1 }
 0x103   : > { %v585_v43 = vadd.f32 %v806_v41, %v765_v16  ;;  %v593_v44 = vadd.f32 %v814_v42, %v765_v16  ;;  %v474_v45 = vpop.f32.mrb[5].mxu0  ;;  %v506_v46 = vpop.f32.mrb[5].mxu1 }
 0x104   : > { %v583_v47 = vadd.f32 %v765_v16, %v474_v45  ;;  %v591_v48 = vadd.f32 %v765_v16, %v506_v46  ;;  %v807_v49 = vpop.f32.mrb[6].mxu0  ;;  %v815_v50 = vpop.f32.mrb[6].mxu1 }
 0x105   : > { %v601_v51 = vmax.f32 %v585_v43, 0.0  ;;  %v609_v52 = vmax.f32 %v593_v44, 0.0  ;;  %v586_v53 = vadd.f32 %v807_v49, %v765_v16  ;;  %v594_v54 = vadd.f32 %v815_v50, %v765_v16  ;;  %v477_v55 = vpop.f32.mrb[7].mxu0  ;;  %v509_v56 = vpop.f32.mrb[7].mxu1 }
 0x106   : > { %v599_v57 = vmax.f32 %v583_v47, 0.0  ;;  %v607_v58 = vmax.f32 %v591_v48, 0.0  ;;  %v584_v59 = vadd.f32 %v765_v16, %v477_v55  ;;  %v592_v60 = vadd.f32 %v765_v16, %v509_v56 }
 0x107   : > { %617 = vst [vmem:[%s981_s19 + $0x30] sm:$0xff] %v601_v51  ;;  %625 = vst [vmem:[%s981_s19 + $0x70] sm:$0xff] %v609_v52  ;;  %v602_v61 = vmax.f32 %v586_v53, 0.0  ;;  %v610_v62 = vmax.f32 %v594_v54, 0.0 }
 0x108   : > { %615 = vst [vmem:[%s981_s19 + $0x20] sm:$0xff] %v599_v57  ;;  %623 = vst [vmem:[%s981_s19 + $0x60] sm:$0xff] %v607_v58  ;;  %v600_v63 = vmax.f32 %v584_v59, 0.0  ;;  %v608_v0 = vmax.f32 %v592_v60, 0.0 }
 0x109   : > { %618 = vst [vmem:[%s981_s19 + $0x38] sm:$0xff] %v602_v61  ;;  %626 = vst [vmem:[%s981_s19 + $0x78] sm:$0xff] %v610_v62 }
 0x10a   : > { %616 = vst [vmem:[%s981_s19 + $0x28] sm:$0xff] %v600_v63  ;;  %624 = vst [vmem:[%s981_s19 + $0x68] sm:$0xff] %v608_v0 }
 0x10b PF: > { %s13_s14 = sadd.s32 1, %s894_s14   ;;  %s1012_s12 = smov %s890_s13 }
 0x10c   : > { %p10_p5 = scmp.ge.s32.totalorder %s13_s14, 6   ;;  %s1013_s13 = smov %s1015_s15 }
 0x10e   :  { %12 = sbr.rel (!%p10_p5) target bundleno = 2 (0x2), region = 76 }

// kernel: _forward.8
= control target key start
LH: loop header
LB: loop body
LE: loop exit
PB: predicated region body
PF: predicated region fallthrough
CT: control target
= control target key end

     0   :  { %s1557_s12 = smov 0   ;;  %s1559_s13 = smov 0   ;;  %s1792_s0 = inlined_call_operand.vmem [shape: bf16[512,1152], index: 0, kind: input, shape index: {}]   ;;  %s1793_s1 = inlined_call_operand.vmem [shape: bf16[1152,128], index: 1, kind: input, shape index: {}]   ;;  %s1794_s2 = inlined_call_operand.vmem [shape: f32[1,128], index: 2, kind: input, shape index: {}]   ;;  %s1795_s3 = inlined_call_operand.vmem [shape: f32[512,128], index: 3, kind: output, shape index: {}]  }
   0x1   :  { %s1561_s14 = smov 0   ;;  %s1563_s15 = smov 0  }
   0x2   :  { %s1565_s16 = smov 0   ;;  %s1567_s17 = smov 0  }
   0x3   :  { %s1569_s18 = smov 0  }
   0x4 LB: > { %s25_s19 = sadd.s32 1, %s1526_s16  ;;  %s32_s20 = sadd.s32 1, %s1530_s17  ;;  %s1534_s18 = sphi %s1569_s18, %s13_s18   ;;  %s1530_s17 = sphi %s1567_s17, %s1801_s17   ;;  %s1526_s16 = sphi %s1565_s16, %s1800_s16   ;;  %s1522_s15 = sphi %s1563_s15, %s1799_s15   ;;  %s1518_s14 = sphi %s1561_s14, %s1798_s14   ;;  %s1514_s13 = sphi %s1559_s13, %s1797_s13   ;;  %s1510_s12 = sphi %s1557_s12, %s1796_s12  }
   0x5   : > { %p26_p0 = scmp.ge.s32.totalorder %s25_s19, 3  ;;  %p48_p1 = scmp.ne.s32.totalorder %s1514_s13, %s1510_s12 }
   0x6   : > { %p49_p2 = scmp.eq.s32.totalorder %s1534_s18, 0  ;;  %s41_s24 = sadd.s32 1, %s1514_s13 }
   0x7   : > { %s1803_s19 = smov (%p26_p0, %s25_s19), 0  ;;  %s1805_s20 = smov (!%p26_p0, %s32_s20), %s1530_s17 }
   0x8   : > { %p50_p3 = por %p49_p2, %p48_p1  ;;  %p34_p4 = scmp.ge.s32.totalorder %s1805_s20, 4 }
   0x9   : > { %s37_s21 = ssub.s32 %s1526_s16, %s1803_s19  ;;  %p1159_p6 = scmp.ge.s32.totalorder %s1534_s18, 12 }
   0xa   : > { %s1807_s20 = smov (%p34_p4, %s1805_s20), 0 }
   0xb   : > { %s36_s22 = ssub.s32 %s1530_s17, %s1807_s20  ;;  %162 = sbr.rel (%p1159_p6) target bundleno = 45 (0x2d), region = 20 }
   0xc   : > { %s38_s23 = sor.u32 %s37_s21, %s36_s22 }
   0xd   : > { %p39_p5 = scmp.eq.s32.totalorder %s38_s23, 0 }
   0xf   : > { %s1608_s25 = scalar_select %p39_p5, %s1514_s13, %s41_s24  }
  0x12   : > { %165 = sbr.rel (!%p50_p3) target bundleno = 45 (0x2d), region = 24  ;;  %s167_s26 = sand.u32 (%p50_p3), 1, %s1514_s13  }
  0x13   : > { %s171_s27 = smul.u32 (%p50_p3), 3, %s1526_s16 }
  0x14   : > { %s1364_s28 = smul.u32 (%p50_p3), 192, %s167_s26 }
  0x15   : > { %s1365_s29 = smul.u32 (%p50_p3), 144, %s1530_s17 }
  0x16   : > { %s1622_s8 = scalar_lea.vmem (%p50_p3), [#allocation3], %s1364_s28 }
  0x17   : > { %s173_s30 = sadd.s32 (%p50_p3), %s1365_s29, %s171_s27 }
  0x18   : > { %s1162_s4 = sshll.u32 (%p50_p3), %s173_s30, 2 }
  0x19   : > { %s1617_s7 = scalar_lea.vmem %s1792_s0, %s1162_s4 }
  0x1a   : > { %v190_v0 = vld [vmem:[%s1617_s7] sm:$0xff]  ;;  %v194_v2 = vld [vmem:[%s1617_s7 + $0x48] sm:$0xff]  ;;  %v198_v4 = vld [vmem:[%s1617_s7 + $0x90] sm:$0xff] }
  0x1b   : > { %v192_v1 = vld [vmem:[%s1617_s7 + $0x24] sm:$0xff]  ;;  %191 = vst [vmem:[%s1622_s8] sm:$0xff] %v190_v0  ;;  %195 = vst [vmem:[%s1622_s8 + $0x18] sm:$0xff] %v194_v2  ;;  %v196_v3 = vld [vmem:[%s1617_s7 + $0x6c] sm:$0xff] }
  0x1c   : > { %193 = vst [vmem:[%s1622_s8 + $0xc] sm:$0xff] %v192_v1  ;;  %v200_v5 = vld [vmem:[%s1617_s7 + $0xb4] sm:$0xff]  ;;  %197 = vst [vmem:[%s1622_s8 + $0x24] sm:$0xff] %v196_v3  ;;  %v204_v7 = vld [vmem:[%s1617_s7 + $0xfc] sm:$0xff] }
  0x1d   : > { %199 = vst [vmem:[%s1622_s8 + $0x30] sm:$0xff] %v198_v4  ;;  %201 = vst [vmem:[%s1622_s8 + $0x3c] sm:$0xff] %v200_v5  ;;  %v202_v6 = vld [vmem:[%s1617_s7 + $0xd8] sm:$0xff]  ;;  %v206_v8 = vld [vmem:[%s1617_s7 + $0x120] sm:$0xff] }
  0x1e   : > { %203 = vst [vmem:[%s1622_s8 + $0x48] sm:$0xff] %v202_v6  ;;  %205 = vst [vmem:[%s1622_s8 + $0x54] sm:$0xff] %v204_v7  ;;  %v208_v9 = vld [vmem:[%s1617_s7 + $0x144] sm:$0xff]  ;;  %v212_v11 = vld [vmem:[%s1617_s7 + $0x18c] sm:$0xff] }
  0x1f   : > { %207 = vst [vmem:[%s1622_s8 + $0x60] sm:$0xff] %v206_v8  ;;  %v210_v10 = vld [vmem:[%s1617_s7 + $0x168] sm:$0xff]  ;;  %209 = vst [vmem:[%s1622_s8 + $0x6c] sm:$0xff] %v208_v9  ;;  %v214_v12 = vld [vmem:[%s1617_s7 + $0x1b0] sm:$0xff] }
  0x20   : > { %211 = vst [vmem:[%s1622_s8 + $0x78] sm:$0xff] %v210_v10  ;;  %213 = vst [vmem:[%s1622_s8 + $0x84] sm:$0xff] %v212_v11  ;;  %v216_v13 = vld [vmem:[%s1617_s7 + $0x1d4] sm:$0xff]  ;;  %v220_v15 = vld [vmem:[%s1617_s7 + $0x21c] sm:$0xff] }
  0x21   : > { %v218_v14 = vld [vmem:[%s1617_s7 + $0x1f8] sm:$0xff]  ;;  %215 = vst [vmem:[%s1622_s8 + $0x90] sm:$0xff] %v214_v12  ;;  %217 = vst [vmem:[%s1622_s8 + $0x9c] sm:$0xff] %v216_v13  ;;  %v1163_v16 = vld [vmem:[%s1617_s7 + $0x8] sm:$0xf] }
  0x22   : > { %219 = vst [vmem:[%s1622_s8 + $0xa8] sm:$0xff] %v218_v14  ;;  %v1165_v17 = vld [vmem:[%s1617_s7 + $0x2c] sm:$0xf]  ;;  %221 = vst [vmem:[%s1622_s8 + $0xb4] sm:$0xff] %v220_v15  ;;  %v1167_v18 = vld [vmem:[%s1617_s7 + $0x50] sm:$0xf] }
  0x23   : > { %1164 = vst [vmem:[%s1622_s8 + $0x8] sm:$0xf] %v1163_v16  ;;  %1166 = vst [vmem:[%s1622_s8 + $0x14] sm:$0xf] %v1165_v17  ;;  %v1169_v19 = vld [vmem:[%s1617_s7 + $0x74] sm:$0xf] }
  0x24   : > { %v1171_v20 = vld [vmem:[%s1617_s7 + $0x98] sm:$0xf]  ;;  %1168 = vst [vmem:[%s1622_s8 + $0x20] sm:$0xf] %v1167_v18  ;;  %1170 = vst [vmem:[%s1622_s8 + $0x2c] sm:$0xf] %v1169_v19 }
  0x25   : > { %1172 = vst [vmem:[%s1622_s8 + $0x38] sm:$0xf] %v1171_v20  ;;  %v1173_v21 = vld [vmem:[%s1617_s7 + $0xbc] sm:$0xf]  ;;  %v1175_v22 = vld [vmem:[%s1617_s7 + $0xe0] sm:$0xf] }
  0x26   : > { %v1177_v23 = vld [vmem:[%s1617_s7 + $0x104] sm:$0xf]  ;;  %1174 = vst [vmem:[%s1622_s8 + $0x44] sm:$0xf] %v1173_v21  ;;  %1176 = vst [vmem:[%s1622_s8 + $0x50] sm:$0xf] %v1175_v22 }
  0x27   : > { %1178 = vst [vmem:[%s1622_s8 + $0x5c] sm:$0xf] %v1177_v23  ;;  %v1179_v24 = vld [vmem:[%s1617_s7 + $0x128] sm:$0xf]  ;;  %v1181_v25 = vld [vmem:[%s1617_s7 + $0x14c] sm:$0xf] }
  0x28   : > { %v1183_v26 = vld [vmem:[%s1617_s7 + $0x170] sm:$0xf]  ;;  %1180 = vst [vmem:[%s1622_s8 + $0x68] sm:$0xf] %v1179_v24  ;;  %1182 = vst [vmem:[%s1622_s8 + $0x74] sm:$0xf] %v1181_v25 }
  0x29   : > { %1184 = vst [vmem:[%s1622_s8 + $0x80] sm:$0xf] %v1183_v26  ;;  %v1185_v27 = vld [vmem:[%s1617_s7 + $0x194] sm:$0xf]  ;;  %v1187_v28 = vld [vmem:[%s1617_s7 + $0x1b8] sm:$0xf] }
  0x2a   : > { %v1189_v29 = vld [vmem:[%s1617_s7 + $0x1dc] sm:$0xf]  ;;  %1186 = vst [vmem:[%s1622_s8 + $0x8c] sm:$0xf] %v1185_v27  ;;  %1188 = vst [vmem:[%s1622_s8 + $0x98] sm:$0xf] %v1187_v28 }
  0x2b   : > { %1190 = vst [vmem:[%s1622_s8 + $0xa4] sm:$0xf] %v1189_v29  ;;  %v1191_v30 = vld [vmem:[%s1617_s7 + $0x200] sm:$0xf]  ;;  %v1193_v31 = vld [vmem:[%s1617_s7 + $0x224] sm:$0xf] }
  0x2c   : > { %1192 = vst [vmem:[%s1622_s8 + $0xb0] sm:$0xf] %v1191_v30  ;;  %1194 = vst [vmem:[%s1622_s8 + $0xbc] sm:$0xf] %v1193_v31 }
  0x2d PF: > { %p1195_p7 = scmp.ge.s32.totalorder %s1534_s18, 1  ;;  %p277_p8 = scmp.lt.s32.totalorder %s1534_s18, 13 }
  0x2f   : > { %p278_p9 = pnand %p1195_p7, %p277_p8 }
  0x30   : > { %s284_s9 = sand.u32 (!%p278_p9), 1, %s1510_s12   ;;  %s323_s10 = smul.u32 (!%p278_p9), 48, %s1518_s14 }
  0x31   : > { %281 = sbr.rel (%p278_p9) target bundleno = 389 (0x185), region = 54  ;;  %s1197_s21 = sshll.u32 (!%p278_p9), %s1522_s15, 4 }
  0x32   : > { %s1366_s11 = smul.u32 (!%p278_p9), 192, %s284_s9  ;;  %p324_p10 = scmp.lt.s32.totalorder (!%p278_p9), %s323_s10, 143 }
  0x33   : > { %p336_p11 = scmp.lt.s32.totalorder (!%p278_p9), %s1197_s21, 63  ;;  %p1199_p12 = scmp.ne.s32.totalorder (!%p278_p9), %s1518_s14, 0 }
  0x34   : > { %s1700_s12 = scalar_lea.vmem (!%p278_p9), [#allocation3], %s1366_s11 }
  0x38   : > { %s1809_s10 = smov (!%p324_p10, %s323_s10), 143  ;;  %s1811_s21 = smov (!%p336_p11, %s1197_s21), 63 }
  0x39   : > { %s1196_s22 = sshll.u32 %s1809_s10, 2  ;;  %s1198_s27 = sshll.u32 %s1811_s21, 3  ;;  %v1536_v32 = vmov (!%p1199_p12), 0.0  }
  0x3a   : > { %s1693_s26 = scalar_lea.vmem %s1793_s1, %s1196_s22  ;;  %s1698_s30 = scalar_lea.vmem %s1795_s3, %s1198_s27  ;;  %349 = vst [vmem:[#allocation2] sm:$0xff] (!%p1199_p12), %v1536_v32  ;;  %350 = vst [vmem:[#allocation2 + $0x8] sm:$0xff] (!%p1199_p12), %v1536_v32 }
  0x3b   : > { %348 = sbr.rel (%p1199_p12) target bundleno = 66 (0x42), region = 62  ;;  %351 = vst [vmem:[#allocation2 + $0x10] sm:$0xff] (!%p1199_p12), %v1536_v32  ;;  %352 = vst [vmem:[#allocation2 + $0x18] sm:$0xff] (!%p1199_p12), %v1536_v32 }
  0x3c   : > { %353 = vst [vmem:[#allocation2 + $0x20] sm:$0xff] (!%p1199_p12), %v1536_v32  ;;  %354 = vst [vmem:[#allocation2 + $0x28] sm:$0xff] (!%p1199_p12), %v1536_v32 }
  0x3d   : > { %355 = vst [vmem:[#allocation2 + $0x30] sm:$0xff] (!%p1199_p12), %v1536_v32  ;;  %356 = vst [vmem:[#allocation2 + $0x38] sm:$0xff] (!%p1199_p12), %v1536_v32 }
  0x3e   : > { %357 = vst [vmem:[#allocation2 + $0x40] sm:$0xff] (!%p1199_p12), %v1536_v32  ;;  %358 = vst [vmem:[#allocation2 + $0x48] sm:$0xff] (!%p1199_p12), %v1536_v32 }
  0x3f   : > { %359 = vst [vmem:[#allocation2 + $0x50] sm:$0xff] (!%p1199_p12), %v1536_v32  ;;  %360 = vst [vmem:[#allocation2 + $0x58] sm:$0xff] (!%p1199_p12), %v1536_v32 }
  0x40   : > { %361 = vst [vmem:[#allocation2 + $0x60] sm:$0xff] (!%p1199_p12), %v1536_v32  ;;  %362 = vst [vmem:[#allocation2 + $0x68] sm:$0xff] (!%p1199_p12), %v1536_v32 }
  0x41   : > { %363 = vst [vmem:[#allocation2 + $0x70] sm:$0xff] (!%p1199_p12), %v1536_v32  ;;  %364 = vst [vmem:[#allocation2 + $0x78] sm:$0xff] (!%p1199_p12), %v1536_v32 }
  0x42 PF: > { %v1424_v33 = vld [vmem:[%s1693_s26 + $0x40] sm:$0xff]   ;;  %v1427_v36 = vld [vmem:[%s1693_s26 + $0x48] sm:$0xff]   ;;  %v1430_v39 = vld [vmem:[%s1693_s26 + $0x50] sm:$0xff]   ;;  %p1248_p13 = scmp.ne.s32.totalorder %s1518_s14, 2 }
  0x43   : > { %v1425_v34 = vld [vmem:[%s1693_s26] sm:$0xff]   ;;  %1252 = vmatprep.subr.bf16.mxu0 %v1424_v33  ;;  %v1428_v37 = vld [vmem:[%s1693_s26 + $0x8] sm:$0xff]   ;;  %v1431_v40 = vld [vmem:[%s1693_s26 + $0x10] sm:$0xff]  }
  0x44   : > { %v1426_v35 = vld [vmem:[%s1693_s26 + $0x80] sm:$0xff]   ;;  %1253 = vmatpush3.bf16.msra.mxu0 %v1425_v34  ;;  %v1429_v38 = vld [vmem:[%s1693_s26 + $0x88] sm:$0xff]   ;;  %v1432_v41 = vld [vmem:[%s1693_s26 + $0x90] sm:$0xff]  }
  0x45   : > { %1332 = vmatprep.subr.bf16.mxu1 %v1426_v35  ;;  %1254 = vmatprep.subr.bf16.mxu0 %v1427_v36  ;;  %v1433_v42 = vld [vmem:[%s1693_s26 + $0x58] sm:$0xff]   ;;  %v1436_v45 = vld [vmem:[%s1693_s26 + $0x60] sm:$0xff]   ;;  %v1439_v48 = vld [vmem:[%s1693_s26 + $0x68] sm:$0xff]  }
  0x46   : > { %1333 = vmatpush3.bf16.msra.mxu1 %v1426_v35  ;;  %v1434_v43 = vld [vmem:[%s1693_s26 + $0x18] sm:$0xff]   ;;  %v1438_v46 = vld [vmem:[%s1693_s26 + $0xa0] sm:$0xff]   ;;  %v1441_v49 = vld [vmem:[%s1693_s26 + $0xa8] sm:$0xff]  }
  0x47   : > { %1334 = vmatprep.subr.bf16.mxu1 %v1429_v38  ;;  %v1435_v44 = vld [vmem:[%s1693_s26 + $0x98] sm:$0xff]   ;;  %v1437_v47 = vld [vmem:[%s1693_s26 + $0x20] sm:$0xff]   ;;  %v1440_v50 = vld [vmem:[%s1693_s26 + $0x28] sm:$0xff]  }
  0x48   : > { %1255 = vmatpush3.bf16.msra.mxu0 %v1428_v37  ;;  %v1442_v51 = vld [vmem:[%s1693_s26 + $0x70] sm:$0xff]   ;;  %v1445_v54 = vld [vmem:[%s1693_s26 + $0x78] sm:$0xff]   ;;  %v1448_v59 = vld [vmem:[%s1700_s12] ss:$12 sps:$4 sm:$0xff]  }
  0x49   : > { %1256 = vmatprep.subr.bf16.mxu0 %v1430_v39  ;;  %v1443_v52 = vld [vmem:[%s1693_s26 + $0x30] sm:$0xff]   ;;  %v1447_v55 = vld [vmem:[%s1693_s26 + $0xb8] sm:$0xff]   ;;  %v1452_v61 = vld [vmem:[%s1700_s12 + $0x20] ss:$12 sps:$4 sm:$0xff]  }
  0x4a   : > { %1335 = vmatpush3.bf16.msra.mxu1 %v1429_v38  ;;  %v1444_v53 = vld [vmem:[%s1693_s26 + $0xb0] sm:$0xff]   ;;  %v1446_v58 = vld [vmem:[%s1693_s26 + $0x38] sm:$0xff]   ;;  %v1468_v5 = vld [vmem:[%s1700_s12 + $0x80] ss:$12 sps:$4 sm:$0xff]  }
  0x4b   : > { %1336 = vmatprep.subr.bf16.mxu1 %v1432_v41  ;;  %v1450_v56 = vld [vmem:[%s1700_s12 + $0x4] ss:$12 sps:$4 sm:$0xff]   ;;  %v1451_v57 = vld [vmem:[%s1700_s12 + $0x8] ss:$12 sps:$4 sm:$0xff]   ;;  %v1461_v4 = vld [vmem:[%s1700_s12 + $0x4c] ss:$12 sps:$4 sm:$0xff]  }
  0x4c   : > { %1257 = vmatpush3.bf16.msra.mxu0 %v1431_v40  ;;  %765 = vmatprep.mubr.bf16.mxu0 %v1450_v56  ;;  %v1453_v60 = vld [vmem:[%s1700_s12 + $0x1c] ss:$12 sps:$4 sm:$0xff]   ;;  %v1459_v62 = vld [vmem:[%s1700_s12 + $0x38] ss:$12 sps:$4 sm:$0xff]   ;;  %v1456_v0 = vld [vmem:[%s1700_s12 + $0x34] ss:$12 sps:$4 sm:$0xff]  }
  0x4d   : > { %1258 = vmatprep.subr.bf16.mxu0 %v1433_v42  ;;  %1348 = vmatprep.mubr.bf16.mxu1 %v1451_v57  ;;  %v1455_v63 = vld [vmem:[%s1700_s12 + $0x18] ss:$12 sps:$4 sm:$0xff]   ;;  %v1460_v1 = vld [vmem:[%s1700_s12 + $0x50] ss:$12 sps:$4 sm:$0xff]   ;;  %v1467_v2 = vld [vmem:[%s1700_s12 + $0x68] ss:$12 sps:$4 sm:$0xff]  }
  0x4e   : > { %1337 = vmatpush3.bf16.msra.mxu1 %v1432_v41  ;;  %v1458_v3 = vld [vmem:[%s1700_s12 + $0x30] ss:$12 sps:$4 sm:$0xff]   ;;  %v1475_v6 = vld [vmem:[%s1700_s12 + $0x98] ss:$12 sps:$4 sm:$0xff]   ;;  %v1463_v7 = vld [vmem:[%s1700_s12 + $0x48] ss:$12 sps:$4 sm:$0xff]  }
  0x4f   : > { %1338 = vmatprep.subr.bf16.mxu1 %v1435_v44  ;;  %v1464_v8 = vld [vmem:[%s1700_s12 + $0x64] ss:$12 sps:$4 sm:$0xff]   ;;  %v1466_v10 = vld [vmem:[%s1700_s12 + $0x60] ss:$12 sps:$4 sm:$0xff]   ;;  %v1469_v11 = vld [vmem:[%s1700_s12 + $0x7c] ss:$12 sps:$4 sm:$0xff]  }
  0x50   : > { %1259 = vmatpush3.bf16.msra.mxu0 %v1434_v43  ;;  %v1476_v9 = vld [vmem:[%s1700_s12 + $0xb0] ss:$12 sps:$4 sm:$0xff]   ;;  %v1471_v12 = vld [vmem:[%s1700_s12 + $0x78] ss:$12 sps:$4 sm:$0xff]   ;;  %v1472_v13 = vld [vmem:[%s1700_s12 + $0x94] ss:$12 sps:$4 sm:$0xff]  }
  0x51   : > { %1260 = vmatprep.subr.bf16.mxu0 %v1436_v45  ;;  %v1474_v14 = vld [vmem:[%s1700_s12 + $0x90] ss:$12 sps:$4 sm:$0xff]   ;;  %v1477_v15 = vld [vmem:[%s1700_s12 + $0xac] ss:$12 sps:$4 sm:$0xff]   ;;  %v1479_v16 = vld [vmem:[%s1700_s12 + $0xa8] ss:$12 sps:$4 sm:$0xff]  }
  0x52   : > { %1339 = vmatpush3.bf16.msra.mxu1 %v1435_v44  ;;  %v365_v23 = vld [vmem:[#allocation2] sm:$0xff]  ;;  %v366_v28 = vld [vmem:[#allocation2 + $0x8] sm:$0xff]  ;;  %v367_v38 = vld [vmem:[#allocation2 + $0x10] sm:$0xff] }
  0x53   : > { %1340 = vmatprep.subr.bf16.mxu1 %v1438_v46  ;;  %v368_v44 = vld [vmem:[#allocation2 + $0x18] sm:$0xff] }
  0x54   : > { %1261 = vmatpush3.bf16.msra.mxu0 %v1437_v47 }
  0x55   : > { %1262 = vmatprep.subr.bf16.mxu0 %v1439_v48 }
  0x56   : > { %1341 = vmatpush3.bf16.msra.mxu1 %v1438_v46 }
  0x57   : > { %1342 = vmatprep.subr.bf16.mxu1 %v1441_v49 }
  0x58   : > { %1263 = vmatpush3.bf16.msra.mxu0 %v1440_v50 }
  0x59   : > { %1264 = vmatprep.subr.bf16.mxu0 %v1442_v51 }
  0x5a   : > { %1343 = vmatpush3.bf16.msra.mxu1 %v1441_v49 }
  0x5b   : > { %1344 = vmatprep.subr.bf16.mxu1 %v1444_v53 }
  0x5c   : > { %1265 = vmatpush3.bf16.msra.mxu0 %v1443_v52 }
  0x5d   : > { %1266 = vmatprep.subr.bf16.mxu0 %v1445_v54 }
  0x5e   : > { %1345 = vmatpush3.bf16.msra.mxu1 %v1444_v53 }
  0x5f   : > { %1346 = vmatprep.subr.bf16.mxu1 %v1447_v55 }
  0x60   : > { %1267 = vmatpush3.bf16.msra.mxu0 %v1446_v58 }
  0x62   : > { %1347 = vmatpush3.bf16.msra.mxu1 %v1447_v55  ;;  %v369_v55 = vld [vmem:[#allocation2 + $0x20] sm:$0xff] }
  0x63   : > { %766 = vmatmul.mubr.bf16.vlgmr.msra.gmra.mrb[0].mxu0 %v1448_v59 }
  0x64   : > { %773 = vmatprep.mubr.bf16.mxu0 %v1453_v60  ;;  %v370_v60 = vld [vmem:[#allocation2 + $0x28] sm:$0xff] }
  0x65   : > { %1349 = vmatmul.mubr.bf16.vlgmr.msra.gmra.mrb[0].mxu1 %v1452_v61 }
  0x66   : > { %1352 = vmatprep.mubr.bf16.mxu1 %v1459_v62 }
  0x6b   : > { %774 = vmatmul.mubr.bf16.gmra.mrb[4].mxu0 %v1455_v63 }
  0x6c   : > { %781 = vmatprep.mubr.bf16.mxu0 %v1456_v0 }
  0x6d   : > { %1353 = vmatmul.mubr.bf16.gmra.mrb[4].mxu1 %v1460_v1 }
  0x6e   : > { %1356 = vmatprep.mubr.bf16.mxu1 %v1467_v2 }
  0x73   : > { %782 = vmatmul.mubr.bf16.gmra.mrb[8].mxu0 %v1458_v3 }
  0x74   : > { %789 = vmatprep.mubr.bf16.mxu0 %v1461_v4 }
  0x75   : > { %1357 = vmatmul.mubr.bf16.gmra.mrb[8].mxu1 %v1468_v5 }
  0x76   : > { %1360 = vmatprep.mubr.bf16.mxu1 %v1475_v6  ;;  %v371_v6 = vld [vmem:[#allocation2 + $0x30] sm:$0xff] }
  0x7b   : > { %790 = vmatmul.mubr.bf16.gmra.mrb[12].mxu0 %v1463_v7 }
  0x7c   : > { %797 = vmatprep.mubr.bf16.mxu0 %v1464_v8 }
  0x7d   : > { %1361 = vmatmul.mubr.bf16.gmra.mrb[12].mxu1 %v1476_v9 }
  0x83   : > { %798 = vmatmul.mubr.bf16.gmra.mrb[16].mxu0 %v1466_v10 }
  0x84   : > { %805 = vmatprep.mubr.bf16.mxu0 %v1469_v11 }
  0x8b   : > { %806 = vmatmul.mubr.bf16.gmra.mrb[20].mxu0 %v1471_v12  ;;  %v372_v12 = vld [vmem:[#allocation2 + $0x38] sm:$0xff] }
  0x8c   : > { %813 = vmatprep.mubr.bf16.mxu0 %v1472_v13 }
  0x93   : > { %814 = vmatmul.mubr.bf16.gmra.mrb[24].mxu0 %v1474_v14 }
  0x94   : > { %821 = vmatprep.mubr.bf16.mxu0 %v1477_v15 }
  0x9b   : > { %822 = vmatmul.mubr.bf16.gmra.mrb[28].mxu0 %v1479_v16 }
 0x136   : > { %v1268_v17 = vpop.f32.mrb[0].mxu0 }
 0x137   : > { %v1269_v18 = vpop.f32.mrb[1].mxu0 }
 0x138   : > { %v1270_v19 = vadd.f32 %v1269_v18, %v1268_v17  ;;  %v1271_v20 = vpop.f32.mrb[2].mxu0  ;;  %v1350_v21 = vpop.f32.mrb[0].mxu1 }
 0x139   : > { %v1272_v22 = vpop.f32.mrb[3].mxu0  ;;  %v864_v24 = vpop.f32.mrb[1].mxu1 }
 0x13a   : > { %v1273_v25 = vadd.f32 %v1272_v22, %v1271_v20  ;;  %v865_v26 = vadd.f32 %v1270_v19, %v864_v24  ;;  %v1351_v27 = vpop.f32.mrb[2].mxu1  ;;  %v373_v22 = vld [vmem:[#allocation2 + $0x40] sm:$0xff] }
 0x13b   : > { %v867_v29 = vpop.f32.mrb[3].mxu1 }
 0x13c   : > { %v927_v30 = vadd.f32 %v865_v26, %v365_v23  ;;  %v868_v31 = vadd.f32 %v1273_v25, %v867_v29  ;;  %v374_v25 = vld [vmem:[#allocation2 + $0x48] sm:$0xff] }
 0x13e   : > { %943 = vst [vmem:[#allocation2] sm:$0xff] %v927_v30  ;;  %v928_v32 = vadd.f32 %v868_v31, %v366_v28  ;;  %v1274_v33 = vpop.f32.mrb[4].mxu0 }
 0x13f   : > { %v1275_v34 = vpop.f32.mrb[5].mxu0 }
 0x140   : > { %944 = vst [vmem:[#allocation2 + $0x8] sm:$0xff] %v928_v32  ;;  %v1276_v35 = vadd.f32 %v1275_v34, %v1274_v33  ;;  %v1277_v36 = vpop.f32.mrb[6].mxu0  ;;  %v1354_v37 = vpop.f32.mrb[4].mxu1  ;;  %v375_v33 = vld [vmem:[#allocation2 + $0x50] sm:$0xff] }
 0x141   : > { %v1278_v39 = vpop.f32.mrb[7].mxu0  ;;  %v880_v40 = vpop.f32.mrb[5].mxu1 }
 0x142   : > { %v873_v41 = vadd.f32 %v1350_v21, %v1276_v35  ;;  %v1279_v42 = vadd.f32 %v1278_v39, %v1277_v36  ;;  %v1355_v43 = vpop.f32.mrb[6].mxu1 }
 0x143   : > { %v883_v45 = vpop.f32.mrb[7].mxu1 }
 0x144   : > { %v929_v46 = vadd.f32 %v873_v41, %v367_v38  ;;  %v876_v47 = vadd.f32 %v1351_v27, %v1279_v42 }
 0x146   : > { %945 = vst [vmem:[#allocation2 + $0x10] sm:$0xff] %v929_v46  ;;  %v930_v48 = vadd.f32 %v876_v47, %v368_v44  ;;  %v1280_v49 = vpop.f32.mrb[8].mxu0  ;;  %v377_v46 = vld [vmem:[#allocation2 + $0x60] sm:$0xff] }
 0x147   : > { %v1281_v50 = vpop.f32.mrb[9].mxu0 }
 0x148   : > { %946 = vst [vmem:[#allocation2 + $0x18] sm:$0xff] %v930_v48  ;;  %v1282_v51 = vadd.f32 %v1281_v50, %v1280_v49  ;;  %v1283_v52 = vpop.f32.mrb[10].mxu0  ;;  %v1358_v53 = vpop.f32.mrb[8].mxu1  ;;  %v378_v49 = vld [vmem:[#allocation2 + $0x68] sm:$0xff] }
 0x149   : > { %v1284_v54 = vpop.f32.mrb[11].mxu0  ;;  %v896_v56 = vpop.f32.mrb[9].mxu1 }
 0x14a   : > { %v1285_v57 = vadd.f32 %v1284_v54, %v1283_v52  ;;  %v881_v58 = vadd.f32 %v1282_v51, %v880_v40  ;;  %v1359_v59 = vpop.f32.mrb[10].mxu1 }
 0x14b   : > { %v899_v61 = vpop.f32.mrb[11].mxu1 }
 0x14c   : > { %v931_v62 = vadd.f32 %v881_v58, %v369_v55  ;;  %v884_v63 = vadd.f32 %v1285_v57, %v883_v45  ;;  %v379_v57 = vld [vmem:[#allocation2 + $0x70] sm:$0xff] }
 0x14e   : > { %947 = vst [vmem:[#allocation2 + $0x20] sm:$0xff] %v931_v62  ;;  %v932_v0 = vadd.f32 %v884_v63, %v370_v60  ;;  %v1286_v1 = vpop.f32.mrb[12].mxu0 }
 0x14f   : > { %v1287_v2 = vpop.f32.mrb[13].mxu0 }
 0x150   : > { %948 = vst [vmem:[#allocation2 + $0x28] sm:$0xff] %v932_v0  ;;  %v1288_v3 = vadd.f32 %v1287_v2, %v1286_v1  ;;  %v1289_v4 = vpop.f32.mrb[14].mxu0  ;;  %v1362_v5 = vpop.f32.mrb[12].mxu1  ;;  %v963_v1 = vld [vmem:[#allocation2] sm:$0xff] (!%p1248_p13) }
 0x151   : > { %v1290_v7 = vpop.f32.mrb[15].mxu0  ;;  %v912_v8 = vpop.f32.mrb[13].mxu1  ;;  %v1249_v2 = vld [vmem:[%s1794_s2] ss:$0 sm:$0xff] (!%p1248_p13) }
 0x152   : > { %v889_v9 = vadd.f32 %v1354_v37, %v1288_v3  ;;  %v1291_v10 = vadd.f32 %v1290_v7, %v1289_v4  ;;  %v1363_v11 = vpop.f32.mrb[14].mxu1  ;;  %v376_v37 = vld [vmem:[#allocation2 + $0x58] sm:$0xff]  ;;  %v964_v3 = vld [vmem:[#allocation2 + $0x8] sm:$0xff] (!%p1248_p13)  ;;  %v986_v4 = vadd.f32 (!%p1248_p13), %v1249_v2, %v963_v1  ;;  %v965_v7 = vld [vmem:[#allocation2 + $0x10] sm:$0xff] (!%p1248_p13) }
 0x153   : > { %v915_v13 = vpop.f32.mrb[15].mxu1 }
 0x154   : > { %v933_v14 = vadd.f32 %v889_v9, %v371_v6  ;;  %v892_v15 = vadd.f32 %v1355_v43, %v1291_v10  ;;  %v987_v6 = vadd.f32 (!%p1248_p13), %v1249_v2, %v964_v3  ;;  %v988_v9 = vadd.f32 (!%p1248_p13), %v1249_v2, %v965_v7 }
 0x156   : > { %949 = vst [vmem:[#allocation2 + $0x30] sm:$0xff] %v933_v14  ;;  %v934_v16 = vadd.f32 %v892_v15, %v372_v12  ;;  %v1292_v17 = vpop.f32.mrb[16].mxu0  ;;  %v1002_v15 = vmax.f32 (!%p1248_p13), %v986_v4, 0.0 }
 0x157   : > { %v1293_v18 = vpop.f32.mrb[17].mxu0  ;;  %v968_v12 = vld [vmem:[#allocation2 + $0x28] sm:$0xff] (!%p1248_p13) }
 0x158   : > { %950 = vst [vmem:[#allocation2 + $0x38] sm:$0xff] %v934_v16  ;;  %v1294_v19 = vadd.f32 %v1293_v18, %v1292_v17  ;;  %v1295_v20 = vpop.f32.mrb[18].mxu0  ;;  %v1003_v16 = vmax.f32 (!%p1248_p13), %v987_v6, 0.0  ;;  %v991_v17 = vadd.f32 (!%p1248_p13), %v1249_v2, %v968_v12  ;;  %1018 = vst [vmem:[%s1698_s30] sm:$0xff] (!%p1248_p13), %v1002_v15 }
 0x159   : > { %v1296_v21 = vpop.f32.mrb[19].mxu0 }
 0x15a   : > { %v1297_v23 = vadd.f32 %v1296_v21, %v1295_v20  ;;  %v897_v24 = vadd.f32 %v1294_v19, %v896_v56  ;;  %1019 = vst [vmem:[%s1698_s30 + $0x8] sm:$0xff] (!%p1248_p13), %v1003_v16 }
 0x15c   : > { %v935_v26 = vadd.f32 %v897_v24, %v373_v22  ;;  %v900_v27 = vadd.f32 %v1297_v23, %v899_v61  ;;  %v380_v61 = vld [vmem:[#allocation2 + $0x78] sm:$0xff]  ;;  %v1004_v22 = vmax.f32 (!%p1248_p13), %v988_v9, 0.0 }
 0x15e   : > { %951 = vst [vmem:[#allocation2 + $0x40] sm:$0xff] %v935_v26  ;;  %v936_v28 = vadd.f32 %v900_v27, %v374_v25  ;;  %v1298_v29 = vpop.f32.mrb[20].mxu0  ;;  %1020 = vst [vmem:[%s1698_s30 + $0x10] sm:$0xff] (!%p1248_p13), %v1004_v22 }
 0x15f   : > { %v1299_v30 = vpop.f32.mrb[21].mxu0  ;;  %v970_v14 = vld [vmem:[#allocation2 + $0x38] sm:$0xff] (!%p1248_p13) }
 0x160   : > { %952 = vst [vmem:[#allocation2 + $0x48] sm:$0xff] %v936_v28  ;;  %v1300_v31 = vadd.f32 %v1299_v30, %v1298_v29  ;;  %v1301_v32 = vpop.f32.mrb[22].mxu0  ;;  %v993_v25 = vadd.f32 (!%p1248_p13), %v1249_v2, %v970_v14  ;;  %v1007_v29 = vmax.f32 (!%p1248_p13), %v991_v17, 0.0 }
 0x161   : > { %v1302_v34 = vpop.f32.mrb[23].mxu0 }
 0x162   : > { %v905_v35 = vadd.f32 %v1358_v53, %v1300_v31  ;;  %v1303_v36 = vadd.f32 %v1302_v34, %v1301_v32  ;;  %1023 = vst [vmem:[%s1698_s30 + $0x28] sm:$0xff] (!%p1248_p13), %v1007_v29 }
 0x164   : > { %v937_v38 = vadd.f32 %v905_v35, %v375_v33  ;;  %v908_v39 = vadd.f32 %v1359_v59, %v1303_v36  ;;  %v1009_v35 = vmax.f32 (!%p1248_p13), %v993_v25, 0.0 }
 0x165   : > { %v971_v19 = vld [vmem:[#allocation2 + $0x40] sm:$0xff] (!%p1248_p13) }
 0x166   : > { %953 = vst [vmem:[#allocation2 + $0x50] sm:$0xff] %v937_v38  ;;  %v938_v40 = vadd.f32 %v908_v39, %v376_v37  ;;  %v1304_v41 = vpop.f32.mrb[24].mxu0  ;;  %v994_v31 = vadd.f32 (!%p1248_p13), %v1249_v2, %v971_v19  ;;  %1025 = vst [vmem:[%s1698_s30 + $0x38] sm:$0xff] (!%p1248_p13), %v1009_v35 }
 0x167   : > { %v1305_v42 = vpop.f32.mrb[25].mxu0  ;;  %v972_v20 = vld [vmem:[#allocation2 + $0x48] sm:$0xff] (!%p1248_p13) }
 0x168   : > { %954 = vst [vmem:[#allocation2 + $0x58] sm:$0xff] %v938_v40  ;;  %v1306_v43 = vadd.f32 %v1305_v42, %v1304_v41  ;;  %v1307_v44 = vpop.f32.mrb[26].mxu0  ;;  %v995_v32 = vadd.f32 (!%p1248_p13), %v1249_v2, %v972_v20  ;;  %v1010_v39 = vmax.f32 (!%p1248_p13), %v994_v31, 0.0 }
 0x169   : > { %v1308_v45 = vpop.f32.mrb[27].mxu0 }
 0x16a   : > { %v1309_v47 = vadd.f32 %v1308_v45, %v1307_v44  ;;  %v913_v48 = vadd.f32 %v1306_v43, %v912_v8  ;;  %v967_v8 = vld [vmem:[#allocation2 + $0x20] sm:$0xff] (!%p1248_p13)  ;;  %v1011_v40 = vmax.f32 (!%p1248_p13), %v995_v32, 0.0  ;;  %1026 = vst [vmem:[%s1698_s30 + $0x40] sm:$0xff] (!%p1248_p13), %v1010_v39 }
 0x16c   : > { %v939_v50 = vadd.f32 %v913_v48, %v377_v46  ;;  %v916_v51 = vadd.f32 %v1309_v47, %v915_v13  ;;  %v969_v13 = vld [vmem:[#allocation2 + $0x30] sm:$0xff] (!%p1248_p13)  ;;  %1027 = vst [vmem:[%s1698_s30 + $0x48] sm:$0xff] (!%p1248_p13), %v1011_v40 }
 0x16d   : > { %v992_v18 = vadd.f32 (!%p1248_p13), %v1249_v2, %v969_v13  ;;  %v973_v21 = vld [vmem:[#allocation2 + $0x50] sm:$0xff] (!%p1248_p13) }
 0x16e   : > { %955 = vst [vmem:[#allocation2 + $0x60] sm:$0xff] %v939_v50  ;;  %v940_v52 = vadd.f32 %v916_v51, %v378_v49  ;;  %v1310_v53 = vpop.f32.mrb[28].mxu0  ;;  %v996_v36 = vadd.f32 (!%p1248_p13), %v1249_v2, %v973_v21 }
 0x16f   : > { %v1311_v54 = vpop.f32.mrb[29].mxu0  ;;  %v974_v26 = vld [vmem:[#allocation2 + $0x58] sm:$0xff] (!%p1248_p13)  ;;  %v1008_v30 = vmax.f32 (!%p1248_p13), %v992_v18, 0.0 }
 0x170   : > { %956 = vst [vmem:[#allocation2 + $0x68] sm:$0xff] %v940_v52  ;;  %v1312_v55 = vadd.f32 %v1311_v54, %v1310_v53  ;;  %v1313_v56 = vpop.f32.mrb[30].mxu0  ;;  %v997_v37 = vadd.f32 (!%p1248_p13), %v1249_v2, %v974_v26  ;;  %v1012_v43 = vmax.f32 (!%p1248_p13), %v996_v36, 0.0 }
 0x171   : > { %v1314_v58 = vpop.f32.mrb[31].mxu0  ;;  %1024 = vst [vmem:[%s1698_s30 + $0x30] sm:$0xff] (!%p1248_p13), %v1008_v30 }
 0x172   : > { %v921_v59 = vadd.f32 %v1362_v5, %v1312_v55  ;;  %v1315_v60 = vadd.f32 %v1314_v58, %v1313_v56  ;;  %962 = sbr.rel (%p1248_p13) target bundleno = 389 (0x185), region = 66  ;;  %v966_v5 = vld [vmem:[#allocation2 + $0x18] sm:$0xff] (!%p1248_p13)  ;;  %v1013_v44 = vmax.f32 (!%p1248_p13), %v997_v37, 0.0  ;;  %1028 = vst [vmem:[%s1698_s30 + $0x50] sm:$0xff] (!%p1248_p13), %v1012_v43 }
 0x173   : > { %v989_v10 = vadd.f32 (!%p1248_p13), %v1249_v2, %v966_v5 }
 0x174   : > { %v941_v62 = vadd.f32 %v921_v59, %v379_v57  ;;  %v924_v63 = vadd.f32 %v1363_v11, %v1315_v60  ;;  %v990_v11 = vadd.f32 (!%p1248_p13), %v1249_v2, %v967_v8  ;;  %1029 = vst [vmem:[%s1698_s30 + $0x58] sm:$0xff] (!%p1248_p13), %v1013_v44 }
 0x175   : > { %v1005_v23 = vmax.f32 (!%p1248_p13), %v989_v10, 0.0  ;;  %v975_v27 = vld [vmem:[#allocation2 + $0x60] sm:$0xff] (!%p1248_p13) }
 0x176   : > { %957 = vst [vmem:[#allocation2 + $0x70] sm:$0xff] %v941_v62  ;;  %v942_v0 = vadd.f32 %v924_v63, %v380_v61  ;;  %v1006_v24 = vmax.f32 (!%p1248_p13), %v990_v11, 0.0  ;;  %v998_v38 = vadd.f32 (!%p1248_p13), %v1249_v2, %v975_v27 }
 0x177   : > { %v976_v28 = vld [vmem:[#allocation2 + $0x68] sm:$0xff] (!%p1248_p13)  ;;  %1021 = vst [vmem:[%s1698_s30 + $0x18] sm:$0xff] (!%p1248_p13), %v1005_v23 }
 0x178   : > { %958 = vst [vmem:[#allocation2 + $0x78] sm:$0xff] %v942_v0  ;;  %1022 = vst [vmem:[%s1698_s30 + $0x20] sm:$0xff] (!%p1248_p13), %v1006_v24  ;;  %v999_v41 = vadd.f32 (!%p1248_p13), %v1249_v2, %v976_v28  ;;  %v1014_v45 = vmax.f32 (!%p1248_p13), %v998_v38, 0.0 }
 0x17a   : > { %v1015_v47 = vmax.f32 %v999_v41, 0.0  ;;  %1030 = vst [vmem:[%s1698_s30 + $0x60] sm:$0xff] %v1014_v45 }
 0x17c   : > { %1031 = vst [vmem:[%s1698_s30 + $0x68] sm:$0xff] %v1015_v47 }
 0x17d   : > { %v977_v33 = vld [vmem:[#allocation2 + $0x70] sm:$0xff] }
 0x17e   : > { %v1000_v42 = vadd.f32 %v1249_v2, %v977_v33 }
 0x17f   : > { %v978_v34 = vld [vmem:[#allocation2 + $0x78] sm:$0xff] }
 0x180   : > { %v1001_v46 = vadd.f32 %v1249_v2, %v978_v34  ;;  %v1016_v48 = vmax.f32 %v1000_v42, 0.0 }
 0x182   : > { %v1017_v49 = vmax.f32 %v1001_v46, 0.0  ;;  %1032 = vst [vmem:[%s1698_s30 + $0x70] sm:$0xff] %v1016_v48 }
 0x184   : > { %1033 = vst [vmem:[%s1698_s30 + $0x78] sm:$0xff] %v1017_v49 }
 0x185 PF: > { %s13_s18 = sadd.s32 1, %s1534_s18   ;;  %s1796_s12 = smov %s1514_s13 }
 0x186   : > { %p10_p0 = scmp.ge.s32.totalorder %s13_s18, 14   ;;  %s1797_s13 = smov %s1608_s25 }
 0x187   : > { %s1798_s14 = smov %s1526_s16  ;;  %s1799_s15 = smov %s1530_s17 }
 0x188   : > { %s1800_s16 = smov %s1803_s19  ;;  %s1801_s17 = smov %s1807_s20 }
 0x189   :  { %12 = sbr.rel (!%p10_p0) target bundleno = 4 (0x4), region = 113 }

// kernel: _forward.5
= control target key start
LH: loop header
LB: loop body
LE: loop exit
PB: predicated region body
PF: predicated region fallthrough
CT: control target
= control target key end

     0   :  { %s1106_s12 = smov 0   ;;  %s1108_s13 = smov 0   ;;  %s1282_s0 = inlined_call_operand.vmem [shape: bf16[512,128], index: 0, kind: input, shape index: {}]   ;;  %s1283_s1 = inlined_call_operand.vmem [shape: bf16[128,256], index: 1, kind: input, shape index: {}]   ;;  %s1284_s2 = inlined_call_operand.vmem [shape: f32[1,256], index: 2, kind: input, shape index: {}]   ;;  %s1285_s3 = inlined_call_operand.vmem [shape: f32[512,256], index: 3, kind: output, shape index: {}]  }
   0x1   :  { %s1110_s14 = smov 0  }
   0x2 LB: > { %s32_s15 = sadd.s32 1, %s1079_s13  ;;  %p955_p0 = scmp.ge.s32.totalorder %s1083_s14, 1  ;;  %s1083_s14 = sphi %s1110_s14, %s13_s14   ;;  %s1079_s13 = sphi %s1108_s13, %s1287_s13   ;;  %s1075_s12 = sphi %s1106_s12, %s1286_s12  }
   0x3   : > { %p34_p1 = scmp.ge.s32.totalorder %s32_s15, 4  ;;  %p193_p2 = scmp.lt.s32.totalorder %s1083_s14, 5 }
   0x5   : > { %s1289_s15 = smov (%p34_p1, %s32_s15), 0  ;;  %p194_p3 = pnand %p955_p0, %p193_p2 }
   0x6   : > { %v1029_v0 = vld [vmem:[%s1283_s1 + $0x4] ss:$8 sps:$4 sm:$0xff] (!%p194_p3)   ;;  %s956_s18 = sshll.u32 (!%p194_p3), %s1075_s12, 4  ;;  %v1031_v1 = vld [vmem:[%s1283_s1] ss:$8 sps:$4 sm:$0xff] (!%p194_p3)   ;;  %v1085_v2 = vmov (!%p194_p3), 0   ;;  %v720_v25 = vlaneseq (!%p194_p3) }
   0x7   : > { %197 = sbr.rel (%p194_p3) target bundleno = 284 (0x11c), region = 32  ;;  %538 = vmatprep.mubr.bf16.mxu0 (!%p194_p3), %v1085_v2  ;;  %578 = vmatprep.mubr.bf16.mxu1 (!%p194_p3), %v1085_v2  ;;  %p240_p4 = scmp.lt.s32.totalorder (!%p194_p3), %s956_s18, 63  ;;  %v1032_v3 = vld [vmem:[%s1283_s1 + $0x14] ss:$8 sps:$4 sm:$0xff] (!%p194_p3)   ;;  %v1034_v4 = vld [vmem:[%s1283_s1 + $0x10] ss:$8 sps:$4 sm:$0xff] (!%p194_p3)  }
   0x8   : > { %506 = vmatprep.subr.bf16.mxu0 (!%p194_p3), %v1029_v0  ;;  %988 = vmatprep.subr.bf16.mxu1 (!%p194_p3), %v1029_v0  ;;  %v1035_v5 = vld [vmem:[%s1283_s1 + $0x24] ss:$8 sps:$4 sm:$0xff] (!%p194_p3)   ;;  %v1037_v6 = vld [vmem:[%s1283_s1 + $0x20] ss:$8 sps:$4 sm:$0xff] (!%p194_p3)   ;;  %v1038_v7 = vld [vmem:[%s1283_s1 + $0x34] ss:$8 sps:$4 sm:$0xff] (!%p194_p3)  }
   0x9   : > { %507 = vmatpush1.bf16.msra.mxu0 (!%p194_p3), %v1031_v1  ;;  %996 = vmatpush1.bf16.msra.mxu1 (!%p194_p3), %v1031_v1  ;;  %v1040_v8 = vld [vmem:[%s1283_s1 + $0x30] ss:$8 sps:$4 sm:$0xff] (!%p194_p3)   ;;  %v1041_v9 = vld [vmem:[%s1283_s1 + $0x44] ss:$8 sps:$4 sm:$0xff] (!%p194_p3)   ;;  %v1043_v10 = vld [vmem:[%s1283_s1 + $0x40] ss:$8 sps:$4 sm:$0xff] (!%p194_p3)  }
   0xa   : > { %508 = vmatprep.subr.bf16.mxu0 (!%p194_p3), %v1032_v3  ;;  %989 = vmatprep.subr.bf16.mxu1 (!%p194_p3), %v1032_v3  ;;  %v1044_v11 = vld [vmem:[%s1283_s1 + $0x54] ss:$8 sps:$4 sm:$0xff] (!%p194_p3)   ;;  %v1046_v12 = vld [vmem:[%s1283_s1 + $0x50] ss:$8 sps:$4 sm:$0xff] (!%p194_p3)   ;;  %v1047_v13 = vld [vmem:[%s1283_s1 + $0x64] ss:$8 sps:$4 sm:$0xff] (!%p194_p3)  }
   0xb   : > { %v1049_v14 = vld [vmem:[%s1283_s1 + $0x60] ss:$8 sps:$4 sm:$0xff] (!%p194_p3)   ;;  %v1050_v15 = vld [vmem:[%s1283_s1 + $0x74] ss:$8 sps:$4 sm:$0xff] (!%p194_p3)   ;;  %v1052_v16 = vld [vmem:[%s1283_s1 + $0x70] ss:$8 sps:$4 sm:$0xff] (!%p194_p3)  }
   0xc   : > { %v721_v26 = vshrl.u32 (!%p194_p3), %v720_v25, 7  ;;  %v718_v28 = vld [vmem:[%s1284_s2] sm:$0x3] (!%p194_p3) }
   0xd   : > { %509 = vmatpush1.bf16.msra.mxu0 (!%p194_p3), %v1034_v4  ;;  %997 = vmatpush1.bf16.msra.mxu1 (!%p194_p3), %v1034_v4 }
   0xe   : > { %s1291_s18 = smov (!%p240_p4, %s956_s18), 63  ;;  %510 = vmatprep.subr.bf16.mxu0 %v1035_v5  ;;  %990 = vmatprep.subr.bf16.mxu1 %v1035_v5  ;;  %v722_v27 = vsub.s32 0, %v721_v26  ;;  %v726_v29 = vsub.s32 1, %v721_v26 }
   0xf   : > { %s957_s27 = sshll.u32 %s1291_s18, 2  ;;  %s987_s5 = sshll.u32 %s1291_s18, 4 }
  0x10   : > { %s1153_s7 = scalar_lea.vmem %s1282_s0, %s957_s27  ;;  %v1199_v30 = vrot.slane %v718_v28, %v722_v27  ;;  %v1201_v31 = vrot.slane %v718_v28, %v726_v29  ;;  %s1209_s8 = scalar_lea.vmem %s1285_s3, %s987_s5 }
  0x11   : > { %511 = vmatpush1.bf16.msra.mxu0 %v1037_v6  ;;  %998 = vmatpush1.bf16.msra.mxu1 %v1037_v6  ;;  %v1053_v17 = vld [vmem:[%s1153_s7] sm:$0xff]   ;;  %v1055_v19 = vld [vmem:[%s1153_s7 + $0x8] sm:$0xff]   ;;  %v1057_v21 = vld [vmem:[%s1153_s7 + $0x10] sm:$0xff]  }
  0x12   : > { %512 = vmatprep.subr.bf16.mxu0 %v1038_v7  ;;  %991 = vmatprep.subr.bf16.mxu1 %v1038_v7  ;;  %v1054_v18 = vld [vmem:[%s1153_s7 + $0x20] sm:$0xff]   ;;  %v1056_v20 = vld [vmem:[%s1153_s7 + $0x28] sm:$0xff]   ;;  %v1058_v22 = vld [vmem:[%s1153_s7 + $0x30] sm:$0xff]  }
  0x13   : > { %v1059_v23 = vld [vmem:[%s1153_s7 + $0x18] sm:$0xff]  }
  0x14   : > { %v1060_v24 = vld [vmem:[%s1153_s7 + $0x38] sm:$0xff]  }
  0x15   : > { %513 = vmatpush1.bf16.msra.mxu0 %v1040_v8  ;;  %999 = vmatpush1.bf16.msra.mxu1 %v1040_v8 }
  0x16   : > { %514 = vmatprep.subr.bf16.mxu0 %v1041_v9  ;;  %992 = vmatprep.subr.bf16.mxu1 %v1041_v9 }
  0x19   : > { %515 = vmatpush1.bf16.msra.mxu0 %v1043_v10  ;;  %1000 = vmatpush1.bf16.msra.mxu1 %v1043_v10 }
  0x1a   : > { %516 = vmatprep.subr.bf16.mxu0 %v1044_v11  ;;  %993 = vmatprep.subr.bf16.mxu1 %v1044_v11 }
  0x1d   : > { %517 = vmatpush1.bf16.msra.mxu0 %v1046_v12  ;;  %1001 = vmatpush1.bf16.msra.mxu1 %v1046_v12 }
  0x1e   : > { %518 = vmatprep.subr.bf16.mxu0 %v1047_v13  ;;  %994 = vmatprep.subr.bf16.mxu1 %v1047_v13 }
  0x21   : > { %519 = vmatpush1.bf16.msra.mxu0 %v1049_v14  ;;  %1002 = vmatpush1.bf16.msra.mxu1 %v1049_v14 }
  0x22   : > { %520 = vmatprep.subr.bf16.mxu0 %v1050_v15  ;;  %995 = vmatprep.subr.bf16.mxu1 %v1050_v15 }
  0x25   : > { %521 = vmatpush1.bf16.msra.mxu0 %v1052_v16  ;;  %1003 = vmatpush1.bf16.msra.mxu1 %v1052_v16 }
  0x28   : > { %539 = vmatmul.mubr.bf16.vlgmr.msra.gmra.mrb[0].mxu0 %v1053_v17  ;;  %579 = vmatmul.mubr.bf16.vlgmr.msra.gmra.mrb[0].mxu1 %v1054_v18 }
  0x29   : > { %548 = vmatprep.mubr.bf16.mxu0 %v1085_v2  ;;  %588 = vmatprep.mubr.bf16.mxu1 %v1085_v2 }
  0x30   : > { %549 = vmatmul.mubr.bf16.gmra.mrb[4].mxu0 %v1055_v19  ;;  %589 = vmatmul.mubr.bf16.gmra.mrb[4].mxu1 %v1056_v20 }
  0x31   : > { %558 = vmatprep.mubr.bf16.mxu0 %v1085_v2  ;;  %598 = vmatprep.mubr.bf16.mxu1 %v1085_v2 }
  0x38   : > { %559 = vmatmul.mubr.bf16.gmra.mrb[8].mxu0 %v1057_v21  ;;  %599 = vmatmul.mubr.bf16.gmra.mrb[8].mxu1 %v1058_v22 }
  0x39   : > { %568 = vmatprep.mubr.bf16.mxu0 %v1085_v2  ;;  %608 = vmatprep.mubr.bf16.mxu1 %v1085_v2 }
  0x40   : > { %569 = vmatmul.mubr.bf16.gmra.mrb[12].mxu0 %v1059_v23  ;;  %609 = vmatmul.mubr.bf16.gmra.mrb[12].mxu1 %v1060_v24 }
  0xfb   : > { %v540_v32 = vpop.f32.mrb[0].mxu0  ;;  %v580_v33 = vpop.f32.mrb[0].mxu1 }
  0xfc   : > { %v730_v34 = vadd.f32 %v1199_v30, %v540_v32  ;;  %v746_v35 = vadd.f32 %v1199_v30, %v580_v33  ;;  %v542_v36 = vpop.f32.mrb[1].mxu0  ;;  %v582_v37 = vpop.f32.mrb[1].mxu1 }
  0xfd   : > { %v731_v38 = vadd.f32 %v1201_v31, %v542_v36  ;;  %v747_v39 = vadd.f32 %v1201_v31, %v582_v37  ;;  %v544_v40 = vpop.f32.mrb[2].mxu0  ;;  %v584_v41 = vpop.f32.mrb[2].mxu1 }
  0xfe   : > { %v762_v42 = vmax.f32 %v730_v34, 0.0  ;;  %v778_v43 = vmax.f32 %v746_v35, 0.0  ;;  %v732_v44 = vadd.f32 %v1199_v30, %v544_v40  ;;  %v748_v45 = vadd.f32 %v1199_v30, %v584_v41  ;;  %v546_v46 = vpop.f32.mrb[3].mxu0  ;;  %v586_v47 = vpop.f32.mrb[3].mxu1 }
  0xff   : > { %v763_v48 = vmax.f32 %v731_v38, 0.0  ;;  %v779_v49 = vmax.f32 %v747_v39, 0.0  ;;  %v733_v50 = vadd.f32 %v1201_v31, %v546_v46  ;;  %v749_v51 = vadd.f32 %v1201_v31, %v586_v47 }
 0x100   : > { %794 = vst [vmem:[%s1209_s8] sm:$0xff] %v762_v42  ;;  %810 = vst [vmem:[%s1209_s8 + $0x80] sm:$0xff] %v778_v43  ;;  %v764_v52 = vmax.f32 %v732_v44, 0.0  ;;  %v780_v53 = vmax.f32 %v748_v45, 0.0 }
 0x101   : > { %795 = vst [vmem:[%s1209_s8 + $0x8] sm:$0xff] %v763_v48  ;;  %811 = vst [vmem:[%s1209_s8 + $0x88] sm:$0xff] %v779_v49  ;;  %v765_v54 = vmax.f32 %v733_v50, 0.0  ;;  %v781_v55 = vmax.f32 %v749_v51, 0.0 }
 0x102   : > { %796 = vst [vmem:[%s1209_s8 + $0x10] sm:$0xff] %v764_v52  ;;  %812 = vst [vmem:[%s1209_s8 + $0x90] sm:$0xff] %v780_v53 }
 0x103   : > { %797 = vst [vmem:[%s1209_s8 + $0x18] sm:$0xff] %v765_v54  ;;  %813 = vst [vmem:[%s1209_s8 + $0x98] sm:$0xff] %v781_v55  ;;  %v550_v56 = vpop.f32.mrb[4].mxu0  ;;  %v590_v57 = vpop.f32.mrb[4].mxu1 }
 0x104   : > { %v734_v58 = vadd.f32 %v1199_v30, %v550_v56  ;;  %v750_v59 = vadd.f32 %v1199_v30, %v590_v57  ;;  %v552_v60 = vpop.f32.mrb[5].mxu0  ;;  %v592_v61 = vpop.f32.mrb[5].mxu1 }
 0x105   : > { %v735_v62 = vadd.f32 %v1201_v31, %v552_v60  ;;  %v751_v63 = vadd.f32 %v1201_v31, %v592_v61  ;;  %v554_v0 = vpop.f32.mrb[6].mxu0  ;;  %v594_v1 = vpop.f32.mrb[6].mxu1 }
 0x106   : > { %v766_v2 = vmax.f32 %v734_v58, 0.0  ;;  %v782_v3 = vmax.f32 %v750_v59, 0.0  ;;  %v736_v4 = vadd.f32 %v1199_v30, %v554_v0  ;;  %v752_v5 = vadd.f32 %v1199_v30, %v594_v1  ;;  %v556_v6 = vpop.f32.mrb[7].mxu0  ;;  %v596_v7 = vpop.f32.mrb[7].mxu1 }
 0x107   : > { %v767_v8 = vmax.f32 %v735_v62, 0.0  ;;  %v783_v9 = vmax.f32 %v751_v63, 0.0  ;;  %v737_v10 = vadd.f32 %v1201_v31, %v556_v6  ;;  %v753_v11 = vadd.f32 %v1201_v31, %v596_v7 }
 0x108   : > { %798 = vst [vmem:[%s1209_s8 + $0x20] sm:$0xff] %v766_v2  ;;  %814 = vst [vmem:[%s1209_s8 + $0xa0] sm:$0xff] %v782_v3  ;;  %v768_v12 = vmax.f32 %v736_v4, 0.0  ;;  %v784_v13 = vmax.f32 %v752_v5, 0.0 }
 0x109   : > { %799 = vst [vmem:[%s1209_s8 + $0x28] sm:$0xff] %v767_v8  ;;  %815 = vst [vmem:[%s1209_s8 + $0xa8] sm:$0xff] %v783_v9  ;;  %v769_v14 = vmax.f32 %v737_v10, 0.0  ;;  %v785_v15 = vmax.f32 %v753_v11, 0.0 }
 0x10a   : > { %800 = vst [vmem:[%s1209_s8 + $0x30] sm:$0xff] %v768_v12  ;;  %816 = vst [vmem:[%s1209_s8 + $0xb0] sm:$0xff] %v784_v13 }
 0x10b   : > { %801 = vst [vmem:[%s1209_s8 + $0x38] sm:$0xff] %v769_v14  ;;  %817 = vst [vmem:[%s1209_s8 + $0xb8] sm:$0xff] %v785_v15  ;;  %v560_v16 = vpop.f32.mrb[8].mxu0  ;;  %v600_v17 = vpop.f32.mrb[8].mxu1 }
 0x10c   : > { %v738_v18 = vadd.f32 %v1199_v30, %v560_v16  ;;  %v754_v19 = vadd.f32 %v1199_v30, %v600_v17  ;;  %v562_v20 = vpop.f32.mrb[9].mxu0  ;;  %v602_v21 = vpop.f32.mrb[9].mxu1 }
 0x10d   : > { %v739_v22 = vadd.f32 %v1201_v31, %v562_v20  ;;  %v755_v23 = vadd.f32 %v1201_v31, %v602_v21  ;;  %v564_v24 = vpop.f32.mrb[10].mxu0  ;;  %v604_v25 = vpop.f32.mrb[10].mxu1 }
 0x10e   : > { %v770_v26 = vmax.f32 %v738_v18, 0.0  ;;  %v786_v27 = vmax.f32 %v754_v19, 0.0  ;;  %v740_v28 = vadd.f32 %v1199_v30, %v564_v24  ;;  %v756_v29 = vadd.f32 %v1199_v30, %v604_v25  ;;  %v566_v32 = vpop.f32.mrb[11].mxu0  ;;  %v606_v33 = vpop.f32.mrb[11].mxu1 }
 0x10f   : > { %v771_v34 = vmax.f32 %v739_v22, 0.0  ;;  %v787_v35 = vmax.f32 %v755_v23, 0.0  ;;  %v741_v36 = vadd.f32 %v1201_v31, %v566_v32  ;;  %v757_v37 = vadd.f32 %v1201_v31, %v606_v33 }
 0x110   : > { %802 = vst [vmem:[%s1209_s8 + $0x40] sm:$0xff] %v770_v26  ;;  %818 = vst [vmem:[%s1209_s8 + $0xc0] sm:$0xff] %v786_v27  ;;  %v772_v38 = vmax.f32 %v740_v28, 0.0  ;;  %v788_v39 = vmax.f32 %v756_v29, 0.0 }
 0x111   : > { %803 = vst [vmem:[%s1209_s8 + $0x48] sm:$0xff] %v771_v34  ;;  %819 = vst [vmem:[%s1209_s8 + $0xc8] sm:$0xff] %v787_v35  ;;  %v773_v40 = vmax.f32 %v741_v36, 0.0  ;;  %v789_v41 = vmax.f32 %v757_v37, 0.0 }
 0x112   : > { %804 = vst [vmem:[%s1209_s8 + $0x50] sm:$0xff] %v772_v38  ;;  %820 = vst [vmem:[%s1209_s8 + $0xd0] sm:$0xff] %v788_v39 }
 0x113   : > { %805 = vst [vmem:[%s1209_s8 + $0x58] sm:$0xff] %v773_v40  ;;  %821 = vst [vmem:[%s1209_s8 + $0xd8] sm:$0xff] %v789_v41  ;;  %v570_v42 = vpop.f32.mrb[12].mxu0  ;;  %v610_v43 = vpop.f32.mrb[12].mxu1 }
 0x114   : > { %v742_v44 = vadd.f32 %v1199_v30, %v570_v42  ;;  %v758_v45 = vadd.f32 %v1199_v30, %v610_v43  ;;  %v572_v46 = vpop.f32.mrb[13].mxu0  ;;  %v612_v47 = vpop.f32.mrb[13].mxu1 }
 0x115   : > { %v743_v48 = vadd.f32 %v1201_v31, %v572_v46  ;;  %v759_v49 = vadd.f32 %v1201_v31, %v612_v47  ;;  %v574_v50 = vpop.f32.mrb[14].mxu0  ;;  %v614_v51 = vpop.f32.mrb[14].mxu1 }
 0x116   : > { %v774_v52 = vmax.f32 %v742_v44, 0.0  ;;  %v790_v53 = vmax.f32 %v758_v45, 0.0  ;;  %v744_v54 = vadd.f32 %v1199_v30, %v574_v50  ;;  %v760_v55 = vadd.f32 %v1199_v30, %v614_v51  ;;  %v576_v56 = vpop.f32.mrb[15].mxu0  ;;  %v616_v57 = vpop.f32.mrb[15].mxu1 }
 0x117   : > { %v775_v58 = vmax.f32 %v743_v48, 0.0  ;;  %v791_v59 = vmax.f32 %v759_v49, 0.0  ;;  %v745_v60 = vadd.f32 %v1201_v31, %v576_v56  ;;  %v761_v61 = vadd.f32 %v1201_v31, %v616_v57 }
 0x118   : > { %806 = vst [vmem:[%s1209_s8 + $0x60] sm:$0xff] %v774_v52  ;;  %822 = vst [vmem:[%s1209_s8 + $0xe0] sm:$0xff] %v790_v53  ;;  %v776_v62 = vmax.f32 %v744_v54, 0.0  ;;  %v792_v63 = vmax.f32 %v760_v55, 0.0 }
 0x119   : > { %807 = vst [vmem:[%s1209_s8 + $0x68] sm:$0xff] %v775_v58  ;;  %823 = vst [vmem:[%s1209_s8 + $0xe8] sm:$0xff] %v791_v59  ;;  %v777_v0 = vmax.f32 %v745_v60, 0.0  ;;  %v793_v1 = vmax.f32 %v761_v61, 0.0 }
 0x11a   : > { %808 = vst [vmem:[%s1209_s8 + $0x70] sm:$0xff] %v776_v62  ;;  %824 = vst [vmem:[%s1209_s8 + $0xf0] sm:$0xff] %v792_v63 }
 0x11b   : > { %809 = vst [vmem:[%s1209_s8 + $0x78] sm:$0xff] %v777_v0  ;;  %825 = vst [vmem:[%s1209_s8 + $0xf8] sm:$0xff] %v793_v1 }
 0x11c PF: > { %s13_s14 = sadd.s32 1, %s1083_s14   ;;  %s1286_s12 = smov %s1079_s13 }
 0x11d   : > { %p10_p5 = scmp.ge.s32.totalorder %s13_s14, 6   ;;  %s1287_s13 = smov %s1289_s15 }
 0x11f   :  { %12 = sbr.rel (!%p10_p5) target bundleno = 2 (0x2), region = 76 }

// kernel: _forward.6
= control target key start
LH: loop header
LB: loop body
LE: loop exit
PB: predicated region body
PF: predicated region fallthrough
CT: control target
= control target key end

     0   :  { %s2606_s12 = smov 0   ;;  %s2608_s13 = smov 0   ;;  %s3108_s0 = inlined_call_operand.vmem [shape: bf16[512,2304], index: 0, kind: input, shape index: {}]   ;;  %s3109_s1 = inlined_call_operand.vmem [shape: bf16[2304,256], index: 1, kind: input, shape index: {}]   ;;  %s3110_s2 = inlined_call_operand.vmem [shape: f32[1,256], index: 2, kind: input, shape index: {}]   ;;  %s3111_s3 = inlined_call_operand.vmem [shape: f32[512,256], index: 3, kind: output, shape index: {}]  }
   0x1   :  { %s2610_s14 = smov 0   ;;  %s2612_s15 = smov 0  }
   0x2   :  { %s2614_s16 = smov 0   ;;  %s2616_s17 = smov 0  }
   0x3   :  { %s2618_s18 = smov 0  }
   0x4 LB: > { %s25_s19 = sadd.s32 1, %s2575_s16  ;;  %s32_s20 = sadd.s32 1, %s2579_s17  ;;  %s2583_s18 = sphi %s2618_s18, %s13_s18   ;;  %s2579_s17 = sphi %s2616_s17, %s3117_s17   ;;  %s2575_s16 = sphi %s2614_s16, %s3116_s16   ;;  %s2571_s15 = sphi %s2612_s15, %s3115_s15   ;;  %s2567_s14 = sphi %s2610_s14, %s3114_s14   ;;  %s2563_s13 = sphi %s2608_s13, %s3113_s13   ;;  %s2559_s12 = sphi %s2606_s12, %s3112_s12  }
   0x5   : > { %p26_p0 = scmp.ge.s32.totalorder %s25_s19, 3  ;;  %p48_p1 = scmp.ne.s32.totalorder %s2563_s13, %s2559_s12 }
   0x6   : > { %p49_p2 = scmp.eq.s32.totalorder %s2583_s18, 0  ;;  %s41_s24 = sadd.s32 1, %s2563_s13 }
   0x7   : > { %s3119_s19 = smov (%p26_p0, %s25_s19), 0  ;;  %s3121_s20 = smov (!%p26_p0, %s32_s20), %s2579_s17 }
   0x8   : > { %p50_p3 = por %p49_p2, %p48_p1  ;;  %p34_p4 = scmp.ge.s32.totalorder %s3121_s20, 4 }
   0x9   : > { %s37_s21 = ssub.s32 %s2575_s16, %s3119_s19  ;;  %p1997_p6 = scmp.ge.s32.totalorder %s2583_s18, 12 }
   0xa   : > { %s3123_s20 = smov (%p34_p4, %s3121_s20), 0 }
   0xb   : > { %s36_s22 = ssub.s32 %s2579_s17, %s3123_s20  ;;  %164 = sbr.rel (%p1997_p6) target bundleno = 51 (0x33), region = 20 }
   0xc   : > { %s38_s23 = sor.u32 %s37_s21, %s36_s22 }
   0xd   : > { %p39_p5 = scmp.eq.s32.totalorder %s38_s23, 0 }
   0xf   : > { %s2657_s25 = scalar_select %p39_p5, %s2563_s13, %s41_s24  }
  0x12   : > { %167 = sbr.rel (!%p50_p3) target bundleno = 51 (0x33), region = 24  ;;  %s169_s26 = sand.u32 (%p50_p3), 1, %s2563_s13  }
  0x13   : > { %s173_s27 = smul.u32 (%p50_p3), 6, %s2575_s16 }
  0x14   : > { %s2253_s28 = smul.u32 (%p50_p3), 384, %s169_s26 }
  0x15   : > { %s2254_s29 = smul.u32 (%p50_p3), 288, %s2579_s17 }
  0x16   : > { %s2671_s8 = scalar_lea.vmem (%p50_p3), [#allocation3], %s2253_s28 }
  0x17   : > { %s175_s30 = sadd.s32 (%p50_p3), %s2254_s29, %s173_s27 }
  0x18   : > { %s2000_s4 = sshll.u32 (%p50_p3), %s175_s30, 2 }
  0x19   : > { %s2666_s7 = scalar_lea.vmem %s3108_s0, %s2000_s4 }
  0x1a   : > { %v190_v0 = vld [vmem:[%s2666_s7] sm:$0xff]  ;;  %v192_v1 = vld [vmem:[%s2666_s7 + $0x8] sm:$0xff]  ;;  %v194_v2 = vld [vmem:[%s2666_s7 + $0x10] sm:$0xff] }
  0x1b   : > { %191 = vst [vmem:[%s2671_s8] sm:$0xff] %v190_v0  ;;  %193 = vst [vmem:[%s2671_s8 + $0x8] sm:$0xff] %v192_v1  ;;  %v196_v3 = vld [vmem:[%s2666_s7 + $0x48] sm:$0xff]  ;;  %v198_v4 = vld [vmem:[%s2666_s7 + $0x50] sm:$0xff] }
  0x1c   : > { %195 = vst [vmem:[%s2671_s8 + $0x10] sm:$0xff] %v194_v2  ;;  %v200_v5 = vld [vmem:[%s2666_s7 + $0x58] sm:$0xff]  ;;  %197 = vst [vmem:[%s2671_s8 + $0x18] sm:$0xff] %v196_v3  ;;  %v202_v6 = vld [vmem:[%s2666_s7 + $0x90] sm:$0xff] }
  0x1d   : > { %199 = vst [vmem:[%s2671_s8 + $0x20] sm:$0xff] %v198_v4  ;;  %201 = vst [vmem:[%s2671_s8 + $0x28] sm:$0xff] %v200_v5  ;;  %v204_v7 = vld [vmem:[%s2666_s7 + $0x98] sm:$0xff]  ;;  %v206_v8 = vld [vmem:[%s2666_s7 + $0xa0] sm:$0xff] }
  0x1e   : > { %203 = vst [vmem:[%s2671_s8 + $0x30] sm:$0xff] %v202_v6  ;;  %205 = vst [vmem:[%s2671_s8 + $0x38] sm:$0xff] %v204_v7  ;;  %v208_v9 = vld [vmem:[%s2666_s7 + $0xd8] sm:$0xff]  ;;  %v210_v10 = vld [vmem:[%s2666_s7 + $0xe0] sm:$0xff] }
  0x1f   : > { %207 = vst [vmem:[%s2671_s8 + $0x40] sm:$0xff] %v206_v8  ;;  %v212_v11 = vld [vmem:[%s2666_s7 + $0xe8] sm:$0xff]  ;;  %209 = vst [vmem:[%s2671_s8 + $0x48] sm:$0xff] %v208_v9  ;;  %v214_v12 = vld [vmem:[%s2666_s7 + $0x120] sm:$0xff] }
  0x20   : > { %211 = vst [vmem:[%s2671_s8 + $0x50] sm:$0xff] %v210_v10  ;;  %213 = vst [vmem:[%s2671_s8 + $0x58] sm:$0xff] %v212_v11  ;;  %v216_v13 = vld [vmem:[%s2666_s7 + $0x128] sm:$0xff]  ;;  %v218_v14 = vld [vmem:[%s2666_s7 + $0x130] sm:$0xff] }
  0x21   : > { %215 = vst [vmem:[%s2671_s8 + $0x60] sm:$0xff] %v214_v12  ;;  %217 = vst [vmem:[%s2671_s8 + $0x68] sm:$0xff] %v216_v13  ;;  %v220_v15 = vld [vmem:[%s2666_s7 + $0x168] sm:$0xff]  ;;  %v222_v16 = vld [vmem:[%s2666_s7 + $0x170] sm:$0xff] }
  0x22   : > { %219 = vst [vmem:[%s2671_s8 + $0x70] sm:$0xff] %v218_v14  ;;  %v224_v17 = vld [vmem:[%s2666_s7 + $0x178] sm:$0xff]  ;;  %221 = vst [vmem:[%s2671_s8 + $0x78] sm:$0xff] %v220_v15  ;;  %v226_v18 = vld [vmem:[%s2666_s7 + $0x1b0] sm:$0xff] }
  0x23   : > { %223 = vst [vmem:[%s2671_s8 + $0x80] sm:$0xff] %v222_v16  ;;  %225 = vst [vmem:[%s2671_s8 + $0x88] sm:$0xff] %v224_v17  ;;  %v228_v19 = vld [vmem:[%s2666_s7 + $0x1b8] sm:$0xff]  ;;  %v230_v20 = vld [vmem:[%s2666_s7 + $0x1c0] sm:$0xff] }
  0x24   : > { %227 = vst [vmem:[%s2671_s8 + $0x90] sm:$0xff] %v226_v18  ;;  %229 = vst [vmem:[%s2671_s8 + $0x98] sm:$0xff] %v228_v19  ;;  %v232_v21 = vld [vmem:[%s2666_s7 + $0x1f8] sm:$0xff]  ;;  %v234_v22 = vld [vmem:[%s2666_s7 + $0x200] sm:$0xff] }
  0x25   : > { %231 = vst [vmem:[%s2671_s8 + $0xa0] sm:$0xff] %v230_v20  ;;  %v236_v23 = vld [vmem:[%s2666_s7 + $0x208] sm:$0xff]  ;;  %233 = vst [vmem:[%s2671_s8 + $0xa8] sm:$0xff] %v232_v21  ;;  %v238_v24 = vld [vmem:[%s2666_s7 + $0x240] sm:$0xff] }
  0x26   : > { %235 = vst [vmem:[%s2671_s8 + $0xb0] sm:$0xff] %v234_v22  ;;  %237 = vst [vmem:[%s2671_s8 + $0xb8] sm:$0xff] %v236_v23  ;;  %v240_v25 = vld [vmem:[%s2666_s7 + $0x248] sm:$0xff]  ;;  %v242_v26 = vld [vmem:[%s2666_s7 + $0x250] sm:$0xff] }
  0x27   : > { %239 = vst [vmem:[%s2671_s8 + $0xc0] sm:$0xff] %v238_v24  ;;  %241 = vst [vmem:[%s2671_s8 + $0xc8] sm:$0xff] %v240_v25  ;;  %v244_v27 = vld [vmem:[%s2666_s7 + $0x288] sm:$0xff]  ;;  %v246_v28 = vld [vmem:[%s2666_s7 + $0x290] sm:$0xff] }
  0x28   : > { %243 = vst [vmem:[%s2671_s8 + $0xd0] sm:$0xff] %v242_v26  ;;  %v248_v29 = vld [vmem:[%s2666_s7 + $0x298] sm:$0xff]  ;;  %245 = vst [vmem:[%s2671_s8 + $0xd8] sm:$0xff] %v244_v27  ;;  %v250_v30 = vld [vmem:[%s2666_s7 + $0x2d0] sm:$0xff] }
  0x29   : > { %247 = vst [vmem:[%s2671_s8 + $0xe0] sm:$0xff] %v246_v28  ;;  %249 = vst [vmem:[%s2671_s8 + $0xe8] sm:$0xff] %v248_v29  ;;  %v252_v31 = vld [vmem:[%s2666_s7 + $0x2d8] sm:$0xff]  ;;  %v254_v32 = vld [vmem:[%s2666_s7 + $0x2e0] sm:$0xff] }
  0x2a   : > { %251 = vst [vmem:[%s2671_s8 + $0xf0] sm:$0xff] %v250_v30  ;;  %253 = vst [vmem:[%s2671_s8 + $0xf8] sm:$0xff] %v252_v31  ;;  %v256_v33 = vld [vmem:[%s2666_s7 + $0x318] sm:$0xff]  ;;  %v258_v34 = vld [vmem:[%s2666_s7 + $0x320] sm:$0xff] }
  0x2b   : > { %255 = vst [vmem:[%s2671_s8 + $0x100] sm:$0xff] %v254_v32  ;;  %v260_v35 = vld [vmem:[%s2666_s7 + $0x328] sm:$0xff]  ;;  %257 = vst [vmem:[%s2671_s8 + $0x108] sm:$0xff] %v256_v33  ;;  %v262_v36 = vld [vmem:[%s2666_s7 + $0x360] sm:$0xff] }
  0x2c   : > { %259 = vst [vmem:[%s2671_s8 + $0x110] sm:$0xff] %v258_v34  ;;  %261 = vst [vmem:[%s2671_s8 + $0x118] sm:$0xff] %v260_v35  ;;  %v264_v37 = vld [vmem:[%s2666_s7 + $0x368] sm:$0xff]  ;;  %v266_v38 = vld [vmem:[%s2666_s7 + $0x370] sm:$0xff] }
  0x2d   : > { %263 = vst [vmem:[%s2671_s8 + $0x120] sm:$0xff] %v262_v36  ;;  %265 = vst [vmem:[%s2671_s8 + $0x128] sm:$0xff] %v264_v37  ;;  %v268_v39 = vld [vmem:[%s2666_s7 + $0x3a8] sm:$0xff]  ;;  %v270_v40 = vld [vmem:[%s2666_s7 + $0x3b0] sm:$0xff] }
  0x2e   : > { %267 = vst [vmem:[%s2671_s8 + $0x130] sm:$0xff] %v266_v38  ;;  %v272_v41 = vld [vmem:[%s2666_s7 + $0x3b8] sm:$0xff]  ;;  %269 = vst [vmem:[%s2671_s8 + $0x138] sm:$0xff] %v268_v39  ;;  %v274_v42 = vld [vmem:[%s2666_s7 + $0x3f0] sm:$0xff] }
  0x2f   : > { %271 = vst [vmem:[%s2671_s8 + $0x140] sm:$0xff] %v270_v40  ;;  %273 = vst [vmem:[%s2671_s8 + $0x148] sm:$0xff] %v272_v41  ;;  %v276_v43 = vld [vmem:[%s2666_s7 + $0x3f8] sm:$0xff]  ;;  %v278_v44 = vld [vmem:[%s2666_s7 + $0x400] sm:$0xff] }
  0x30   : > { %275 = vst [vmem:[%s2671_s8 + $0x150] sm:$0xff] %v274_v42  ;;  %277 = vst [vmem:[%s2671_s8 + $0x158] sm:$0xff] %v276_v43  ;;  %v280_v45 = vld [vmem:[%s2666_s7 + $0x438] sm:$0xff]  ;;  %v282_v46 = vld [vmem:[%s2666_s7 + $0x440] sm:$0xff] }
  0x31   : > { %279 = vst [vmem:[%s2671_s8 + $0x160] sm:$0xff] %v278_v44  ;;  %v284_v47 = vld [vmem:[%s2666_s7 + $0x448] sm:$0xff]  ;;  %281 = vst [vmem:[%s2671_s8 + $0x168] sm:$0xff] %v280_v45 }
  0x32   : > { %283 = vst [vmem:[%s2671_s8 + $0x170] sm:$0xff] %v282_v46  ;;  %285 = vst [vmem:[%s2671_s8 + $0x178] sm:$0xff] %v284_v47 }
  0x33 PF: > { %p2001_p7 = scmp.ge.s32.totalorder %s2583_s18, 1  ;;  %p305_p8 = scmp.lt.s32.totalorder %s2583_s18, 13 }
  0x35   : > { %p306_p9 = pnand %p2001_p7, %p305_p8 }
  0x36   : > { %s312_s9 = sand.u32 (!%p306_p9), 1, %s2559_s12   ;;  %s356_s10 = smul.u32 (!%p306_p9), 96, %s2567_s14 }
  0x37   : > { %309 = sbr.rel (%p306_p9) target bundleno = 476 (0x1dc), region = 51  ;;  %s2004_s21 = sshll.u32 (!%p306_p9), %s2571_s15, 4 }
  0x38   : > { %s2255_s11 = smul.u32 (!%p306_p9), 384, %s312_s9  ;;  %p358_p10 = scmp.lt.s32.totalorder (!%p306_p9), %s356_s10, 287 }
  0x39   : > { %p375_p11 = scmp.lt.s32.totalorder (!%p306_p9), %s2004_s21, 63  ;;  %p2007_p12 = scmp.ne.s32.totalorder (!%p306_p9), %s2567_s14, 0 }
  0x3a   : > { %s2781_s12 = scalar_lea.vmem (!%p306_p9), [#allocation3], %s2255_s11 }
  0x3e   : > { %s3125_s10 = smov (!%p358_p10, %s356_s10), 287  ;;  %s3127_s21 = smov (!%p375_p11, %s2004_s21), 63 }
  0x3f   : > { %s2155_s22 = sshll.u32 %s3125_s10, 3  ;;  %s2156_s27 = sshll.u32 %s3127_s21, 4  ;;  %v2585_v48 = vmov (!%p2007_p12), 0.0  }
  0x40   : > { %s2774_s26 = scalar_lea.vmem %s3109_s1, %s2155_s22  ;;  %s2779_s30 = scalar_lea.vmem %s3111_s3, %s2156_s27  ;;  %389 = vst [vmem:[#allocation2] sm:$0xff] (!%p2007_p12), %v2585_v48  ;;  %390 = vst [vmem:[#allocation2 + $0x8] sm:$0xff] (!%p2007_p12), %v2585_v48 }
  0x41   : > { %388 = sbr.rel (%p2007_p12) target bundleno = 80 (0x50), region = 59  ;;  %391 = vst [vmem:[#allocation2 + $0x10] sm:$0xff] (!%p2007_p12), %v2585_v48  ;;  %392 = vst [vmem:[#allocation2 + $0x18] sm:$0xff] (!%p2007_p12), %v2585_v48 }
  0x42   : > { %393 = vst [vmem:[#allocation2 + $0x20] sm:$0xff] (!%p2007_p12), %v2585_v48  ;;  %394 = vst [vmem:[#allocation2 + $0x28] sm:$0xff] (!%p2007_p12), %v2585_v48 }
  0x43   : > { %395 = vst [vmem:[#allocation2 + $0x30] sm:$0xff] (!%p2007_p12), %v2585_v48  ;;  %396 = vst [vmem:[#allocation2 + $0x38] sm:$0xff] (!%p2007_p12), %v2585_v48 }
  0x44   : > { %397 = vst [vmem:[#allocation2 + $0x40] sm:$0xff] (!%p2007_p12), %v2585_v48  ;;  %398 = vst [vmem:[#allocation2 + $0x48] sm:$0xff] (!%p2007_p12), %v2585_v48 }
  0x45   : > { %399 = vst [vmem:[#allocation2 + $0x50] sm:$0xff] (!%p2007_p12), %v2585_v48  ;;  %400 = vst [vmem:[#allocation2 + $0x58] sm:$0xff] (!%p2007_p12), %v2585_v48 }
  0x46   : > { %401 = vst [vmem:[#allocation2 + $0x60] sm:$0xff] (!%p2007_p12), %v2585_v48  ;;  %402 = vst [vmem:[#allocation2 + $0x68] sm:$0xff] (!%p2007_p12), %v2585_v48 }
  0x47   : > { %403 = vst [vmem:[#allocation2 + $0x70] sm:$0xff] (!%p2007_p12), %v2585_v48  ;;  %404 = vst [vmem:[#allocation2 + $0x78] sm:$0xff] (!%p2007_p12), %v2585_v48 }
  0x48   : > { %405 = vst [vmem:[#allocation2 + $0x80] sm:$0xff] %v2585_v48  ;;  %406 = vst [vmem:[#allocation2 + $0x88] sm:$0xff] %v2585_v48 }
  0x49   : > { %407 = vst [vmem:[#allocation2 + $0x90] sm:$0xff] %v2585_v48  ;;  %408 = vst [vmem:[#allocation2 + $0x98] sm:$0xff] %v2585_v48 }
  0x4a   : > { %409 = vst [vmem:[#allocation2 + $0xa0] sm:$0xff] %v2585_v48  ;;  %410 = vst [vmem:[#allocation2 + $0xa8] sm:$0xff] %v2585_v48 }
  0x4b   : > { %411 = vst [vmem:[#allocation2 + $0xb0] sm:$0xff] %v2585_v48  ;;  %412 = vst [vmem:[#allocation2 + $0xb8] sm:$0xff] %v2585_v48 }
  0x4c   : > { %413 = vst [vmem:[#allocation2 + $0xc0] sm:$0xff] %v2585_v48  ;;  %414 = vst [vmem:[#allocation2 + $0xc8] sm:$0xff] %v2585_v48 }
  0x4d   : > { %415 = vst [vmem:[#allocation2 + $0xd0] sm:$0xff] %v2585_v48  ;;  %416 = vst [vmem:[#allocation2 + $0xd8] sm:$0xff] %v2585_v48 }
  0x4e   : > { %417 = vst [vmem:[#allocation2 + $0xe0] sm:$0xff] %v2585_v48  ;;  %418 = vst [vmem:[#allocation2 + $0xe8] sm:$0xff] %v2585_v48 }
  0x4f   : > { %419 = vst [vmem:[#allocation2 + $0xf0] sm:$0xff] %v2585_v48  ;;  %420 = vst [vmem:[#allocation2 + $0xf8] sm:$0xff] %v2585_v48 }
  0x50 PF: > { %v2313_v49 = vld [vmem:[%s2774_s26 + $0x4] ss:$8 sps:$4 sm:$0xff]   ;;  %v2317_v51 = vld [vmem:[%s2774_s26] ss:$8 sps:$4 sm:$0xff]   ;;  %v2319_v53 = vld [vmem:[%s2774_s26 + $0x14] ss:$8 sps:$4 sm:$0xff]  }
  0x51   : > { %v2315_v50 = vld [vmem:[%s2774_s26 + $0x104] ss:$8 sps:$4 sm:$0xff]   ;;  %1317 = vmatprep.subr.bf16.mxu1 %v2313_v49  ;;  %v2318_v52 = vld [vmem:[%s2774_s26 + $0x100] ss:$8 sps:$4 sm:$0xff]   ;;  %v2321_v54 = vld [vmem:[%s2774_s26 + $0x114] ss:$8 sps:$4 sm:$0xff]  }
  0x52   : > { %1430 = vmatprep.subr.bf16.mxu0 %v2315_v50  ;;  %1318 = vmatpush1.bf16.msra.mxu1 %v2317_v51  ;;  %v2323_v55 = vld [vmem:[%s2774_s26 + $0x10] ss:$8 sps:$4 sm:$0xff]   ;;  %v2325_v57 = vld [vmem:[%s2774_s26 + $0x24] ss:$8 sps:$4 sm:$0xff]   ;;  %v2329_v59 = vld [vmem:[%s2774_s26 + $0x20] ss:$8 sps:$4 sm:$0xff]  }
  0x53   : > { %1431 = vmatpush1.bf16.msra.mxu0 %v2318_v52  ;;  %1319 = vmatprep.subr.bf16.mxu1 %v2319_v53  ;;  %v2324_v56 = vld [vmem:[%s2774_s26 + $0x110] ss:$8 sps:$4 sm:$0xff]   ;;  %v2327_v58 = vld [vmem:[%s2774_s26 + $0x124] ss:$8 sps:$4 sm:$0xff]   ;;  %v2330_v60 = vld [vmem:[%s2774_s26 + $0x120] ss:$8 sps:$4 sm:$0xff]  }
  0x54   : > { %1432 = vmatprep.subr.bf16.mxu0 %v2321_v54  ;;  %v2331_v61 = vld [vmem:[%s2774_s26 + $0x34] ss:$8 sps:$4 sm:$0xff]   ;;  %v2335_v63 = vld [vmem:[%s2774_s26 + $0x30] ss:$8 sps:$4 sm:$0xff]   ;;  %v2337_v1 = vld [vmem:[%s2774_s26 + $0x44] ss:$8 sps:$4 sm:$0xff]  }
  0x55   : > { %v2333_v62 = vld [vmem:[%s2774_s26 + $0x134] ss:$8 sps:$4 sm:$0xff]   ;;  %v2336_v0 = vld [vmem:[%s2774_s26 + $0x130] ss:$8 sps:$4 sm:$0xff]   ;;  %v2339_v2 = vld [vmem:[%s2774_s26 + $0x144] ss:$8 sps:$4 sm:$0xff]  }
  0x56   : > { %1320 = vmatpush1.bf16.msra.mxu1 %v2323_v55  ;;  %v2341_v3 = vld [vmem:[%s2774_s26 + $0x40] ss:$8 sps:$4 sm:$0xff]   ;;  %v2343_v5 = vld [vmem:[%s2774_s26 + $0x54] ss:$8 sps:$4 sm:$0xff]   ;;  %v2347_v7 = vld [vmem:[%s2774_s26 + $0x50] ss:$8 sps:$4 sm:$0xff]  }
  0x57   : > { %1433 = vmatpush1.bf16.msra.mxu0 %v2324_v56  ;;  %1321 = vmatprep.subr.bf16.mxu1 %v2325_v57  ;;  %v2342_v4 = vld [vmem:[%s2774_s26 + $0x140] ss:$8 sps:$4 sm:$0xff]   ;;  %v2345_v6 = vld [vmem:[%s2774_s26 + $0x154] ss:$8 sps:$4 sm:$0xff]   ;;  %v2348_v8 = vld [vmem:[%s2774_s26 + $0x150] ss:$8 sps:$4 sm:$0xff]  }
  0x58   : > { %1434 = vmatprep.subr.bf16.mxu0 %v2327_v58  ;;  %v2349_v9 = vld [vmem:[%s2774_s26 + $0x64] ss:$8 sps:$4 sm:$0xff]   ;;  %v2353_v11 = vld [vmem:[%s2774_s26 + $0x60] ss:$8 sps:$4 sm:$0xff]   ;;  %v2355_v13 = vld [vmem:[%s2774_s26 + $0x74] ss:$8 sps:$4 sm:$0xff]  }
  0x59   : > { %v2351_v10 = vld [vmem:[%s2774_s26 + $0x164] ss:$8 sps:$4 sm:$0xff]   ;;  %v2354_v12 = vld [vmem:[%s2774_s26 + $0x160] ss:$8 sps:$4 sm:$0xff]   ;;  %v2357_v14 = vld [vmem:[%s2774_s26 + $0x174] ss:$8 sps:$4 sm:$0xff]  }
  0x5a   : > { %1322 = vmatpush1.bf16.msra.mxu1 %v2329_v59  ;;  %v2359_v15 = vld [vmem:[%s2774_s26 + $0x70] ss:$8 sps:$4 sm:$0xff]   ;;  %v2361_v17 = vld [vmem:[%s2774_s26 + $0x84] ss:$8 sps:$4 sm:$0xff]   ;;  %v2365_v19 = vld [vmem:[%s2774_s26 + $0x80] ss:$8 sps:$4 sm:$0xff]  }
  0x5b   : > { %1435 = vmatpush1.bf16.msra.mxu0 %v2330_v60  ;;  %1323 = vmatprep.subr.bf16.mxu1 %v2331_v61  ;;  %v2360_v16 = vld [vmem:[%s2774_s26 + $0x170] ss:$8 sps:$4 sm:$0xff]   ;;  %v2363_v18 = vld [vmem:[%s2774_s26 + $0x184] ss:$8 sps:$4 sm:$0xff]   ;;  %v2366_v20 = vld [vmem:[%s2774_s26 + $0x180] ss:$8 sps:$4 sm:$0xff]  }
  0x5c   : > { %1436 = vmatprep.subr.bf16.mxu0 %v2333_v62  ;;  %v2367_v21 = vld [vmem:[%s2774_s26 + $0x94] ss:$8 sps:$4 sm:$0xff]   ;;  %v2371_v23 = vld [vmem:[%s2774_s26 + $0x90] ss:$8 sps:$4 sm:$0xff]   ;;  %v2373_v25 = vld [vmem:[%s2774_s26 + $0xa4] ss:$8 sps:$4 sm:$0xff]  }
  0x5d   : > { %v2369_v22 = vld [vmem:[%s2774_s26 + $0x194] ss:$8 sps:$4 sm:$0xff]   ;;  %v2372_v24 = vld [vmem:[%s2774_s26 + $0x190] ss:$8 sps:$4 sm:$0xff]   ;;  %v2375_v26 = vld [vmem:[%s2774_s26 + $0x1a4] ss:$8 sps:$4 sm:$0xff]  }
  0x5e   : > { %1324 = vmatpush1.bf16.msra.mxu1 %v2335_v63  ;;  %v2377_v27 = vld [vmem:[%s2774_s26 + $0xa0] ss:$8 sps:$4 sm:$0xff]   ;;  %v2379_v29 = vld [vmem:[%s2774_s26 + $0xb4] ss:$8 sps:$4 sm:$0xff]   ;;  %v2383_v31 = vld [vmem:[%s2774_s26 + $0xb0] ss:$8 sps:$4 sm:$0xff]  }
  0x5f   : > { %1437 = vmatpush1.bf16.msra.mxu0 %v2336_v0  ;;  %1325 = vmatprep.subr.bf16.mxu1 %v2337_v1  ;;  %v2378_v28 = vld [vmem:[%s2774_s26 + $0x1a0] ss:$8 sps:$4 sm:$0xff]   ;;  %v2381_v30 = vld [vmem:[%s2774_s26 + $0x1b4] ss:$8 sps:$4 sm:$0xff]   ;;  %v2384_v32 = vld [vmem:[%s2774_s26 + $0x1b0] ss:$8 sps:$4 sm:$0xff]  }
  0x60   : > { %1438 = vmatprep.subr.bf16.mxu0 %v2339_v2  ;;  %v2385_v33 = vld [vmem:[%s2774_s26 + $0xc4] ss:$8 sps:$4 sm:$0xff]   ;;  %v2389_v37 = vld [vmem:[%s2774_s26 + $0xc0] ss:$8 sps:$4 sm:$0xff]   ;;  %v2391_v39 = vld [vmem:[%s2774_s26 + $0xd4] ss:$8 sps:$4 sm:$0xff]  }
  0x61   : > { %v2411_v34 = vld [vmem:[%s2781_s12 + $0x4] ss:$24 sps:$4 sm:$0xff]   ;;  %v2390_v38 = vld [vmem:[%s2774_s26 + $0x1c0] ss:$8 sps:$4 sm:$0xff]   ;;  %v2395_v41 = vld [vmem:[%s2774_s26 + $0xd0] ss:$8 sps:$4 sm:$0xff]  }
  0x62   : > { %1326 = vmatpush1.bf16.msra.mxu1 %v2341_v3  ;;  %v2387_v35 = vld [vmem:[%s2774_s26 + $0x1c4] ss:$8 sps:$4 sm:$0xff]   ;;  %1349 = vmatprep.mubr.bf16.mxu1 %v2411_v34  ;;  %v2393_v40 = vld [vmem:[%s2774_s26 + $0x1d4] ss:$8 sps:$4 sm:$0xff]   ;;  %v2396_v42 = vld [vmem:[%s2774_s26 + $0x1d0] ss:$8 sps:$4 sm:$0xff]  }
  0x63   : > { %1439 = vmatpush1.bf16.msra.mxu0 %v2342_v4  ;;  %1327 = vmatprep.subr.bf16.mxu1 %v2343_v5  ;;  %v2414_v36 = vld [vmem:[%s2781_s12 + $0xc] ss:$24 sps:$4 sm:$0xff]   ;;  %v2401_v45 = vld [vmem:[%s2774_s26 + $0xe0] ss:$8 sps:$4 sm:$0xff]   ;;  %v2403_v47 = vld [vmem:[%s2774_s26 + $0xf4] ss:$8 sps:$4 sm:$0xff]  }
  0x64   : > { %1440 = vmatprep.subr.bf16.mxu0 %v2345_v6  ;;  %1462 = vmatprep.mubr.bf16.mxu0 %v2414_v36  ;;  %v2397_v43 = vld [vmem:[%s2774_s26 + $0xe4] ss:$8 sps:$4 sm:$0xff]   ;;  %v2402_v46 = vld [vmem:[%s2774_s26 + $0x1e0] ss:$8 sps:$4 sm:$0xff]   ;;  %v2405_v48 = vld [vmem:[%s2774_s26 + $0x1f4] ss:$8 sps:$4 sm:$0xff]  }
  0x65   : > { %v2399_v44 = vld [vmem:[%s2774_s26 + $0x1e4] ss:$8 sps:$4 sm:$0xff]   ;;  %v2407_v49 = vld [vmem:[%s2774_s26 + $0xf0] ss:$8 sps:$4 sm:$0xff]   ;;  %v2412_v53 = vld [vmem:[%s2781_s12 + $0x8] ss:$24 sps:$4 sm:$0xff]  }
  0x66   : > { %1328 = vmatpush1.bf16.msra.mxu1 %v2347_v7  ;;  %v2408_v50 = vld [vmem:[%s2774_s26 + $0x1f0] ss:$8 sps:$4 sm:$0xff]   ;;  %v2417_v51 = vld [vmem:[%s2774_s26 + $0x204] ss:$8 sps:$4 sm:$0xff]   ;;  %v2415_v54 = vld [vmem:[%s2774_s26 + $0x200] ss:$8 sps:$4 sm:$0xff]  }
  0x67   : > { %1441 = vmatpush1.bf16.msra.mxu0 %v2348_v8  ;;  %1329 = vmatprep.subr.bf16.mxu1 %v2349_v9  ;;  %v2409_v52 = vld [vmem:[%s2781_s12] ss:$24 sps:$4 sm:$0xff]   ;;  %v2420_v55 = vld [vmem:[%s2774_s26 + $0x214] ss:$8 sps:$4 sm:$0xff]   ;;  %v2429_v59 = vld [vmem:[%s2774_s26 + $0x224] ss:$8 sps:$4 sm:$0xff]  }
  0x68   : > { %1442 = vmatprep.subr.bf16.mxu0 %v2351_v10  ;;  %v2421_v56 = vld [vmem:[%s2781_s12 + $0x34] ss:$24 sps:$4 sm:$0xff]   ;;  %v2418_v58 = vld [vmem:[%s2774_s26 + $0x210] ss:$8 sps:$4 sm:$0xff]   ;;  %v2427_v62 = vld [vmem:[%s2774_s26 + $0x220] ss:$8 sps:$4 sm:$0xff]  }
  0x69   : > { %v2423_v57 = vld [vmem:[%s2781_s12 + $0x3c] ss:$24 sps:$4 sm:$0xff]   ;;  %v2425_v60 = vld [vmem:[%s2781_s12 + $0x30] ss:$24 sps:$4 sm:$0xff]   ;;  %v2435_v1 = vld [vmem:[%s2781_s12 + $0x6c] ss:$24 sps:$4 sm:$0xff]  }
  0x6a   : > { %1330 = vmatpush1.bf16.msra.mxu1 %v2353_v11  ;;  %v2426_v61 = vld [vmem:[%s2781_s12 + $0x38] ss:$24 sps:$4 sm:$0xff]   ;;  %v2432_v63 = vld [vmem:[%s2774_s26 + $0x234] ss:$8 sps:$4 sm:$0xff]   ;;  %v2441_v3 = vld [vmem:[%s2774_s26 + $0x244] ss:$8 sps:$4 sm:$0xff]  }
  0x6b   : > { %1443 = vmatpush1.bf16.msra.mxu0 %v2354_v12  ;;  %1331 = vmatprep.subr.bf16.mxu1 %v2355_v13  ;;  %v2433_v0 = vld [vmem:[%s2781_s12 + $0x64] ss:$24 sps:$4 sm:$0xff]   ;;  %v2430_v2 = vld [vmem:[%s2774_s26 + $0x230] ss:$8 sps:$4 sm:$0xff]   ;;  %v2438_v5 = vld [vmem:[%s2781_s12 + $0x68] ss:$24 sps:$4 sm:$0xff]  }
  0x6c   : > { %1444 = vmatprep.subr.bf16.mxu0 %v2357_v14  ;;  %v2437_v4 = vld [vmem:[%s2781_s12 + $0x60] ss:$24 sps:$4 sm:$0xff]   ;;  %v2444_v7 = vld [vmem:[%s2774_s26 + $0x254] ss:$8 sps:$4 sm:$0xff]   ;;  %v2453_v11 = vld [vmem:[%s2774_s26 + $0x264] ss:$8 sps:$4 sm:$0xff]  }
  0x6d   : > { %v2439_v6 = vld [vmem:[%s2774_s26 + $0x240] ss:$8 sps:$4 sm:$0xff]   ;;  %v2445_v8 = vld [vmem:[%s2781_s12 + $0x94] ss:$24 sps:$4 sm:$0xff]   ;;  %v2442_v10 = vld [vmem:[%s2774_s26 + $0x250] ss:$8 sps:$4 sm:$0xff]  }
  0x6e   : > { %1332 = vmatpush1.bf16.msra.mxu1 %v2359_v15  ;;  %v2447_v9 = vld [vmem:[%s2781_s12 + $0x9c] ss:$24 sps:$4 sm:$0xff]   ;;  %v2449_v12 = vld [vmem:[%s2781_s12 + $0x90] ss:$24 sps:$4 sm:$0xff]   ;;  %v2485_v36 = vld [vmem:[%s2781_s12 + $0x120] ss:$24 sps:$4 sm:$0xff]  }
  0x6f   : > { %1445 = vmatpush1.bf16.msra.mxu0 %v2360_v16  ;;  %1333 = vmatprep.subr.bf16.mxu1 %v2361_v17  ;;  %v2450_v13 = vld [vmem:[%s2781_s12 + $0x98] ss:$24 sps:$4 sm:$0xff]   ;;  %v2451_v14 = vld [vmem:[%s2774_s26 + $0x260] ss:$8 sps:$4 sm:$0xff]   ;;  %v2456_v15 = vld [vmem:[%s2774_s26 + $0x274] ss:$8 sps:$4 sm:$0xff]  }
  0x70   : > { %1446 = vmatprep.subr.bf16.mxu0 %v2363_v18  ;;  %v2457_v16 = vld [vmem:[%s2781_s12 + $0xc4] ss:$24 sps:$4 sm:$0xff]   ;;  %v2454_v18 = vld [vmem:[%s2774_s26 + $0x270] ss:$8 sps:$4 sm:$0xff]   ;;  %p2152_p13 = scmp.ne.s32.totalorder %s2567_s14, 2 }
  0x71   : > { %v2459_v17 = vld [vmem:[%s2781_s12 + $0xcc] ss:$24 sps:$4 sm:$0xff]   ;;  %v2478_v34 = vld [vmem:[%s2774_s26 + $0x2b0] ss:$8 sps:$4 sm:$0xff]  }
  0x72   : > { %1334 = vmatpush1.bf16.msra.mxu1 %v2365_v19  ;;  %v2465_v19 = vld [vmem:[%s2774_s26 + $0x284] ss:$8 sps:$4 sm:$0xff]  }
  0x73   : > { %1447 = vmatpush1.bf16.msra.mxu0 %v2366_v20  ;;  %1335 = vmatprep.subr.bf16.mxu1 %v2367_v21  ;;  %v2461_v20 = vld [vmem:[%s2781_s12 + $0xc0] ss:$24 sps:$4 sm:$0xff]  }
  0x74   : > { %1448 = vmatprep.subr.bf16.mxu0 %v2369_v22  ;;  %v2462_v21 = vld [vmem:[%s2781_s12 + $0xc8] ss:$24 sps:$4 sm:$0xff]  }
  0x75   : > { %v2463_v22 = vld [vmem:[%s2774_s26 + $0x280] ss:$8 sps:$4 sm:$0xff]  }
  0x76   : > { %1336 = vmatpush1.bf16.msra.mxu1 %v2371_v23  ;;  %v2468_v23 = vld [vmem:[%s2774_s26 + $0x294] ss:$8 sps:$4 sm:$0xff]  }
  0x77   : > { %1449 = vmatpush1.bf16.msra.mxu0 %v2372_v24  ;;  %1337 = vmatprep.subr.bf16.mxu1 %v2373_v25  ;;  %v2469_v24 = vld [vmem:[%s2781_s12 + $0xf4] ss:$24 sps:$4 sm:$0xff]  }
  0x78   : > { %1450 = vmatprep.subr.bf16.mxu0 %v2375_v26  ;;  %v2471_v25 = vld [vmem:[%s2781_s12 + $0xfc] ss:$24 sps:$4 sm:$0xff]   ;;  %v2466_v26 = vld [vmem:[%s2774_s26 + $0x290] ss:$8 sps:$4 sm:$0xff]  }
  0x7a   : > { %1338 = vmatpush1.bf16.msra.mxu1 %v2377_v27  ;;  %v2477_v27 = vld [vmem:[%s2774_s26 + $0x2a4] ss:$8 sps:$4 sm:$0xff]  }
  0x7b   : > { %1451 = vmatpush1.bf16.msra.mxu0 %v2378_v28  ;;  %1339 = vmatprep.subr.bf16.mxu1 %v2379_v29  ;;  %v2473_v28 = vld [vmem:[%s2781_s12 + $0xf0] ss:$24 sps:$4 sm:$0xff]  }
  0x7c   : > { %1452 = vmatprep.subr.bf16.mxu0 %v2381_v30  ;;  %v2474_v29 = vld [vmem:[%s2781_s12 + $0xf8] ss:$24 sps:$4 sm:$0xff]   ;;  %v2475_v30 = vld [vmem:[%s2774_s26 + $0x2a0] ss:$8 sps:$4 sm:$0xff]  }
  0x7e   : > { %1340 = vmatpush1.bf16.msra.mxu1 %v2383_v31  ;;  %v2480_v31 = vld [vmem:[%s2774_s26 + $0x2b4] ss:$8 sps:$4 sm:$0xff]  }
  0x7f   : > { %1453 = vmatpush1.bf16.msra.mxu0 %v2384_v32  ;;  %1341 = vmatprep.subr.bf16.mxu1 %v2385_v33  ;;  %v2481_v32 = vld [vmem:[%s2781_s12 + $0x124] ss:$24 sps:$4 sm:$0xff]  }
  0x80   : > { %1454 = vmatprep.subr.bf16.mxu0 %v2387_v35  ;;  %v2483_v33 = vld [vmem:[%s2781_s12 + $0x12c] ss:$24 sps:$4 sm:$0xff]  }
  0x81   : > { %v2489_v35 = vld [vmem:[%s2774_s26 + $0x2c4] ss:$8 sps:$4 sm:$0xff]  }
  0x82   : > { %1342 = vmatpush1.bf16.msra.mxu1 %v2389_v37  ;;  %v2486_v37 = vld [vmem:[%s2781_s12 + $0x128] ss:$24 sps:$4 sm:$0xff]  }
  0x83   : > { %1455 = vmatpush1.bf16.msra.mxu0 %v2390_v38  ;;  %1343 = vmatprep.subr.bf16.mxu1 %v2391_v39  ;;  %v2487_v38 = vld [vmem:[%s2774_s26 + $0x2c0] ss:$8 sps:$4 sm:$0xff]   ;;  %v2492_v39 = vld [vmem:[%s2774_s26 + $0x2d4] ss:$8 sps:$4 sm:$0xff]  }
  0x84   : > { %1456 = vmatprep.subr.bf16.mxu0 %v2393_v40  ;;  %v2493_v40 = vld [vmem:[%s2781_s12 + $0x154] ss:$24 sps:$4 sm:$0xff]  }
  0x86   : > { %1344 = vmatpush1.bf16.msra.mxu1 %v2395_v41  ;;  %v2495_v41 = vld [vmem:[%s2781_s12 + $0x15c] ss:$24 sps:$4 sm:$0xff]  }
  0x87   : > { %1457 = vmatpush1.bf16.msra.mxu0 %v2396_v42  ;;  %1345 = vmatprep.subr.bf16.mxu1 %v2397_v43  ;;  %v2490_v42 = vld [vmem:[%s2774_s26 + $0x2d0] ss:$8 sps:$4 sm:$0xff]   ;;  %v2501_v43 = vld [vmem:[%s2774_s26 + $0x2e4] ss:$8 sps:$4 sm:$0xff]  }
  0x88   : > { %1458 = vmatprep.subr.bf16.mxu0 %v2399_v44  ;;  %v2497_v44 = vld [vmem:[%s2781_s12 + $0x150] ss:$24 sps:$4 sm:$0xff]  }
  0x8a   : > { %1346 = vmatpush1.bf16.msra.mxu1 %v2401_v45  ;;  %v2498_v45 = vld [vmem:[%s2781_s12 + $0x158] ss:$24 sps:$4 sm:$0xff]  }
  0x8b   : > { %1459 = vmatpush1.bf16.msra.mxu0 %v2402_v46  ;;  %1347 = vmatprep.subr.bf16.mxu1 %v2403_v47  ;;  %v2499_v46 = vld [vmem:[%s2774_s26 + $0x2e0] ss:$8 sps:$4 sm:$0xff]   ;;  %v2504_v47 = vld [vmem:[%s2774_s26 + $0x2f4] ss:$8 sps:$4 sm:$0xff]  }
  0x8c   : > { %1460 = vmatprep.subr.bf16.mxu0 %v2405_v48  ;;  %v2507_v48 = vld [vmem:[%s2781_s12 + $0x14] ss:$24 sps:$4 sm:$0xff]  }
  0x8e   : > { %1348 = vmatpush1.bf16.msra.mxu1 %v2407_v49  ;;  %v2510_v49 = vld [vmem:[%s2781_s12 + $0xd4] ss:$24 sps:$4 sm:$0xff]  }
  0x8f   : > { %1461 = vmatpush1.bf16.msra.mxu0 %v2408_v50  ;;  %2157 = vmatprep.subr.bf16.mxu1 %v2417_v51  ;;  %v2502_v50 = vld [vmem:[%s2774_s26 + $0x2f0] ss:$8 sps:$4 sm:$0xff]  }
  0x90   : > { %1543 = vmatprep.subr.bf16.mxu0 %v2417_v51  ;;  %v2505_v51 = vld [vmem:[%s2781_s12 + $0x10] ss:$24 sps:$4 sm:$0xff]  }
  0x91   : > { %1350 = vmatmul.mubr.bf16.vlgmr.msra.gmra.mrb[0].mxu1 %v2409_v52  ;;  %v2508_v52 = vld [vmem:[%s2781_s12 + $0xd0] ss:$24 sps:$4 sm:$0xff]  }
  0x92   : > { %1463 = vmatmul.mubr.bf16.vlgmr.msra.gmra.mrb[0].mxu0 %v2412_v53  ;;  %2173 = vmatpush1.bf16.msra.mxu1 %v2415_v54  ;;  %v2511_v53 = vld [vmem:[%s2781_s12 + $0x44] ss:$24 sps:$4 sm:$0xff]  }
  0x93   : > { %1544 = vmatpush1.bf16.msra.mxu0 %v2415_v54  ;;  %2158 = vmatprep.subr.bf16.mxu1 %v2420_v55  ;;  %v2513_v54 = vld [vmem:[%s2781_s12 + $0x104] ss:$24 sps:$4 sm:$0xff]  }
  0x94   : > { %1545 = vmatprep.subr.bf16.mxu0 %v2420_v55  ;;  %1359 = vmatprep.mubr.bf16.mxu1 %v2421_v56  ;;  %v2515_v55 = vld [vmem:[%s2781_s12 + $0x40] ss:$24 sps:$4 sm:$0xff]  }
  0x95   : > { %1472 = vmatprep.mubr.bf16.mxu0 %v2423_v57  ;;  %v2516_v56 = vld [vmem:[%s2781_s12 + $0x100] ss:$24 sps:$4 sm:$0xff]   ;;  %v2517_v57 = vld [vmem:[%s2781_s12 + $0x74] ss:$24 sps:$4 sm:$0xff]  }
  0x96   : > { %2174 = vmatpush1.bf16.msra.mxu1 %v2418_v58 }
  0x97   : > { %1546 = vmatpush1.bf16.msra.mxu0 %v2418_v58  ;;  %2159 = vmatprep.subr.bf16.mxu1 %v2429_v59  ;;  %v2519_v58 = vld [vmem:[%s2781_s12 + $0x134] ss:$24 sps:$4 sm:$0xff]  }
  0x98   : > { %1547 = vmatprep.subr.bf16.mxu0 %v2429_v59  ;;  %v2521_v59 = vld [vmem:[%s2781_s12 + $0x70] ss:$24 sps:$4 sm:$0xff]  }
  0x99   : > { %1360 = vmatmul.mubr.bf16.gmra.mrb[4].mxu1 %v2425_v60  ;;  %v2522_v60 = vld [vmem:[%s2781_s12 + $0x130] ss:$24 sps:$4 sm:$0xff]  }
  0x9a   : > { %1473 = vmatmul.mubr.bf16.gmra.mrb[4].mxu0 %v2426_v61  ;;  %2175 = vmatpush1.bf16.msra.mxu1 %v2427_v62  ;;  %v2523_v61 = vld [vmem:[%s2781_s12 + $0xa4] ss:$24 sps:$4 sm:$0xff]  }
  0x9b   : > { %1548 = vmatpush1.bf16.msra.mxu0 %v2427_v62  ;;  %2160 = vmatprep.subr.bf16.mxu1 %v2432_v63  ;;  %v2525_v62 = vld [vmem:[%s2781_s12 + $0x164] ss:$24 sps:$4 sm:$0xff]  }
  0x9c   : > { %1549 = vmatprep.subr.bf16.mxu0 %v2432_v63  ;;  %1369 = vmatprep.mubr.bf16.mxu1 %v2433_v0  ;;  %v2527_v63 = vld [vmem:[%s2781_s12 + $0xa0] ss:$24 sps:$4 sm:$0xff]  }
  0x9d   : > { %1482 = vmatprep.mubr.bf16.mxu0 %v2435_v1  ;;  %v2528_v0 = vld [vmem:[%s2781_s12 + $0x160] ss:$24 sps:$4 sm:$0xff]  }
  0x9e   : > { %2176 = vmatpush1.bf16.msra.mxu1 %v2430_v2 }
  0x9f   : > { %1550 = vmatpush1.bf16.msra.mxu0 %v2430_v2  ;;  %2161 = vmatprep.subr.bf16.mxu1 %v2441_v3 }
  0xa0   : > { %1551 = vmatprep.subr.bf16.mxu0 %v2441_v3 }
  0xa1   : > { %1370 = vmatmul.mubr.bf16.gmra.mrb[8].mxu1 %v2437_v4 }
  0xa2   : > { %1483 = vmatmul.mubr.bf16.gmra.mrb[8].mxu0 %v2438_v5  ;;  %2177 = vmatpush1.bf16.msra.mxu1 %v2439_v6 }
  0xa3   : > { %1552 = vmatpush1.bf16.msra.mxu0 %v2439_v6  ;;  %2162 = vmatprep.subr.bf16.mxu1 %v2444_v7 }
  0xa4   : > { %1553 = vmatprep.subr.bf16.mxu0 %v2444_v7  ;;  %1379 = vmatprep.mubr.bf16.mxu1 %v2445_v8 }
  0xa5   : > { %1492 = vmatprep.mubr.bf16.mxu0 %v2447_v9 }
  0xa6   : > { %2178 = vmatpush1.bf16.msra.mxu1 %v2442_v10 }
  0xa7   : > { %1554 = vmatpush1.bf16.msra.mxu0 %v2442_v10  ;;  %2163 = vmatprep.subr.bf16.mxu1 %v2453_v11 }
  0xa8   : > { %1555 = vmatprep.subr.bf16.mxu0 %v2453_v11 }
  0xa9   : > { %1380 = vmatmul.mubr.bf16.gmra.mrb[12].mxu1 %v2449_v12 }
  0xaa   : > { %1493 = vmatmul.mubr.bf16.gmra.mrb[12].mxu0 %v2450_v13  ;;  %2179 = vmatpush1.bf16.msra.mxu1 %v2451_v14 }
  0xab   : > { %1556 = vmatpush1.bf16.msra.mxu0 %v2451_v14  ;;  %2164 = vmatprep.subr.bf16.mxu1 %v2456_v15 }
  0xac   : > { %1557 = vmatprep.subr.bf16.mxu0 %v2456_v15  ;;  %1389 = vmatprep.mubr.bf16.mxu1 %v2457_v16 }
  0xad   : > { %1502 = vmatprep.mubr.bf16.mxu0 %v2459_v17 }
  0xae   : > { %2180 = vmatpush1.bf16.msra.mxu1 %v2454_v18 }
  0xaf   : > { %1558 = vmatpush1.bf16.msra.mxu0 %v2454_v18  ;;  %2165 = vmatprep.subr.bf16.mxu1 %v2465_v19 }
  0xb0   : > { %1559 = vmatprep.subr.bf16.mxu0 %v2465_v19 }
  0xb1   : > { %1390 = vmatmul.mubr.bf16.gmra.mrb[16].mxu1 %v2461_v20 }
  0xb2   : > { %1503 = vmatmul.mubr.bf16.gmra.mrb[16].mxu0 %v2462_v21  ;;  %2181 = vmatpush1.bf16.msra.mxu1 %v2463_v22 }
  0xb3   : > { %1560 = vmatpush1.bf16.msra.mxu0 %v2463_v22  ;;  %2166 = vmatprep.subr.bf16.mxu1 %v2468_v23 }
  0xb4   : > { %1561 = vmatprep.subr.bf16.mxu0 %v2468_v23  ;;  %1399 = vmatprep.mubr.bf16.mxu1 %v2469_v24 }
  0xb5   : > { %1512 = vmatprep.mubr.bf16.mxu0 %v2471_v25 }
  0xb6   : > { %2182 = vmatpush1.bf16.msra.mxu1 %v2466_v26 }
  0xb7   : > { %1562 = vmatpush1.bf16.msra.mxu0 %v2466_v26  ;;  %2167 = vmatprep.subr.bf16.mxu1 %v2477_v27 }
  0xb8   : > { %1563 = vmatprep.subr.bf16.mxu0 %v2477_v27 }
  0xb9   : > { %1400 = vmatmul.mubr.bf16.gmra.mrb[20].mxu1 %v2473_v28 }
  0xba   : > { %1513 = vmatmul.mubr.bf16.gmra.mrb[20].mxu0 %v2474_v29  ;;  %2183 = vmatpush1.bf16.msra.mxu1 %v2475_v30 }
  0xbb   : > { %1564 = vmatpush1.bf16.msra.mxu0 %v2475_v30  ;;  %2168 = vmatprep.subr.bf16.mxu1 %v2480_v31 }
  0xbc   : > { %1565 = vmatprep.subr.bf16.mxu0 %v2480_v31  ;;  %1409 = vmatprep.mubr.bf16.mxu1 %v2481_v32 }
  0xbd   : > { %1522 = vmatprep.mubr.bf16.mxu0 %v2483_v33 }
  0xbe   : > { %2184 = vmatpush1.bf16.msra.mxu1 %v2478_v34 }
  0xbf   : > { %1566 = vmatpush1.bf16.msra.mxu0 %v2478_v34  ;;  %2169 = vmatprep.subr.bf16.mxu1 %v2489_v35 }
  0xc0   : > { %1567 = vmatprep.subr.bf16.mxu0 %v2489_v35 }
  0xc1   : > { %1410 = vmatmul.mubr.bf16.gmra.mrb[24].mxu1 %v2485_v36 }
  0xc2   : > { %1523 = vmatmul.mubr.bf16.gmra.mrb[24].mxu0 %v2486_v37  ;;  %2185 = vmatpush1.bf16.msra.mxu1 %v2487_v38 }
  0xc3   : > { %1568 = vmatpush1.bf16.msra.mxu0 %v2487_v38  ;;  %2170 = vmatprep.subr.bf16.mxu1 %v2492_v39 }
  0xc4   : > { %1569 = vmatprep.subr.bf16.mxu0 %v2492_v39  ;;  %1419 = vmatprep.mubr.bf16.mxu1 %v2493_v40 }
  0xc5   : > { %1532 = vmatprep.mubr.bf16.mxu0 %v2495_v41 }
  0xc6   : > { %2186 = vmatpush1.bf16.msra.mxu1 %v2490_v42 }
  0xc7   : > { %1570 = vmatpush1.bf16.msra.mxu0 %v2490_v42  ;;  %2171 = vmatprep.subr.bf16.mxu1 %v2501_v43 }
  0xc8   : > { %1571 = vmatprep.subr.bf16.mxu0 %v2501_v43 }
  0xc9   : > { %1420 = vmatmul.mubr.bf16.gmra.mrb[28].mxu1 %v2497_v44 }
  0xca   : > { %1533 = vmatmul.mubr.bf16.gmra.mrb[28].mxu0 %v2498_v45  ;;  %2187 = vmatpush1.bf16.msra.mxu1 %v2499_v46 }
  0xcb   : > { %1572 = vmatpush1.bf16.msra.mxu0 %v2499_v46  ;;  %2172 = vmatprep.subr.bf16.mxu1 %v2504_v47 }
  0xcc   : > { %1573 = vmatprep.subr.bf16.mxu0 %v2504_v47  ;;  %1575 = vmatprep.mubr.bf16.mxu0 %v2507_v48 }
  0xcd   : > { %1615 = vmatprep.mubr.bf16.mxu1 %v2510_v49 }
  0xce   : > { %2188 = vmatpush1.bf16.msra.mxu1 %v2502_v50 }
  0xcf   : > { %1574 = vmatpush1.bf16.msra.mxu0 %v2502_v50 }
  0xd1   : > { %1616 = vmatmul.mubr.bf16.vlgmr.msra.gmra.mrb[32].mxu1 %v2508_v52 }
  0xd2   : > { %1576 = vmatmul.mubr.bf16.vlgmr.msra.gmra.mrb[0].mxu0 %v2505_v51  ;;  %1625 = vmatprep.mubr.bf16.mxu1 %v2513_v54 }
  0xd3   : > { %1585 = vmatprep.mubr.bf16.mxu0 %v2511_v53 }
  0xd9   : > { %1626 = vmatmul.mubr.bf16.gmra.mrb[36].mxu1 %v2516_v56 }
  0xda   : > { %1586 = vmatmul.mubr.bf16.gmra.mrb[4].mxu0 %v2515_v55  ;;  %1635 = vmatprep.mubr.bf16.mxu1 %v2519_v58 }
  0xdb   : > { %1595 = vmatprep.mubr.bf16.mxu0 %v2517_v57 }
  0xe1   : > { %1636 = vmatmul.mubr.bf16.gmra.mrb[40].mxu1 %v2522_v60 }
  0xe2   : > { %1596 = vmatmul.mubr.bf16.gmra.mrb[8].mxu0 %v2521_v59  ;;  %1645 = vmatprep.mubr.bf16.mxu1 %v2525_v62 }
  0xe3   : > { %1605 = vmatprep.mubr.bf16.mxu0 %v2523_v61 }
  0xe9   : > { %1646 = vmatmul.mubr.bf16.gmra.mrb[44].mxu1 %v2528_v0 }
  0xea   : > { %1606 = vmatmul.mubr.bf16.gmra.mrb[12].mxu0 %v2527_v63 }
 0x164   : > { %v2928_v1 = vpop.f32.mrb[0].mxu1 }
 0x165   : > { %v2930_v2 = vpop.f32.mrb[1].mxu1 }
 0x166   : > { %v2932_v3 = vpop.f32.mrb[2].mxu1 }
 0x167   : > { %v2934_v4 = vpop.f32.mrb[3].mxu1 }
 0x16c   : > { %v2936_v5 = vpop.f32.mrb[4].mxu1 }
 0x16d   : > { %v2938_v6 = vpop.f32.mrb[5].mxu1 }
 0x16e   : > { %v2940_v7 = vpop.f32.mrb[6].mxu1 }
 0x16f   : > { %v2942_v8 = vpop.f32.mrb[7].mxu1 }
 0x174   : > { %v2944_v9 = vpop.f32.mrb[8].mxu1 }
 0x175   : > { %v2946_v10 = vpop.f32.mrb[9].mxu1 }
 0x176   : > { %v2948_v11 = vpop.f32.mrb[10].mxu1 }
 0x177   : > { %v2950_v12 = vpop.f32.mrb[11].mxu1 }
 0x17c   : > { %v2952_v13 = vpop.f32.mrb[12].mxu1 }
 0x17d   : > { %v2954_v14 = vpop.f32.mrb[13].mxu1 }
 0x17e   : > { %v2956_v15 = vpop.f32.mrb[14].mxu1 }
 0x17f   : > { %v2958_v16 = vpop.f32.mrb[15].mxu1 }
 0x184   : > { %v1391_v17 = vpop.f32.mrb[16].mxu1 }
 0x185   : > { %v1504_v18 = vpop.f32.mrb[16].mxu0  ;;  %v1393_v20 = vpop.f32.mrb[17].mxu1 }
 0x186   : > { %v1505_v19 = vadd.f32 %v1504_v18, %v1391_v17  ;;  %v1506_v21 = vpop.f32.mrb[17].mxu0  ;;  %v1395_v23 = vpop.f32.mrb[18].mxu1  ;;  %v421_v17 = vld [vmem:[#allocation2] sm:$0xff] }
 0x187   : > { %v1507_v22 = vadd.f32 %v1506_v21, %v1393_v20  ;;  %v1508_v24 = vpop.f32.mrb[18].mxu0  ;;  %v1397_v26 = vpop.f32.mrb[19].mxu1  ;;  %v437_v20 = vld [vmem:[#allocation2 + $0x80] sm:$0xff] }
 0x188   : > { %v1509_v25 = vadd.f32 %v1508_v24, %v1395_v23  ;;  %v1510_v27 = vpop.f32.mrb[19].mxu0 }
 0x189   : > { %v2960_v28 = vadd.f32 %v1510_v27, %v1397_v26  ;;  %v422_v26 = vld [vmem:[#allocation2 + $0x8] sm:$0xff] }
 0x18c   : > { %v1401_v29 = vpop.f32.mrb[20].mxu1 }
 0x18d   : > { %v1514_v30 = vpop.f32.mrb[20].mxu0  ;;  %v1403_v32 = vpop.f32.mrb[21].mxu1 }
 0x18e   : > { %v2962_v31 = vadd.f32 %v1514_v30, %v1401_v29  ;;  %v1516_v33 = vpop.f32.mrb[21].mxu0  ;;  %v1405_v35 = vpop.f32.mrb[22].mxu1  ;;  %v438_v29 = vld [vmem:[#allocation2 + $0x88] sm:$0xff] }
 0x18f   : > { %v2964_v34 = vadd.f32 %v1516_v33, %v1403_v32  ;;  %v1518_v36 = vpop.f32.mrb[22].mxu0  ;;  %v1407_v38 = vpop.f32.mrb[23].mxu1 }
 0x190   : > { %v2966_v37 = vadd.f32 %v1518_v36, %v1405_v35  ;;  %v1520_v39 = vpop.f32.mrb[23].mxu0  ;;  %v423_v35 = vld [vmem:[#allocation2 + $0x10] sm:$0xff] }
 0x191   : > { %v2968_v40 = vadd.f32 %v1520_v39, %v1407_v38  ;;  %v439_v38 = vld [vmem:[#allocation2 + $0x90] sm:$0xff] }
 0x194   : > { %v1411_v41 = vpop.f32.mrb[24].mxu1 }
 0x195   : > { %v1524_v42 = vpop.f32.mrb[24].mxu0  ;;  %v1413_v44 = vpop.f32.mrb[25].mxu1 }
 0x196   : > { %v2970_v43 = vadd.f32 %v1524_v42, %v1411_v41  ;;  %v1526_v45 = vpop.f32.mrb[25].mxu0  ;;  %v1415_v47 = vpop.f32.mrb[26].mxu1 }
 0x197   : > { %v2972_v46 = vadd.f32 %v1526_v45, %v1413_v44  ;;  %v1528_v48 = vpop.f32.mrb[26].mxu0  ;;  %v1417_v50 = vpop.f32.mrb[27].mxu1 }
 0x198   : > { %v2974_v49 = vadd.f32 %v1528_v48, %v1415_v47  ;;  %v1530_v51 = vpop.f32.mrb[27].mxu0  ;;  %v424_v47 = vld [vmem:[#allocation2 + $0x18] sm:$0xff] }
 0x199   : > { %v2976_v52 = vadd.f32 %v1530_v51, %v1417_v50 }
 0x19c   : > { %v1421_v53 = vpop.f32.mrb[28].mxu1 }
 0x19d   : > { %v1534_v54 = vpop.f32.mrb[28].mxu0  ;;  %v1423_v56 = vpop.f32.mrb[29].mxu1 }
 0x19e   : > { %v2978_v55 = vadd.f32 %v1534_v54, %v1421_v53  ;;  %v1536_v57 = vpop.f32.mrb[29].mxu0  ;;  %v1425_v59 = vpop.f32.mrb[30].mxu1 }
 0x19f   : > { %v2980_v58 = vadd.f32 %v1536_v57, %v1423_v56  ;;  %v1538_v60 = vpop.f32.mrb[30].mxu0  ;;  %v1427_v62 = vpop.f32.mrb[31].mxu1 }
 0x1a0   : > { %v2982_v61 = vadd.f32 %v1538_v60, %v1425_v59  ;;  %v1540_v63 = vpop.f32.mrb[31].mxu0  ;;  %v441_v59 = vld [vmem:[#allocation2 + $0xa0] sm:$0xff] }
 0x1a1   : > { %v2984_v0 = vadd.f32 %v1540_v63, %v1427_v62  ;;  %v426_v62 = vld [vmem:[#allocation2 + $0x28] sm:$0xff] }
 0x1a4   : > { %v1617_v21 = vpop.f32.mrb[32].mxu1 }
 0x1a5   : > { %v1577_v18 = vpop.f32.mrb[0].mxu0  ;;  %v1618_v24 = vadd.f32 %v1617_v21, %v1505_v19  ;;  %v1619_v30 = vpop.f32.mrb[33].mxu1 }
 0x1a6   : > { %v2189_v23 = vadd.f32 %v1577_v18, %v2928_v1  ;;  %v1579_v27 = vpop.f32.mrb[1].mxu0  ;;  %v1620_v33 = vadd.f32 %v1619_v30, %v1507_v22  ;;  %v1621_v39 = vpop.f32.mrb[34].mxu1  ;;  %v440_v1 = vld [vmem:[#allocation2 + $0x98] sm:$0xff] }
 0x1a7   : > { %v2190_v32 = vadd.f32 %v1579_v27, %v2930_v2  ;;  %v1581_v36 = vpop.f32.mrb[2].mxu0  ;;  %v1672_v42 = vadd.f32 %v1618_v24, %v437_v20  ;;  %v1622_v45 = vadd.f32 %v1621_v39, %v1509_v25  ;;  %v1623_v19 = vpop.f32.mrb[35].mxu1 }
 0x1a8   : > { %v1656_v41 = vadd.f32 %v2189_v23, %v421_v17  ;;  %v2191_v44 = vadd.f32 %v1581_v36, %v2932_v3  ;;  %v1583_v48 = vpop.f32.mrb[3].mxu0  ;;  %v1673_v51 = vadd.f32 %v1620_v33, %v438_v29  ;;  %v1624_v2 = vadd.f32 %v1623_v19, %v2960_v28  ;;  %v425_v3 = vld [vmem:[#allocation2 + $0x20] sm:$0xff]  ;;  %v442_v17 = vld [vmem:[#allocation2 + $0xa8] sm:$0xff]  ;;  %v427_v23 = vld [vmem:[#allocation2 + $0x30] sm:$0xff] }
 0x1a9   : > { %v1657_v50 = vadd.f32 %v2190_v32, %v422_v26  ;;  %v2192_v53 = vadd.f32 %v1583_v48, %v2934_v4  ;;  %1704 = vst [vmem:[#allocation2 + $0x80] sm:$0xff] %v1672_v42  ;;  %v1674_v54 = vadd.f32 %v1622_v45, %v439_v38  ;;  %v443_v26 = vld [vmem:[#allocation2 + $0xb0] sm:$0xff]  ;;  %v428_v33 = vld [vmem:[#allocation2 + $0x38] sm:$0xff] }
 0x1aa   : > { %1688 = vst [vmem:[#allocation2] sm:$0xff] %v1656_v41  ;;  %v1658_v22 = vadd.f32 %v2191_v44, %v423_v35  ;;  %1705 = vst [vmem:[#allocation2 + $0x88] sm:$0xff] %v1673_v51  ;;  %v1675_v57 = vadd.f32 %v1624_v2, %v440_v1  ;;  %v444_v35 = vld [vmem:[#allocation2 + $0xb8] sm:$0xff]  ;;  %v430_v1 = vld [vmem:[#allocation2 + $0x48] sm:$0xff] }
 0x1ab   : > { %1689 = vst [vmem:[#allocation2 + $0x8] sm:$0xff] %v1657_v50  ;;  %v1659_v56 = vadd.f32 %v2192_v53, %v424_v47  ;;  %1706 = vst [vmem:[#allocation2 + $0x90] sm:$0xff] %v1674_v54  ;;  %v445_v47 = vld [vmem:[#allocation2 + $0xc0] sm:$0xff]  ;;  %v446_v50 = vld [vmem:[#allocation2 + $0xc8] sm:$0xff] }
 0x1ac   : > { %1690 = vst [vmem:[#allocation2 + $0x10] sm:$0xff] %v1658_v22  ;;  %1707 = vst [vmem:[#allocation2 + $0x98] sm:$0xff] %v1675_v57  ;;  %v1627_v60 = vpop.f32.mrb[36].mxu1  ;;  %v431_v22 = vld [vmem:[#allocation2 + $0x50] sm:$0xff] }
 0x1ad   : > { %1691 = vst [vmem:[#allocation2 + $0x18] sm:$0xff] %v1659_v56  ;;  %v1587_v25 = vpop.f32.mrb[4].mxu0  ;;  %v1628_v28 = vadd.f32 %v1627_v60, %v2962_v31  ;;  %v1629_v18 = vpop.f32.mrb[37].mxu1  ;;  %v447_v56 = vld [vmem:[#allocation2 + $0xd0] sm:$0xff]  ;;  %v432_v60 = vld [vmem:[#allocation2 + $0x58] sm:$0xff] }
 0x1ae   : > { %v2193_v4 = vadd.f32 %v1587_v25, %v2936_v5  ;;  %v1589_v63 = vpop.f32.mrb[5].mxu0  ;;  %v1630_v21 = vadd.f32 %v1629_v18, %v2964_v34  ;;  %v1631_v27 = vpop.f32.mrb[38].mxu1 }
 0x1af   : > { %v2194_v20 = vadd.f32 %v1589_v63, %v2938_v6  ;;  %v1591_v24 = vpop.f32.mrb[6].mxu0  ;;  %v1676_v30 = vadd.f32 %v1628_v28, %v441_v59  ;;  %v1632_v5 = vadd.f32 %v1631_v27, %v2966_v37  ;;  %v1633_v36 = vpop.f32.mrb[39].mxu1  ;;  %v429_v37 = vld [vmem:[#allocation2 + $0x40] sm:$0xff] }
 0x1b0   : > { %v1660_v29 = vadd.f32 %v2193_v4, %v425_v3  ;;  %v2195_v32 = vadd.f32 %v1591_v24, %v2940_v7  ;;  %v1593_v31 = vpop.f32.mrb[7].mxu0  ;;  %v1677_v39 = vadd.f32 %v1630_v21, %v442_v17  ;;  %v1634_v34 = vadd.f32 %v1633_v36, %v2968_v40  ;;  %v448_v4 = vld [vmem:[#allocation2 + $0xd8] sm:$0xff] }
 0x1b1   : > { %v1661_v38 = vadd.f32 %v2194_v20, %v426_v62  ;;  %v2196_v6 = vadd.f32 %v1593_v31, %v2942_v8  ;;  %1708 = vst [vmem:[#allocation2 + $0xa0] sm:$0xff] %v1676_v30  ;;  %v1678_v42 = vadd.f32 %v1632_v5, %v443_v26  ;;  %v434_v26 = vld [vmem:[#allocation2 + $0x68] sm:$0xff] }
 0x1b2   : > { %1692 = vst [vmem:[#allocation2 + $0x20] sm:$0xff] %v1660_v29  ;;  %v1662_v41 = vadd.f32 %v2195_v32, %v427_v23  ;;  %1709 = vst [vmem:[#allocation2 + $0xa8] sm:$0xff] %v1677_v39  ;;  %v1679_v7 = vadd.f32 %v1634_v34, %v444_v35  ;;  %v449_v23 = vld [vmem:[#allocation2 + $0xe0] sm:$0xff]  ;;  %v450_v29 = vld [vmem:[#allocation2 + $0xe8] sm:$0xff] }
 0x1b3   : > { %1693 = vst [vmem:[#allocation2 + $0x28] sm:$0xff] %v1661_v38  ;;  %v1663_v44 = vadd.f32 %v2196_v6, %v428_v33  ;;  %1710 = vst [vmem:[#allocation2 + $0xb0] sm:$0xff] %v1678_v42  ;;  %v435_v33 = vld [vmem:[#allocation2 + $0x70] sm:$0xff]  ;;  %v436_v34 = vld [vmem:[#allocation2 + $0x78] sm:$0xff] }
 0x1b4   : > { %1694 = vst [vmem:[#allocation2 + $0x30] sm:$0xff] %v1662_v41  ;;  %1711 = vst [vmem:[#allocation2 + $0xb8] sm:$0xff] %v1679_v7  ;;  %v1637_v48 = vpop.f32.mrb[40].mxu1  ;;  %v451_v35 = vld [vmem:[#allocation2 + $0xf0] sm:$0xff]  ;;  %v452_v41 = vld [vmem:[#allocation2 + $0xf8] sm:$0xff] }
 0x1b5   : > { %1695 = vst [vmem:[#allocation2 + $0x38] sm:$0xff] %v1663_v44  ;;  %v1597_v45 = vpop.f32.mrb[8].mxu0  ;;  %v1638_v40 = vadd.f32 %v1637_v48, %v2970_v43  ;;  %v1639_v51 = vpop.f32.mrb[41].mxu1 }
 0x1b6   : > { %v2197_v8 = vadd.f32 %v1597_v45, %v2944_v9  ;;  %v1599_v19 = vpop.f32.mrb[9].mxu0  ;;  %v1640_v2 = vadd.f32 %v1639_v51, %v2972_v46  ;;  %v1641_v57 = vpop.f32.mrb[42].mxu1 }
 0x1b7   : > { %v2198_v53 = vadd.f32 %v1599_v19, %v2946_v10  ;;  %v1601_v54 = vpop.f32.mrb[10].mxu0  ;;  %v1680_v25 = vadd.f32 %v1638_v40, %v445_v47  ;;  %v1642_v9 = vadd.f32 %v1641_v57, %v2974_v49  ;;  %v1643_v28 = vpop.f32.mrb[43].mxu1  ;;  %v433_v49 = vld [vmem:[#allocation2 + $0x60] sm:$0xff]  ;;  %v1725_v40 = vld [vmem:[#allocation2 + $0x8] sm:$0xff] (!%p2152_p13)  ;;  %v1726_v19 = vld [vmem:[#allocation2 + $0x10] sm:$0xff] (!%p2152_p13) }
 0x1b8   : > { %v1664_v3 = vadd.f32 %v2197_v8, %v429_v37  ;;  %v2199_v59 = vadd.f32 %v1601_v54, %v2948_v11  ;;  %v1603_v43 = vpop.f32.mrb[11].mxu0  ;;  %v1681_v63 = vadd.f32 %v1640_v2, %v446_v50  ;;  %v1644_v46 = vadd.f32 %v1643_v28, %v2976_v52  ;;  %v1727_v50 = vld [vmem:[#allocation2 + $0x18] sm:$0xff] (!%p2152_p13) }
 0x1b9   : > { %v1665_v62 = vadd.f32 %v2198_v53, %v430_v1  ;;  %v2200_v10 = vadd.f32 %v1603_v43, %v2950_v12  ;;  %1712 = vst [vmem:[#allocation2 + $0xc0] sm:$0xff] %v1680_v25  ;;  %v1682_v18 = vadd.f32 %v1642_v9, %v447_v56  ;;  %v1728_v51 = vld [vmem:[#allocation2 + $0x20] sm:$0xff] (!%p2152_p13) }
 0x1ba   : > { %1696 = vst [vmem:[#allocation2 + $0x40] sm:$0xff] %v1664_v3  ;;  %v1666_v17 = vadd.f32 %v2199_v59, %v431_v22  ;;  %1713 = vst [vmem:[#allocation2 + $0xc8] sm:$0xff] %v1681_v63  ;;  %v1683_v11 = vadd.f32 %v1644_v46, %v448_v4  ;;  %v1729_v22 = vld [vmem:[#allocation2 + $0x28] sm:$0xff] (!%p2152_p13) }
 0x1bb   : > { %1697 = vst [vmem:[#allocation2 + $0x48] sm:$0xff] %v1665_v62  ;;  %v1667_v20 = vadd.f32 %v2200_v10, %v432_v60  ;;  %1714 = vst [vmem:[#allocation2 + $0xd0] sm:$0xff] %v1682_v18  ;;  %v1730_v54 = vld [vmem:[#allocation2 + $0x30] sm:$0xff] (!%p2152_p13) }
 0x1bc   : > { %1698 = vst [vmem:[#allocation2 + $0x50] sm:$0xff] %v1666_v17  ;;  %1715 = vst [vmem:[#allocation2 + $0xd8] sm:$0xff] %v1683_v11  ;;  %v1647_v24 = vpop.f32.mrb[44].mxu1  ;;  %v1731_v56 = vld [vmem:[#allocation2 + $0x38] sm:$0xff] (!%p2152_p13) }
 0x1bd   : > { %1699 = vst [vmem:[#allocation2 + $0x58] sm:$0xff] %v1667_v20  ;;  %v1607_v21 = vpop.f32.mrb[12].mxu0  ;;  %v1648_v52 = vadd.f32 %v1647_v24, %v2978_v55  ;;  %v1649_v30 = vpop.f32.mrb[45].mxu1 }
 0x1be   : > { %v2201_v12 = vadd.f32 %v1607_v21, %v2952_v13  ;;  %v1609_v27 = vpop.f32.mrb[13].mxu0  ;;  %v1650_v5 = vadd.f32 %v1649_v30, %v2980_v58  ;;  %v1651_v36 = vpop.f32.mrb[46].mxu1 }
 0x1bf   : > { %v2202_v32 = vadd.f32 %v1609_v27, %v2954_v14  ;;  %v1611_v31 = vpop.f32.mrb[14].mxu0  ;;  %v1684_v39 = vadd.f32 %v1648_v52, %v449_v23  ;;  %v1652_v13 = vadd.f32 %v1651_v36, %v2982_v61  ;;  %v1653_v42 = vpop.f32.mrb[47].mxu1  ;;  %1723 = sbr.rel (%p2152_p13) target bundleno = 476 (0x1dc), region = 63  ;;  %v1758_v61 = vlaneseq (!%p2152_p13) }
 0x1c0   : > { %v1668_v38 = vadd.f32 %v2201_v12, %v433_v49  ;;  %v2203_v6 = vadd.f32 %v1611_v31, %v2956_v15  ;;  %v1613_v55 = vpop.f32.mrb[15].mxu0  ;;  %v1685_v7 = vadd.f32 %v1650_v5, %v450_v29  ;;  %v1654_v58 = vadd.f32 %v1653_v42, %v2984_v0  ;;  %v1724_v0 = vld [vmem:[#allocation2] sm:$0xff] (!%p2152_p13)  ;;  %v1742_v31 = vld [vmem:[#allocation2 + $0x90] sm:$0xff] (!%p2152_p13) }
 0x1c1   : > { %v1669_v44 = vadd.f32 %v2202_v32, %v434_v26  ;;  %v2204_v14 = vadd.f32 %v1613_v55, %v2958_v16  ;;  %1716 = vst [vmem:[#allocation2 + $0xe0] sm:$0xff] %v1684_v39  ;;  %v1686_v45 = vadd.f32 %v1652_v13, %v451_v35  ;;  %v1759_v48 = vshrl.u32 (!%p2152_p13), %v1758_v61, 7  ;;  %v1756_v16 = vld [vmem:[%s3110_s2] sm:$0x3] (!%p2152_p13) }
 0x1c2   : > { %1700 = vst [vmem:[#allocation2 + $0x60] sm:$0xff] %v1668_v38  ;;  %v1670_v37 = vadd.f32 %v2203_v6, %v435_v33  ;;  %1717 = vst [vmem:[#allocation2 + $0xe8] sm:$0xff] %v1685_v7  ;;  %v1687_v15 = vadd.f32 %v1654_v58, %v452_v41  ;;  %v1732_v9 = vld [vmem:[#allocation2 + $0x40] sm:$0xff] (!%p2152_p13)  ;;  %v1733_v60 = vld [vmem:[#allocation2 + $0x48] sm:$0xff] (!%p2152_p13) }
 0x1c3   : > { %1701 = vst [vmem:[#allocation2 + $0x68] sm:$0xff] %v1669_v44  ;;  %v1671_v47 = vadd.f32 %v2204_v14, %v436_v34  ;;  %1718 = vst [vmem:[#allocation2 + $0xf0] sm:$0xff] %v1686_v45  ;;  %v1760_v8 = vsub.s32 (!%p2152_p13), 0, %v1759_v48  ;;  %v1764_v1 = vsub.s32 (!%p2152_p13), 1, %v1759_v48  ;;  %v1734_v43 = vld [vmem:[#allocation2 + $0x50] sm:$0xff] (!%p2152_p13)  ;;  %v1740_v5 = vld [vmem:[#allocation2 + $0x80] sm:$0xff] (!%p2152_p13) }
 0x1c4   : > { %1702 = vst [vmem:[#allocation2 + $0x70] sm:$0xff] %v1670_v37  ;;  %1719 = vst [vmem:[#allocation2 + $0xf8] sm:$0xff] %v1687_v15  ;;  %v1735_v10 = vld [vmem:[#allocation2 + $0x58] sm:$0xff] (!%p2152_p13)  ;;  %v1741_v33 = vld [vmem:[#allocation2 + $0x88] sm:$0xff] (!%p2152_p13) }
 0x1c5   : > { %1703 = vst [vmem:[#allocation2 + $0x78] sm:$0xff] %v1671_v47  ;;  %v3019_v53 = vrot.slane (!%p2152_p13), %v1756_v16, %v1760_v8  ;;  %v3021_v2 = vrot.slane (!%p2152_p13), %v1756_v16, %v1764_v1  ;;  %v1743_v6 = vld [vmem:[#allocation2 + $0x98] sm:$0xff] (!%p2152_p13)  ;;  %v1744_v13 = vld [vmem:[#allocation2 + $0xa0] sm:$0xff] (!%p2152_p13)  ;;  %v1745_v34 = vld [vmem:[#allocation2 + $0xa8] sm:$0xff] (!%p2152_p13) }
 0x1c6   : > { %v1746_v7 = vld [vmem:[#allocation2 + $0xb0] sm:$0xff]  ;;  %v1747_v14 = vld [vmem:[#allocation2 + $0xb8] sm:$0xff]  ;;  %v1749_v8 = vld [vmem:[#allocation2 + $0xc8] sm:$0xff] }
 0x1c7   : > { %v1768_v57 = vadd.f32 %v3019_v53, %v1724_v0  ;;  %v1769_v3 = vadd.f32 %v3021_v2, %v1725_v40  ;;  %v1770_v25 = vadd.f32 %v3019_v53, %v1726_v19  ;;  %v1771_v59 = vadd.f32 %v3021_v2, %v1727_v50  ;;  %v1748_v0 = vld [vmem:[#allocation2 + $0xc0] sm:$0xff]  ;;  %v1750_v40 = vld [vmem:[#allocation2 + $0xd0] sm:$0xff] }
 0x1c8   : > { %v1772_v4 = vadd.f32 %v3019_v53, %v1728_v51  ;;  %v1773_v28 = vadd.f32 %v3021_v2, %v1729_v22  ;;  %v1774_v62 = vadd.f32 %v3019_v53, %v1730_v54  ;;  %v1775_v63 = vadd.f32 %v3021_v2, %v1731_v56  ;;  %v1751_v22 = vld [vmem:[#allocation2 + $0xd8] sm:$0xff]  ;;  %v1752_v54 = vld [vmem:[#allocation2 + $0xe0] sm:$0xff] }
 0x1c9   : > { %v1736_v46 = vld [vmem:[#allocation2 + $0x60] sm:$0xff]  ;;  %v1800_v18 = vmax.f32 %v1768_v57, 0.0  ;;  %v1801_v20 = vmax.f32 %v1769_v3, 0.0  ;;  %v1802_v11 = vmax.f32 %v1770_v25, 0.0  ;;  %v1803_v49 = vmax.f32 %v1771_v59, 0.0  ;;  %v1753_v56 = vld [vmem:[#allocation2 + $0xe8] sm:$0xff] }
 0x1ca   : > { %v1737_v17 = vld [vmem:[#allocation2 + $0x68] sm:$0xff]  ;;  %v1804_v24 = vmax.f32 %v1772_v4, 0.0  ;;  %v1805_v12 = vmax.f32 %v1773_v28, 0.0  ;;  %v1806_v52 = vmax.f32 %v1774_v62, 0.0  ;;  %v1807_v26 = vmax.f32 %v1775_v63, 0.0 }
 0x1cb   : > { %v1738_v21 = vld [vmem:[#allocation2 + $0x70] sm:$0xff]  ;;  %1832 = vst [vmem:[%s2779_s30] sm:$0xff] %v1800_v18  ;;  %1833 = vst [vmem:[%s2779_s30 + $0x8] sm:$0xff] %v1801_v20  ;;  %v1776_v27 = vadd.f32 %v3019_v53, %v1732_v9  ;;  %v1777_v29 = vadd.f32 %v3021_v2, %v1733_v60  ;;  %v1778_v30 = vadd.f32 %v3019_v53, %v1734_v43  ;;  %v1755_v60 = vld [vmem:[#allocation2 + $0xf8] sm:$0xff] }
 0x1cc   : > { %v1739_v23 = vld [vmem:[#allocation2 + $0x78] sm:$0xff]  ;;  %1834 = vst [vmem:[%s2779_s30 + $0x10] sm:$0xff] %v1802_v11  ;;  %1835 = vst [vmem:[%s2779_s30 + $0x18] sm:$0xff] %v1803_v49  ;;  %v1779_v32 = vadd.f32 %v3021_v2, %v1735_v10  ;;  %v1780_v35 = vadd.f32 %v3019_v53, %v1736_v46  ;;  %v1781_v36 = vadd.f32 %v3021_v2, %v1737_v17  ;;  %v1754_v9 = vld [vmem:[#allocation2 + $0xf0] sm:$0xff] }
 0x1cd   : > { %1836 = vst [vmem:[%s2779_s30 + $0x20] sm:$0xff] %v1804_v24  ;;  %1837 = vst [vmem:[%s2779_s30 + $0x28] sm:$0xff] %v1805_v12  ;;  %v1782_v38 = vadd.f32 %v3019_v53, %v1738_v21  ;;  %v1783_v39 = vadd.f32 %v3021_v2, %v1739_v23  ;;  %v1808_v55 = vmax.f32 %v1776_v27, 0.0  ;;  %v1809_v41 = vmax.f32 %v1777_v29, 0.0 }
 0x1ce   : > { %1838 = vst [vmem:[%s2779_s30 + $0x30] sm:$0xff] %v1806_v52  ;;  %1839 = vst [vmem:[%s2779_s30 + $0x38] sm:$0xff] %v1807_v26  ;;  %v1810_v42 = vmax.f32 %v1778_v30, 0.0  ;;  %v1811_v44 = vmax.f32 %v1779_v32, 0.0  ;;  %v1812_v58 = vmax.f32 %v1780_v35, 0.0  ;;  %v1813_v37 = vmax.f32 %v1781_v36, 0.0 }
 0x1cf   : > { %v1814_v45 = vmax.f32 %v1782_v38, 0.0  ;;  %v1815_v47 = vmax.f32 %v1783_v39, 0.0  ;;  %1840 = vst [vmem:[%s2779_s30 + $0x40] sm:$0xff] %v1808_v55  ;;  %1841 = vst [vmem:[%s2779_s30 + $0x48] sm:$0xff] %v1809_v41  ;;  %v1784_v15 = vadd.f32 %v3019_v53, %v1740_v5  ;;  %v1785_v61 = vadd.f32 %v3021_v2, %v1741_v33 }
 0x1d0   : > { %1842 = vst [vmem:[%s2779_s30 + $0x50] sm:$0xff] %v1810_v42  ;;  %1843 = vst [vmem:[%s2779_s30 + $0x58] sm:$0xff] %v1811_v44  ;;  %v1786_v48 = vadd.f32 %v3019_v53, %v1742_v31  ;;  %v1787_v16 = vadd.f32 %v3021_v2, %v1743_v6  ;;  %v1788_v1 = vadd.f32 %v3019_v53, %v1744_v13 }
 0x1d1   : > { %1844 = vst [vmem:[%s2779_s30 + $0x60] sm:$0xff] %v1812_v58  ;;  %1845 = vst [vmem:[%s2779_s30 + $0x68] sm:$0xff] %v1813_v37  ;;  %v1789_v19 = vadd.f32 %v3021_v2, %v1745_v34  ;;  %v1790_v50 = vadd.f32 %v3019_v53, %v1746_v7  ;;  %v1791_v51 = vadd.f32 %v3021_v2, %v1747_v14  ;;  %v1816_v57 = vmax.f32 %v1784_v15, 0.0 }
 0x1d2   : > { %1846 = vst [vmem:[%s2779_s30 + $0x70] sm:$0xff] %v1814_v45  ;;  %1847 = vst [vmem:[%s2779_s30 + $0x78] sm:$0xff] %v1815_v47  ;;  %v1817_v3 = vmax.f32 %v1785_v61, 0.0  ;;  %v1818_v25 = vmax.f32 %v1786_v48, 0.0  ;;  %v1819_v59 = vmax.f32 %v1787_v16, 0.0  ;;  %v1820_v43 = vmax.f32 %v1788_v1, 0.0 }
 0x1d3   : > { %v1821_v4 = vmax.f32 %v1789_v19, 0.0  ;;  %v1822_v28 = vmax.f32 %v1790_v50, 0.0  ;;  %v1823_v62 = vmax.f32 %v1791_v51, 0.0  ;;  %1848 = vst [vmem:[%s2779_s30 + $0x80] sm:$0xff] %v1816_v57  ;;  %v1792_v63 = vadd.f32 %v3019_v53, %v1748_v0 }
 0x1d4   : > { %1849 = vst [vmem:[%s2779_s30 + $0x88] sm:$0xff] %v1817_v3  ;;  %1850 = vst [vmem:[%s2779_s30 + $0x90] sm:$0xff] %v1818_v25  ;;  %v1793_v10 = vadd.f32 %v3021_v2, %v1749_v8  ;;  %v1794_v46 = vadd.f32 %v3019_v53, %v1750_v40  ;;  %v1795_v17 = vadd.f32 %v3021_v2, %v1751_v22 }
 0x1d5   : > { %1851 = vst [vmem:[%s2779_s30 + $0x98] sm:$0xff] %v1819_v59  ;;  %1852 = vst [vmem:[%s2779_s30 + $0xa0] sm:$0xff] %v1820_v43  ;;  %v1796_v18 = vadd.f32 %v3019_v53, %v1752_v54  ;;  %v1797_v20 = vadd.f32 %v3021_v2, %v1753_v56  ;;  %v1798_v11 = vadd.f32 %v3019_v53, %v1754_v9  ;;  %v1824_v21 = vmax.f32 %v1792_v63, 0.0 }
 0x1d6   : > { %1853 = vst [vmem:[%s2779_s30 + $0xa8] sm:$0xff] %v1821_v4  ;;  %1854 = vst [vmem:[%s2779_s30 + $0xb0] sm:$0xff] %v1822_v28  ;;  %v1799_v49 = vadd.f32 %v3021_v2, %v1755_v60  ;;  %v1825_v23 = vmax.f32 %v1793_v10, 0.0  ;;  %v1826_v24 = vmax.f32 %v1794_v46, 0.0  ;;  %v1827_v12 = vmax.f32 %v1795_v17, 0.0 }
 0x1d7   : > { %1855 = vst [vmem:[%s2779_s30 + $0xb8] sm:$0xff] %v1823_v62  ;;  %v1828_v52 = vmax.f32 %v1796_v18, 0.0  ;;  %v1829_v26 = vmax.f32 %v1797_v20, 0.0  ;;  %v1830_v27 = vmax.f32 %v1798_v11, 0.0  ;;  %1856 = vst [vmem:[%s2779_s30 + $0xc0] sm:$0xff] %v1824_v21 }
 0x1d8   : > { %v1831_v29 = vmax.f32 %v1799_v49, 0.0  ;;  %1857 = vst [vmem:[%s2779_s30 + $0xc8] sm:$0xff] %v1825_v23  ;;  %1858 = vst [vmem:[%s2779_s30 + $0xd0] sm:$0xff] %v1826_v24 }
 0x1d9   : > { %1859 = vst [vmem:[%s2779_s30 + $0xd8] sm:$0xff] %v1827_v12  ;;  %1860 = vst [vmem:[%s2779_s30 + $0xe0] sm:$0xff] %v1828_v52 }
 0x1da   : > { %1861 = vst [vmem:[%s2779_s30 + $0xe8] sm:$0xff] %v1829_v26  ;;  %1862 = vst [vmem:[%s2779_s30 + $0xf0] sm:$0xff] %v1830_v27 }
 0x1db   : > { %1863 = vst [vmem:[%s2779_s30 + $0xf8] sm:$0xff] %v1831_v29 }
 0x1dc PF: > { %s13_s18 = sadd.s32 1, %s2583_s18   ;;  %s3112_s12 = smov %s2563_s13 }
 0x1dd   : > { %p10_p0 = scmp.ge.s32.totalorder %s13_s18, 14   ;;  %s3113_s13 = smov %s2657_s25 }
 0x1de   : > { %s3114_s14 = smov %s2575_s16  ;;  %s3115_s15 = smov %s2579_s17 }
 0x1df   : > { %s3116_s16 = smov %s3119_s19  ;;  %s3117_s17 = smov %s3123_s20 }
 0x1e0   :  { %12 = sbr.rel (!%p10_p0) target bundleno = 4 (0x4), region = 104 }

// kernel: _forward.9
= control target key start
LH: loop header
LB: loop body
LE: loop exit
PB: predicated region body
PF: predicated region fallthrough
CT: control target
= control target key end

     0   :  { %s2169_s12 = smov 0   ;;  %s2171_s13 = smov 0   ;;  %s2526_s0 = inlined_call_operand.vmem [shape: bf16[512,2304], index: 0, kind: input, shape index: {}]   ;;  %s2527_s1 = inlined_call_operand.vmem [shape: bf16[2304,128], index: 1, kind: input, shape index: {}]   ;;  %s2528_s2 = inlined_call_operand.vmem [shape: f32[1,128], index: 2, kind: input, shape index: {}]   ;;  %s2529_s3 = inlined_call_operand.vmem [shape: f32[512,128], index: 3, kind: output, shape index: {}]  }
   0x1   :  { %s2173_s14 = smov 0   ;;  %s2175_s15 = smov 0  }
   0x2   :  { %s2177_s16 = smov 0   ;;  %s2179_s17 = smov 0  }
   0x3   :  { %s2181_s18 = smov 0  }
   0x4 LB: > { %s25_s19 = sadd.s32 1, %s2138_s16  ;;  %s32_s20 = sadd.s32 1, %s2142_s17  ;;  %s2146_s18 = sphi %s2181_s18, %s13_s18   ;;  %s2142_s17 = sphi %s2179_s17, %s2535_s17   ;;  %s2138_s16 = sphi %s2177_s16, %s2534_s16   ;;  %s2134_s15 = sphi %s2175_s15, %s2533_s15   ;;  %s2130_s14 = sphi %s2173_s14, %s2532_s14   ;;  %s2126_s13 = sphi %s2171_s13, %s2531_s13   ;;  %s2122_s12 = sphi %s2169_s12, %s2530_s12  }
   0x5   : > { %p26_p0 = scmp.ge.s32.totalorder %s25_s19, 3  ;;  %p48_p1 = scmp.ne.s32.totalorder %s2126_s13, %s2122_s12 }
   0x6   : > { %p49_p2 = scmp.eq.s32.totalorder %s2146_s18, 0  ;;  %s41_s24 = sadd.s32 1, %s2126_s13 }
   0x7   : > { %s2537_s19 = smov (%p26_p0, %s25_s19), 0  ;;  %s2539_s20 = smov (!%p26_p0, %s32_s20), %s2142_s17 }
   0x8   : > { %p50_p3 = por %p49_p2, %p48_p1  ;;  %p34_p4 = scmp.ge.s32.totalorder %s2539_s20, 4 }
   0x9   : > { %s37_s21 = ssub.s32 %s2138_s16, %s2537_s19  ;;  %p1595_p6 = scmp.ge.s32.totalorder %s2146_s18, 12 }
   0xa   : > { %s2541_s20 = smov (%p34_p4, %s2539_s20), 0 }
   0xb   : > { %s36_s22 = ssub.s32 %s2142_s17, %s2541_s20  ;;  %162 = sbr.rel (%p1595_p6) target bundleno = 51 (0x33), region = 20 }
   0xc   : > { %s38_s23 = sor.u32 %s37_s21, %s36_s22 }
   0xd   : > { %p39_p5 = scmp.eq.s32.totalorder %s38_s23, 0 }
   0xf   : > { %s2220_s25 = scalar_select %p39_p5, %s2126_s13, %s41_s24  }
  0x12   : > { %165 = sbr.rel (!%p50_p3) target bundleno = 51 (0x33), region = 24  ;;  %s167_s26 = sand.u32 (%p50_p3), 1, %s2126_s13  }
  0x13   : > { %s171_s27 = smul.u32 (%p50_p3), 6, %s2138_s16 }
  0x14   : > { %s1912_s28 = smul.u32 (%p50_p3), 384, %s167_s26 }
  0x15   : > { %s1913_s29 = smul.u32 (%p50_p3), 288, %s2142_s17 }
  0x16   : > { %s2234_s8 = scalar_lea.vmem (%p50_p3), [#allocation3], %s1912_s28 }
  0x17   : > { %s173_s30 = sadd.s32 (%p50_p3), %s1913_s29, %s171_s27 }
  0x18   : > { %s1598_s4 = sshll.u32 (%p50_p3), %s173_s30, 2 }
  0x19   : > { %s2229_s7 = scalar_lea.vmem %s2526_s0, %s1598_s4 }
  0x1a   : > { %v188_v0 = vld [vmem:[%s2229_s7] sm:$0xff]  ;;  %v190_v1 = vld [vmem:[%s2229_s7 + $0x8] sm:$0xff]  ;;  %v192_v2 = vld [vmem:[%s2229_s7 + $0x10] sm:$0xff] }
  0x1b   : > { %189 = vst [vmem:[%s2234_s8] sm:$0xff] %v188_v0  ;;  %191 = vst [vmem:[%s2234_s8 + $0x8] sm:$0xff] %v190_v1  ;;  %v194_v3 = vld [vmem:[%s2229_s7 + $0x48] sm:$0xff]  ;;  %v196_v4 = vld [vmem:[%s2229_s7 + $0x50] sm:$0xff] }
  0x1c   : > { %193 = vst [vmem:[%s2234_s8 + $0x10] sm:$0xff] %v192_v2  ;;  %v198_v5 = vld [vmem:[%s2229_s7 + $0x58] sm:$0xff]  ;;  %195 = vst [vmem:[%s2234_s8 + $0x18] sm:$0xff] %v194_v3  ;;  %v200_v6 = vld [vmem:[%s2229_s7 + $0x90] sm:$0xff] }
  0x1d   : > { %197 = vst [vmem:[%s2234_s8 + $0x20] sm:$0xff] %v196_v4  ;;  %199 = vst [vmem:[%s2234_s8 + $0x28] sm:$0xff] %v198_v5  ;;  %v202_v7 = vld [vmem:[%s2229_s7 + $0x98] sm:$0xff]  ;;  %v204_v8 = vld [vmem:[%s2229_s7 + $0xa0] sm:$0xff] }
  0x1e   : > { %201 = vst [vmem:[%s2234_s8 + $0x30] sm:$0xff] %v200_v6  ;;  %203 = vst [vmem:[%s2234_s8 + $0x38] sm:$0xff] %v202_v7  ;;  %v206_v9 = vld [vmem:[%s2229_s7 + $0xd8] sm:$0xff]  ;;  %v208_v10 = vld [vmem:[%s2229_s7 + $0xe0] sm:$0xff] }
  0x1f   : > { %205 = vst [vmem:[%s2234_s8 + $0x40] sm:$0xff] %v204_v8  ;;  %v210_v11 = vld [vmem:[%s2229_s7 + $0xe8] sm:$0xff]  ;;  %207 = vst [vmem:[%s2234_s8 + $0x48] sm:$0xff] %v206_v9  ;;  %v212_v12 = vld [vmem:[%s2229_s7 + $0x120] sm:$0xff] }
  0x20   : > { %209 = vst [vmem:[%s2234_s8 + $0x50] sm:$0xff] %v208_v10  ;;  %211 = vst [vmem:[%s2234_s8 + $0x58] sm:$0xff] %v210_v11  ;;  %v214_v13 = vld [vmem:[%s2229_s7 + $0x128] sm:$0xff]  ;;  %v216_v14 = vld [vmem:[%s2229_s7 + $0x130] sm:$0xff] }
  0x21   : > { %213 = vst [vmem:[%s2234_s8 + $0x60] sm:$0xff] %v212_v12  ;;  %215 = vst [vmem:[%s2234_s8 + $0x68] sm:$0xff] %v214_v13  ;;  %v218_v15 = vld [vmem:[%s2229_s7 + $0x168] sm:$0xff]  ;;  %v220_v16 = vld [vmem:[%s2229_s7 + $0x170] sm:$0xff] }
  0x22   : > { %217 = vst [vmem:[%s2234_s8 + $0x70] sm:$0xff] %v216_v14  ;;  %v222_v17 = vld [vmem:[%s2229_s7 + $0x178] sm:$0xff]  ;;  %219 = vst [vmem:[%s2234_s8 + $0x78] sm:$0xff] %v218_v15  ;;  %v224_v18 = vld [vmem:[%s2229_s7 + $0x1b0] sm:$0xff] }
  0x23   : > { %221 = vst [vmem:[%s2234_s8 + $0x80] sm:$0xff] %v220_v16  ;;  %223 = vst [vmem:[%s2234_s8 + $0x88] sm:$0xff] %v222_v17  ;;  %v226_v19 = vld [vmem:[%s2229_s7 + $0x1b8] sm:$0xff]  ;;  %v228_v20 = vld [vmem:[%s2229_s7 + $0x1c0] sm:$0xff] }
  0x24   : > { %225 = vst [vmem:[%s2234_s8 + $0x90] sm:$0xff] %v224_v18  ;;  %227 = vst [vmem:[%s2234_s8 + $0x98] sm:$0xff] %v226_v19  ;;  %v230_v21 = vld [vmem:[%s2229_s7 + $0x1f8] sm:$0xff]  ;;  %v232_v22 = vld [vmem:[%s2229_s7 + $0x200] sm:$0xff] }
  0x25   : > { %229 = vst [vmem:[%s2234_s8 + $0xa0] sm:$0xff] %v228_v20  ;;  %v234_v23 = vld [vmem:[%s2229_s7 + $0x208] sm:$0xff]  ;;  %231 = vst [vmem:[%s2234_s8 + $0xa8] sm:$0xff] %v230_v21  ;;  %v236_v24 = vld [vmem:[%s2229_s7 + $0x240] sm:$0xff] }
  0x26   : > { %233 = vst [vmem:[%s2234_s8 + $0xb0] sm:$0xff] %v232_v22  ;;  %235 = vst [vmem:[%s2234_s8 + $0xb8] sm:$0xff] %v234_v23  ;;  %v238_v25 = vld [vmem:[%s2229_s7 + $0x248] sm:$0xff]  ;;  %v240_v26 = vld [vmem:[%s2229_s7 + $0x250] sm:$0xff] }
  0x27   : > { %237 = vst [vmem:[%s2234_s8 + $0xc0] sm:$0xff] %v236_v24  ;;  %239 = vst [vmem:[%s2234_s8 + $0xc8] sm:$0xff] %v238_v25  ;;  %v242_v27 = vld [vmem:[%s2229_s7 + $0x288] sm:$0xff]  ;;  %v244_v28 = vld [vmem:[%s2229_s7 + $0x290] sm:$0xff] }
  0x28   : > { %241 = vst [vmem:[%s2234_s8 + $0xd0] sm:$0xff] %v240_v26  ;;  %v246_v29 = vld [vmem:[%s2229_s7 + $0x298] sm:$0xff]  ;;  %243 = vst [vmem:[%s2234_s8 + $0xd8] sm:$0xff] %v242_v27  ;;  %v248_v30 = vld [vmem:[%s2229_s7 + $0x2d0] sm:$0xff] }
  0x29   : > { %245 = vst [vmem:[%s2234_s8 + $0xe0] sm:$0xff] %v244_v28  ;;  %247 = vst [vmem:[%s2234_s8 + $0xe8] sm:$0xff] %v246_v29  ;;  %v250_v31 = vld [vmem:[%s2229_s7 + $0x2d8] sm:$0xff]  ;;  %v252_v32 = vld [vmem:[%s2229_s7 + $0x2e0] sm:$0xff] }
  0x2a   : > { %249 = vst [vmem:[%s2234_s8 + $0xf0] sm:$0xff] %v248_v30  ;;  %251 = vst [vmem:[%s2234_s8 + $0xf8] sm:$0xff] %v250_v31  ;;  %v254_v33 = vld [vmem:[%s2229_s7 + $0x318] sm:$0xff]  ;;  %v256_v34 = vld [vmem:[%s2229_s7 + $0x320] sm:$0xff] }
  0x2b   : > { %253 = vst [vmem:[%s2234_s8 + $0x100] sm:$0xff] %v252_v32  ;;  %v258_v35 = vld [vmem:[%s2229_s7 + $0x328] sm:$0xff]  ;;  %255 = vst [vmem:[%s2234_s8 + $0x108] sm:$0xff] %v254_v33  ;;  %v260_v36 = vld [vmem:[%s2229_s7 + $0x360] sm:$0xff] }
  0x2c   : > { %257 = vst [vmem:[%s2234_s8 + $0x110] sm:$0xff] %v256_v34  ;;  %259 = vst [vmem:[%s2234_s8 + $0x118] sm:$0xff] %v258_v35  ;;  %v262_v37 = vld [vmem:[%s2229_s7 + $0x368] sm:$0xff]  ;;  %v264_v38 = vld [vmem:[%s2229_s7 + $0x370] sm:$0xff] }
  0x2d   : > { %261 = vst [vmem:[%s2234_s8 + $0x120] sm:$0xff] %v260_v36  ;;  %263 = vst [vmem:[%s2234_s8 + $0x128] sm:$0xff] %v262_v37  ;;  %v266_v39 = vld [vmem:[%s2229_s7 + $0x3a8] sm:$0xff]  ;;  %v268_v40 = vld [vmem:[%s2229_s7 + $0x3b0] sm:$0xff] }
  0x2e   : > { %265 = vst [vmem:[%s2234_s8 + $0x130] sm:$0xff] %v264_v38  ;;  %v270_v41 = vld [vmem:[%s2229_s7 + $0x3b8] sm:$0xff]  ;;  %267 = vst [vmem:[%s2234_s8 + $0x138] sm:$0xff] %v266_v39  ;;  %v272_v42 = vld [vmem:[%s2229_s7 + $0x3f0] sm:$0xff] }
  0x2f   : > { %269 = vst [vmem:[%s2234_s8 + $0x140] sm:$0xff] %v268_v40  ;;  %271 = vst [vmem:[%s2234_s8 + $0x148] sm:$0xff] %v270_v41  ;;  %v274_v43 = vld [vmem:[%s2229_s7 + $0x3f8] sm:$0xff]  ;;  %v276_v44 = vld [vmem:[%s2229_s7 + $0x400] sm:$0xff] }
  0x30   : > { %273 = vst [vmem:[%s2234_s8 + $0x150] sm:$0xff] %v272_v42  ;;  %275 = vst [vmem:[%s2234_s8 + $0x158] sm:$0xff] %v274_v43  ;;  %v278_v45 = vld [vmem:[%s2229_s7 + $0x438] sm:$0xff]  ;;  %v280_v46 = vld [vmem:[%s2229_s7 + $0x440] sm:$0xff] }
  0x31   : > { %277 = vst [vmem:[%s2234_s8 + $0x160] sm:$0xff] %v276_v44  ;;  %v282_v47 = vld [vmem:[%s2229_s7 + $0x448] sm:$0xff]  ;;  %279 = vst [vmem:[%s2234_s8 + $0x168] sm:$0xff] %v278_v45 }
  0x32   : > { %281 = vst [vmem:[%s2234_s8 + $0x170] sm:$0xff] %v280_v46  ;;  %283 = vst [vmem:[%s2234_s8 + $0x178] sm:$0xff] %v282_v47 }
  0x33 PF: > { %p1599_p7 = scmp.ge.s32.totalorder %s2146_s18, 1  ;;  %p300_p8 = scmp.lt.s32.totalorder %s2146_s18, 13 }
  0x35   : > { %p301_p9 = pnand %p1599_p7, %p300_p8 }
  0x36   : > { %s307_s9 = sand.u32 (!%p301_p9), 1, %s2122_s12   ;;  %s346_s10 = smul.u32 (!%p301_p9), 96, %s2130_s14 }
  0x37   : > { %304 = sbr.rel (%p301_p9) target bundleno = 429 (0x1ad), region = 51  ;;  %s1601_s21 = sshll.u32 (!%p301_p9), %s2134_s15, 4 }
  0x38   : > { %s1914_s11 = smul.u32 (!%p301_p9), 384, %s307_s9  ;;  %p347_p10 = scmp.lt.s32.totalorder (!%p301_p9), %s346_s10, 287 }
  0x39   : > { %p359_p11 = scmp.lt.s32.totalorder (!%p301_p9), %s1601_s21, 63  ;;  %p1603_p12 = scmp.ne.s32.totalorder (!%p301_p9), %s2130_s14, 0 }
  0x3a   : > { %s2344_s12 = scalar_lea.vmem (!%p301_p9), [#allocation3], %s1914_s11 }
  0x3e   : > { %s2543_s10 = smov (!%p347_p10, %s346_s10), 287  ;;  %s2545_s21 = smov (!%p359_p11, %s1601_s21), 63 }
  0x3f   : > { %s1600_s22 = sshll.u32 %s2543_s10, 2  ;;  %s1602_s27 = sshll.u32 %s2545_s21, 3  ;;  %v2148_v48 = vmov (!%p1603_p12), 0.0  }
  0x40   : > { %s2337_s26 = scalar_lea.vmem %s2527_s1, %s1600_s22  ;;  %s2342_s30 = scalar_lea.vmem %s2529_s3, %s1602_s27  ;;  %372 = vst [vmem:[#allocation2] sm:$0xff] (!%p1603_p12), %v2148_v48  ;;  %373 = vst [vmem:[#allocation2 + $0x8] sm:$0xff] (!%p1603_p12), %v2148_v48 }
  0x41   : > { %371 = sbr.rel (%p1603_p12) target bundleno = 72 (0x48), region = 59  ;;  %374 = vst [vmem:[#allocation2 + $0x10] sm:$0xff] (!%p1603_p12), %v2148_v48  ;;  %375 = vst [vmem:[#allocation2 + $0x18] sm:$0xff] (!%p1603_p12), %v2148_v48 }
  0x42   : > { %376 = vst [vmem:[#allocation2 + $0x20] sm:$0xff] (!%p1603_p12), %v2148_v48  ;;  %377 = vst [vmem:[#allocation2 + $0x28] sm:$0xff] (!%p1603_p12), %v2148_v48 }
  0x43   : > { %378 = vst [vmem:[#allocation2 + $0x30] sm:$0xff] (!%p1603_p12), %v2148_v48  ;;  %379 = vst [vmem:[#allocation2 + $0x38] sm:$0xff] (!%p1603_p12), %v2148_v48 }
  0x44   : > { %380 = vst [vmem:[#allocation2 + $0x40] sm:$0xff] (!%p1603_p12), %v2148_v48  ;;  %381 = vst [vmem:[#allocation2 + $0x48] sm:$0xff] (!%p1603_p12), %v2148_v48 }
  0x45   : > { %382 = vst [vmem:[#allocation2 + $0x50] sm:$0xff] (!%p1603_p12), %v2148_v48  ;;  %383 = vst [vmem:[#allocation2 + $0x58] sm:$0xff] (!%p1603_p12), %v2148_v48 }
  0x46   : > { %384 = vst [vmem:[#allocation2 + $0x60] sm:$0xff] (!%p1603_p12), %v2148_v48  ;;  %385 = vst [vmem:[#allocation2 + $0x68] sm:$0xff] (!%p1603_p12), %v2148_v48 }
  0x47   : > { %386 = vst [vmem:[#allocation2 + $0x70] sm:$0xff] (!%p1603_p12), %v2148_v48  ;;  %387 = vst [vmem:[#allocation2 + $0x78] sm:$0xff] (!%p1603_p12), %v2148_v48 }
  0x48 PF: > { %v1972_v49 = vld [vmem:[%s2337_s26 + $0x40] sm:$0xff]   ;;  %v1974_v51 = vld [vmem:[%s2337_s26 + $0x48] sm:$0xff]   ;;  %v1976_v53 = vld [vmem:[%s2337_s26 + $0x50] sm:$0xff]   ;;  %p1700_p13 = scmp.ne.s32.totalorder %s2130_s14, 2 }
  0x49   : > { %v1973_v50 = vld [vmem:[%s2337_s26] sm:$0xff]   ;;  %1704 = vmatprep.subr.bf16.mxu0 %v1972_v49  ;;  %1896 = vmatprep.subr.bf16.mxu1 %v1972_v49  ;;  %v1975_v52 = vld [vmem:[%s2337_s26 + $0x8] sm:$0xff]   ;;  %v1977_v54 = vld [vmem:[%s2337_s26 + $0x10] sm:$0xff]  }
  0x4a   : > { %1705 = vmatpush3.bf16.msra.mxu0 %v1973_v50  ;;  %1904 = vmatpush3.bf16.msra.mxu1 %v1973_v50  ;;  %v1978_v55 = vld [vmem:[%s2337_s26 + $0x58] sm:$0xff]   ;;  %v1980_v57 = vld [vmem:[%s2337_s26 + $0x60] sm:$0xff]   ;;  %v1982_v59 = vld [vmem:[%s2337_s26 + $0x68] sm:$0xff]  }
  0x4b   : > { %1706 = vmatprep.subr.bf16.mxu0 %v1974_v51  ;;  %1897 = vmatprep.subr.bf16.mxu1 %v1974_v51  ;;  %v1979_v56 = vld [vmem:[%s2337_s26 + $0x18] sm:$0xff]   ;;  %v1981_v58 = vld [vmem:[%s2337_s26 + $0x20] sm:$0xff]   ;;  %v1983_v62 = vld [vmem:[%s2337_s26 + $0x28] sm:$0xff]  }
  0x4c   : > { %v1990_v60 = vld [vmem:[%s2344_s12 + $0x4] ss:$24 sps:$4 sm:$0xff]   ;;  %v1984_v63 = vld [vmem:[%s2337_s26 + $0x70] sm:$0xff]   ;;  %v1988_v3 = vld [vmem:[%s2344_s12] ss:$24 sps:$4 sm:$0xff]  }
  0x4d   : > { %v1993_v61 = vld [vmem:[%s2344_s12 + $0xc4] ss:$24 sps:$4 sm:$0xff]   ;;  %1108 = vmatprep.mubr.bf16.mxu0 %v1990_v60  ;;  %v1985_v0 = vld [vmem:[%s2337_s26 + $0x30] sm:$0xff]   ;;  %v1991_v4 = vld [vmem:[%s2344_s12 + $0xc0] ss:$24 sps:$4 sm:$0xff]  }
  0x4e   : > { %1707 = vmatpush3.bf16.msra.mxu0 %v1975_v52  ;;  %1905 = vmatpush3.bf16.msra.mxu1 %v1975_v52  ;;  %v1986_v1 = vld [vmem:[%s2337_s26 + $0x78] sm:$0xff]   ;;  %v1994_v5 = vld [vmem:[%s2337_s26 + $0xc0] sm:$0xff]   ;;  %v1998_v9 = vld [vmem:[%s2337_s26 + $0xc8] sm:$0xff]  }
  0x4f   : > { %1708 = vmatprep.subr.bf16.mxu0 %v1976_v53  ;;  %1898 = vmatprep.subr.bf16.mxu1 %v1976_v53  ;;  %v1987_v2 = vld [vmem:[%s2337_s26 + $0x38] sm:$0xff]   ;;  %v1995_v6 = vld [vmem:[%s2337_s26 + $0x140] sm:$0xff]   ;;  %v1999_v10 = vld [vmem:[%s2337_s26 + $0x148] sm:$0xff]  }
  0x50   : > { %1140 = vmatprep.mubr.bf16.mxu1 %v1993_v61  ;;  %v1996_v7 = vld [vmem:[%s2337_s26 + $0x80] sm:$0xff]   ;;  %v2002_v11 = vld [vmem:[%s2344_s12 + $0x34] ss:$24 sps:$4 sm:$0xff]   ;;  %v2006_v16 = vld [vmem:[%s2344_s12 + $0x30] ss:$24 sps:$4 sm:$0xff]  }
  0x51   : > { %v1997_v8 = vld [vmem:[%s2337_s26 + $0x100] sm:$0xff]   ;;  %v2000_v12 = vld [vmem:[%s2337_s26 + $0x88] sm:$0xff]   ;;  %v2008_v15 = vld [vmem:[%s2337_s26 + $0xd0] sm:$0xff]  }
  0x52   : > { %1709 = vmatpush3.bf16.msra.mxu0 %v1977_v54  ;;  %1906 = vmatpush3.bf16.msra.mxu1 %v1977_v54  ;;  %v2004_v13 = vld [vmem:[%s2344_s12 + $0xf4] ss:$24 sps:$4 sm:$0xff]   ;;  %v2007_v18 = vld [vmem:[%s2344_s12 + $0xf0] ss:$24 sps:$4 sm:$0xff]   ;;  %v2012_v21 = vld [vmem:[%s2337_s26 + $0xd8] sm:$0xff]  }
  0x53   : > { %1710 = vmatprep.subr.bf16.mxu0 %v1978_v55  ;;  %1899 = vmatprep.subr.bf16.mxu1 %v1978_v55  ;;  %v2001_v14 = vld [vmem:[%s2337_s26 + $0x108] sm:$0xff]   ;;  %v2009_v17 = vld [vmem:[%s2337_s26 + $0x150] sm:$0xff]   ;;  %v2013_v22 = vld [vmem:[%s2337_s26 + $0x158] sm:$0xff]  }
  0x54   : > { %v2010_v19 = vld [vmem:[%s2337_s26 + $0x90] sm:$0xff]   ;;  %v2016_v23 = vld [vmem:[%s2344_s12 + $0x64] ss:$24 sps:$4 sm:$0xff]   ;;  %v2020_v28 = vld [vmem:[%s2344_s12 + $0x60] ss:$24 sps:$4 sm:$0xff]  }
  0x55   : > { %v2011_v20 = vld [vmem:[%s2337_s26 + $0x110] sm:$0xff]   ;;  %v2014_v24 = vld [vmem:[%s2337_s26 + $0x98] sm:$0xff]   ;;  %v2022_v27 = vld [vmem:[%s2337_s26 + $0xe0] sm:$0xff]  }
  0x56   : > { %1711 = vmatpush3.bf16.msra.mxu0 %v1979_v56  ;;  %1907 = vmatpush3.bf16.msra.mxu1 %v1979_v56  ;;  %v2018_v25 = vld [vmem:[%s2344_s12 + $0x124] ss:$24 sps:$4 sm:$0xff]   ;;  %v2021_v29 = vld [vmem:[%s2344_s12 + $0x120] ss:$24 sps:$4 sm:$0xff]   ;;  %v2026_v33 = vld [vmem:[%s2337_s26 + $0xe8] sm:$0xff]  }
  0x57   : > { %1712 = vmatprep.subr.bf16.mxu0 %v1980_v57  ;;  %1900 = vmatprep.subr.bf16.mxu1 %v1980_v57  ;;  %v2015_v26 = vld [vmem:[%s2337_s26 + $0x118] sm:$0xff]   ;;  %v2023_v30 = vld [vmem:[%s2337_s26 + $0x160] sm:$0xff]   ;;  %v2027_v34 = vld [vmem:[%s2337_s26 + $0x168] sm:$0xff]  }
  0x58   : > { %v2024_v31 = vld [vmem:[%s2337_s26 + $0xa0] sm:$0xff]   ;;  %v2030_v35 = vld [vmem:[%s2344_s12 + $0x94] ss:$24 sps:$4 sm:$0xff]   ;;  %v2034_v40 = vld [vmem:[%s2344_s12 + $0x90] ss:$24 sps:$4 sm:$0xff]  }
  0x59   : > { %v2025_v32 = vld [vmem:[%s2337_s26 + $0x120] sm:$0xff]   ;;  %v2032_v36 = vld [vmem:[%s2344_s12 + $0x154] ss:$24 sps:$4 sm:$0xff]   ;;  %v2035_v41 = vld [vmem:[%s2344_s12 + $0x150] ss:$24 sps:$4 sm:$0xff]  }
  0x5a   : > { %1713 = vmatpush3.bf16.msra.mxu0 %v1981_v58  ;;  %1908 = vmatpush3.bf16.msra.mxu1 %v1981_v58  ;;  %v2028_v37 = vld [vmem:[%s2337_s26 + $0xa8] sm:$0xff]   ;;  %v2036_v39 = vld [vmem:[%s2337_s26 + $0xf0] sm:$0xff]   ;;  %v2040_v45 = vld [vmem:[%s2337_s26 + $0xf8] sm:$0xff]  }
  0x5b   : > { %1714 = vmatprep.subr.bf16.mxu0 %v1982_v59  ;;  %1901 = vmatprep.subr.bf16.mxu1 %v1982_v59  ;;  %v2029_v38 = vld [vmem:[%s2337_s26 + $0x128] sm:$0xff]   ;;  %v2037_v42 = vld [vmem:[%s2337_s26 + $0x170] sm:$0xff]   ;;  %v2041_v46 = vld [vmem:[%s2337_s26 + $0x178] sm:$0xff]  }
  0x5c   : > { %v2038_v43 = vld [vmem:[%s2337_s26 + $0xb0] sm:$0xff]   ;;  %v2042_v47 = vld [vmem:[%s2337_s26 + $0xb8] sm:$0xff]   ;;  %v2046_v49 = vld [vmem:[%s2344_s12 + $0xc] ss:$24 sps:$4 sm:$0xff]  }
  0x5d   : > { %v2039_v44 = vld [vmem:[%s2337_s26 + $0x130] sm:$0xff]   ;;  %v2043_v48 = vld [vmem:[%s2337_s26 + $0x138] sm:$0xff]   ;;  %v2044_v50 = vld [vmem:[%s2344_s12 + $0x8] ss:$24 sps:$4 sm:$0xff]  }
  0x5e   : > { %1715 = vmatpush3.bf16.msra.mxu0 %v1983_v62  ;;  %1909 = vmatpush3.bf16.msra.mxu1 %v1983_v62  ;;  %v2049_v51 = vld [vmem:[%s2344_s12 + $0x14] ss:$24 sps:$4 sm:$0xff]   ;;  %v2047_v52 = vld [vmem:[%s2344_s12 + $0x10] ss:$24 sps:$4 sm:$0xff]   ;;  %v2052_v54 = vld [vmem:[%s2344_s12 + $0x44] ss:$24 sps:$4 sm:$0xff]  }
  0x5f   : > { %1716 = vmatprep.subr.bf16.mxu0 %v1984_v63  ;;  %1902 = vmatprep.subr.bf16.mxu1 %v1984_v63  ;;  %v2050_v53 = vld [vmem:[%s2344_s12 + $0x3c] ss:$24 sps:$4 sm:$0xff]   ;;  %v2054_v55 = vld [vmem:[%s2344_s12 + $0x38] ss:$24 sps:$4 sm:$0xff]   ;;  %v2056_v57 = vld [vmem:[%s2344_s12 + $0x6c] ss:$24 sps:$4 sm:$0xff]  }
  0x60   : > { %v2055_v56 = vld [vmem:[%s2344_s12 + $0x40] ss:$24 sps:$4 sm:$0xff]   ;;  %v2058_v58 = vld [vmem:[%s2344_s12 + $0x74] ss:$24 sps:$4 sm:$0xff]   ;;  %v2061_v60 = vld [vmem:[%s2344_s12 + $0x70] ss:$24 sps:$4 sm:$0xff]  }
  0x61   : > { %v2060_v59 = vld [vmem:[%s2344_s12 + $0x68] ss:$24 sps:$4 sm:$0xff]   ;;  %v2062_v61 = vld [vmem:[%s2344_s12 + $0x9c] ss:$24 sps:$4 sm:$0xff]   ;;  %v2066_v63 = vld [vmem:[%s2344_s12 + $0x98] ss:$24 sps:$4 sm:$0xff]  }
  0x62   : > { %1717 = vmatpush3.bf16.msra.mxu0 %v1985_v0  ;;  %1910 = vmatpush3.bf16.msra.mxu1 %v1985_v0  ;;  %v2064_v62 = vld [vmem:[%s2344_s12 + $0xa4] ss:$24 sps:$4 sm:$0xff]   ;;  %v2067_v0 = vld [vmem:[%s2344_s12 + $0xa0] ss:$24 sps:$4 sm:$0xff]  }
  0x63   : > { %1718 = vmatprep.subr.bf16.mxu0 %v1986_v1  ;;  %1903 = vmatprep.subr.bf16.mxu1 %v1986_v1  ;;  %v2068_v1 = vld [vmem:[%s2344_s12 + $0xcc] ss:$24 sps:$4 sm:$0xff]  }
  0x66   : > { %1719 = vmatpush3.bf16.msra.mxu0 %v1987_v2  ;;  %1911 = vmatpush3.bf16.msra.mxu1 %v1987_v2  ;;  %v2070_v2 = vld [vmem:[%s2344_s12 + $0xd4] ss:$24 sps:$4 sm:$0xff]  }
  0x67   : > { %1768 = vmatprep.subr.bf16.mxu1 %v1994_v5  ;;  %1832 = vmatprep.subr.bf16.mxu0 %v1995_v6  ;;  %v2074_v5 = vld [vmem:[%s2344_s12 + $0xfc] ss:$24 sps:$4 sm:$0xff]  }
  0x68   : > { %v2076_v6 = vld [vmem:[%s2344_s12 + $0x104] ss:$24 sps:$4 sm:$0xff]  }
  0x69   : > { %1109 = vmatmul.mubr.bf16.vlgmr.msra.gmra.mrb[0].mxu0 %v1988_v3  ;;  %1141 = vmatmul.mubr.bf16.vlgmr.msra.gmra.mrb[0].mxu1 %v1991_v4  ;;  %v2072_v3 = vld [vmem:[%s2344_s12 + $0xc8] ss:$24 sps:$4 sm:$0xff]  }
  0x6a   : > { %1769 = vmatpush3.bf16.msra.mxu1 %v1996_v7  ;;  %1833 = vmatpush3.bf16.msra.mxu0 %v1997_v8  ;;  %v2073_v4 = vld [vmem:[%s2344_s12 + $0xd0] ss:$24 sps:$4 sm:$0xff]   ;;  %v2079_v8 = vld [vmem:[%s2344_s12 + $0x100] ss:$24 sps:$4 sm:$0xff]  }
  0x6b   : > { %1770 = vmatprep.subr.bf16.mxu1 %v1998_v9  ;;  %1834 = vmatprep.subr.bf16.mxu0 %v1999_v10  ;;  %v2078_v7 = vld [vmem:[%s2344_s12 + $0xf8] ss:$24 sps:$4 sm:$0xff]   ;;  %v2080_v9 = vld [vmem:[%s2344_s12 + $0x12c] ss:$24 sps:$4 sm:$0xff]  }
  0x6c   : > { %1116 = vmatprep.mubr.bf16.mxu0 %v2002_v11  ;;  %1148 = vmatprep.mubr.bf16.mxu1 %v2004_v13  ;;  %v2082_v10 = vld [vmem:[%s2344_s12 + $0x134] ss:$24 sps:$4 sm:$0xff]   ;;  %v2084_v11 = vld [vmem:[%s2344_s12 + $0x128] ss:$24 sps:$4 sm:$0xff]  }
  0x6d   : > { %v2086_v13 = vld [vmem:[%s2344_s12 + $0x15c] ss:$24 sps:$4 sm:$0xff]  }
  0x6e   : > { %1771 = vmatpush3.bf16.msra.mxu1 %v2000_v12  ;;  %1835 = vmatpush3.bf16.msra.mxu0 %v2001_v14  ;;  %v2085_v12 = vld [vmem:[%s2344_s12 + $0x130] ss:$24 sps:$4 sm:$0xff]   ;;  %v2088_v14 = vld [vmem:[%s2344_s12 + $0x164] ss:$24 sps:$4 sm:$0xff]  }
  0x6f   : > { %1772 = vmatprep.subr.bf16.mxu1 %v2008_v15  ;;  %1836 = vmatprep.subr.bf16.mxu0 %v2009_v17  ;;  %v2090_v15 = vld [vmem:[%s2344_s12 + $0x158] ss:$24 sps:$4 sm:$0xff]  }
  0x71   : > { %1117 = vmatmul.mubr.bf16.gmra.mrb[4].mxu0 %v2006_v16  ;;  %1149 = vmatmul.mubr.bf16.gmra.mrb[4].mxu1 %v2007_v18  ;;  %v2091_v16 = vld [vmem:[%s2344_s12 + $0x160] ss:$24 sps:$4 sm:$0xff]  }
  0x72   : > { %1773 = vmatpush3.bf16.msra.mxu1 %v2010_v19  ;;  %1837 = vmatpush3.bf16.msra.mxu0 %v2011_v20 }
  0x73   : > { %1774 = vmatprep.subr.bf16.mxu1 %v2012_v21  ;;  %1838 = vmatprep.subr.bf16.mxu0 %v2013_v22 }
  0x74   : > { %1124 = vmatprep.mubr.bf16.mxu0 %v2016_v23  ;;  %1156 = vmatprep.mubr.bf16.mxu1 %v2018_v25 }
  0x76   : > { %1775 = vmatpush3.bf16.msra.mxu1 %v2014_v24  ;;  %1839 = vmatpush3.bf16.msra.mxu0 %v2015_v26 }
  0x77   : > { %1776 = vmatprep.subr.bf16.mxu1 %v2022_v27  ;;  %1840 = vmatprep.subr.bf16.mxu0 %v2023_v30 }
  0x79   : > { %1125 = vmatmul.mubr.bf16.gmra.mrb[8].mxu0 %v2020_v28  ;;  %1157 = vmatmul.mubr.bf16.gmra.mrb[8].mxu1 %v2021_v29 }
  0x7a   : > { %1777 = vmatpush3.bf16.msra.mxu1 %v2024_v31  ;;  %1841 = vmatpush3.bf16.msra.mxu0 %v2025_v32 }
  0x7b   : > { %1778 = vmatprep.subr.bf16.mxu1 %v2026_v33  ;;  %1842 = vmatprep.subr.bf16.mxu0 %v2027_v34 }
  0x7c   : > { %1132 = vmatprep.mubr.bf16.mxu0 %v2030_v35  ;;  %1164 = vmatprep.mubr.bf16.mxu1 %v2032_v36 }
  0x7e   : > { %1779 = vmatpush3.bf16.msra.mxu1 %v2028_v37  ;;  %1843 = vmatpush3.bf16.msra.mxu0 %v2029_v38 }
  0x7f   : > { %1780 = vmatprep.subr.bf16.mxu1 %v2036_v39  ;;  %1844 = vmatprep.subr.bf16.mxu0 %v2037_v42 }
  0x81   : > { %1133 = vmatmul.mubr.bf16.gmra.mrb[12].mxu0 %v2034_v40  ;;  %1165 = vmatmul.mubr.bf16.gmra.mrb[12].mxu1 %v2035_v41 }
  0x82   : > { %1781 = vmatpush3.bf16.msra.mxu1 %v2038_v43  ;;  %1845 = vmatpush3.bf16.msra.mxu0 %v2039_v44 }
  0x83   : > { %1782 = vmatprep.subr.bf16.mxu1 %v2040_v45  ;;  %1846 = vmatprep.subr.bf16.mxu0 %v2041_v46 }
  0x84   : > { %1205 = vmatprep.mubr.bf16.mxu1 %v2046_v49  ;;  %1302 = vmatprep.mubr.bf16.mxu0 %v2049_v51 }
  0x86   : > { %1783 = vmatpush3.bf16.msra.mxu1 %v2042_v47  ;;  %1847 = vmatpush3.bf16.msra.mxu0 %v2043_v48 }
  0x89   : > { %1206 = vmatmul.mubr.bf16.vlgmr.msra.gmra.mrb[16].mxu1 %v2044_v50  ;;  %1303 = vmatmul.mubr.bf16.vlgmr.msra.gmra.mrb[16].mxu0 %v2047_v52 }
  0x8a   : > { %1213 = vmatprep.mubr.bf16.mxu1 %v2050_v53  ;;  %1310 = vmatprep.mubr.bf16.mxu0 %v2052_v54 }
  0x91   : > { %1214 = vmatmul.mubr.bf16.gmra.mrb[20].mxu1 %v2054_v55  ;;  %1311 = vmatmul.mubr.bf16.gmra.mrb[20].mxu0 %v2055_v56 }
  0x92   : > { %1221 = vmatprep.mubr.bf16.mxu1 %v2056_v57  ;;  %1318 = vmatprep.mubr.bf16.mxu0 %v2058_v58 }
  0x99   : > { %1222 = vmatmul.mubr.bf16.gmra.mrb[24].mxu1 %v2060_v59  ;;  %1319 = vmatmul.mubr.bf16.gmra.mrb[24].mxu0 %v2061_v60 }
  0x9a   : > { %1229 = vmatprep.mubr.bf16.mxu1 %v2062_v61  ;;  %1326 = vmatprep.mubr.bf16.mxu0 %v2064_v62 }
  0xa1   : > { %1230 = vmatmul.mubr.bf16.gmra.mrb[28].mxu1 %v2066_v63  ;;  %1327 = vmatmul.mubr.bf16.gmra.mrb[28].mxu0 %v2067_v0 }
  0xa2   : > { %1237 = vmatprep.mubr.bf16.mxu1 %v2068_v1  ;;  %1334 = vmatprep.mubr.bf16.mxu0 %v2070_v2 }
  0xa9   : > { %1238 = vmatmul.mubr.bf16.gmra.mrb[32].mxu1 %v2072_v3  ;;  %1335 = vmatmul.mubr.bf16.gmra.mrb[32].mxu0 %v2073_v4 }
  0xaa   : > { %1245 = vmatprep.mubr.bf16.mxu1 %v2074_v5  ;;  %1342 = vmatprep.mubr.bf16.mxu0 %v2076_v6 }
  0xb1   : > { %1246 = vmatmul.mubr.bf16.gmra.mrb[36].mxu1 %v2078_v7  ;;  %1343 = vmatmul.mubr.bf16.gmra.mrb[36].mxu0 %v2079_v8 }
  0xb2   : > { %1253 = vmatprep.mubr.bf16.mxu1 %v2080_v9  ;;  %1350 = vmatprep.mubr.bf16.mxu0 %v2082_v10 }
  0xb9   : > { %1254 = vmatmul.mubr.bf16.gmra.mrb[40].mxu1 %v2084_v11  ;;  %1351 = vmatmul.mubr.bf16.gmra.mrb[40].mxu0 %v2085_v12 }
  0xba   : > { %1261 = vmatprep.mubr.bf16.mxu1 %v2086_v13  ;;  %1358 = vmatprep.mubr.bf16.mxu0 %v2088_v14  ;;  %v388_v14 = vld [vmem:[#allocation2] sm:$0xff] }
  0xc1   : > { %1262 = vmatmul.mubr.bf16.gmra.mrb[44].mxu1 %v2090_v15  ;;  %1359 = vmatmul.mubr.bf16.gmra.mrb[44].mxu0 %v2091_v16 }
 0x13c   : > { %v1720_v17 = vpop.f32.mrb[0].mxu0  ;;  %v1744_v18 = vpop.f32.mrb[0].mxu1 }
 0x13d   : > { %v1721_v19 = vpop.f32.mrb[1].mxu0  ;;  %v1745_v20 = vpop.f32.mrb[1].mxu1 }
 0x13e   : > { %v1722_v21 = vadd.f32 %v1721_v19, %v1720_v17  ;;  %v2443_v22 = vadd.f32 %v1745_v20, %v1744_v18  ;;  %v1723_v23 = vpop.f32.mrb[2].mxu0  ;;  %v1747_v24 = vpop.f32.mrb[2].mxu1  ;;  %v389_v17 = vld [vmem:[#allocation2 + $0x8] sm:$0xff] }
 0x13f   : > { %v1724_v25 = vpop.f32.mrb[3].mxu0  ;;  %v1748_v26 = vpop.f32.mrb[3].mxu1 }
 0x140   : > { %v1725_v27 = vadd.f32 %v1724_v25, %v1723_v23  ;;  %v2445_v28 = vadd.f32 %v1748_v26, %v1747_v24 }
 0x144   : > { %v1726_v29 = vpop.f32.mrb[4].mxu0  ;;  %v1750_v30 = vpop.f32.mrb[4].mxu1 }
 0x145   : > { %v1727_v31 = vpop.f32.mrb[5].mxu0  ;;  %v1751_v32 = vpop.f32.mrb[5].mxu1 }
 0x146   : > { %v2447_v33 = vadd.f32 %v1727_v31, %v1726_v29  ;;  %v2449_v34 = vadd.f32 %v1751_v32, %v1750_v30  ;;  %v1729_v35 = vpop.f32.mrb[6].mxu0  ;;  %v1753_v36 = vpop.f32.mrb[6].mxu1 }
 0x147   : > { %v1730_v37 = vpop.f32.mrb[7].mxu0  ;;  %v1754_v38 = vpop.f32.mrb[7].mxu1 }
 0x148   : > { %v2451_v39 = vadd.f32 %v1730_v37, %v1729_v35  ;;  %v2453_v40 = vadd.f32 %v1754_v38, %v1753_v36  ;;  %v390_v38 = vld [vmem:[#allocation2 + $0x10] sm:$0xff] }
 0x14c   : > { %v1732_v41 = vpop.f32.mrb[8].mxu0  ;;  %v1756_v42 = vpop.f32.mrb[8].mxu1 }
 0x14d   : > { %v1733_v43 = vpop.f32.mrb[9].mxu0  ;;  %v1757_v44 = vpop.f32.mrb[9].mxu1 }
 0x14e   : > { %v2455_v45 = vadd.f32 %v1733_v43, %v1732_v41  ;;  %v2457_v46 = vadd.f32 %v1757_v44, %v1756_v42  ;;  %v1735_v47 = vpop.f32.mrb[10].mxu0  ;;  %v1759_v48 = vpop.f32.mrb[10].mxu1  ;;  %v391_v43 = vld [vmem:[#allocation2 + $0x18] sm:$0xff] }
 0x14f   : > { %v1736_v49 = vpop.f32.mrb[11].mxu0  ;;  %v1760_v50 = vpop.f32.mrb[11].mxu1 }
 0x150   : > { %v2459_v51 = vadd.f32 %v1736_v49, %v1735_v47  ;;  %v2461_v52 = vadd.f32 %v1760_v50, %v1759_v48 }
 0x154   : > { %v1738_v53 = vpop.f32.mrb[12].mxu0  ;;  %v1762_v54 = vpop.f32.mrb[12].mxu1 }
 0x155   : > { %v1739_v55 = vpop.f32.mrb[13].mxu0  ;;  %v1763_v56 = vpop.f32.mrb[13].mxu1 }
 0x156   : > { %v2463_v57 = vadd.f32 %v1739_v55, %v1738_v53  ;;  %v2465_v58 = vadd.f32 %v1763_v56, %v1762_v54  ;;  %v1741_v59 = vpop.f32.mrb[14].mxu0  ;;  %v1765_v60 = vpop.f32.mrb[14].mxu1 }
 0x157   : > { %v1742_v61 = vpop.f32.mrb[15].mxu0  ;;  %v1766_v62 = vpop.f32.mrb[15].mxu1 }
 0x158   : > { %v2467_v63 = vadd.f32 %v1742_v61, %v1741_v59  ;;  %v2469_v0 = vadd.f32 %v1766_v62, %v1765_v60 }
 0x15c   : > { %v1784_v1 = vpop.f32.mrb[16].mxu1  ;;  %v1848_v2 = vpop.f32.mrb[16].mxu0 }
 0x15d   : > { %v1785_v3 = vpop.f32.mrb[17].mxu1  ;;  %v1849_v4 = vpop.f32.mrb[17].mxu0 }
 0x15e   : > { %v1786_v5 = vadd.f32 %v1785_v3, %v1784_v1  ;;  %v1850_v6 = vadd.f32 %v1849_v4, %v1848_v2  ;;  %v1787_v7 = vpop.f32.mrb[18].mxu1  ;;  %v1851_v8 = vpop.f32.mrb[18].mxu0  ;;  %v392_v2 = vld [vmem:[#allocation2 + $0x20] sm:$0xff] }
 0x15f   : > { %v1788_v9 = vpop.f32.mrb[19].mxu1  ;;  %v1852_v10 = vpop.f32.mrb[19].mxu0 }
 0x160   : > { %v1208_v11 = vadd.f32 %v1786_v5, %v1722_v21  ;;  %v1789_v12 = vadd.f32 %v1788_v9, %v1787_v7  ;;  %v1853_v13 = vadd.f32 %v1852_v10, %v1851_v8  ;;  %v393_v5 = vld [vmem:[#allocation2 + $0x28] sm:$0xff] }
 0x162   : > { %v1305_v15 = vadd.f32 %v1850_v6, %v1208_v11  ;;  %v1211_v16 = vadd.f32 %v1789_v12, %v1725_v27 }
 0x164   : > { %v1367_v18 = vadd.f32 %v1305_v15, %v388_v14  ;;  %v1308_v19 = vadd.f32 %v1853_v13, %v1211_v16  ;;  %v1790_v20 = vpop.f32.mrb[20].mxu1  ;;  %v1854_v23 = vpop.f32.mrb[20].mxu0 }
 0x165   : > { %v1791_v24 = vpop.f32.mrb[21].mxu1  ;;  %v1855_v25 = vpop.f32.mrb[21].mxu0 }
 0x166   : > { %1383 = vst [vmem:[#allocation2] sm:$0xff] %v1367_v18  ;;  %v1368_v26 = vadd.f32 %v1308_v19, %v389_v17  ;;  %v1792_v29 = vadd.f32 %v1791_v24, %v1790_v20  ;;  %v1856_v30 = vadd.f32 %v1855_v25, %v1854_v23  ;;  %v1793_v31 = vpop.f32.mrb[22].mxu1  ;;  %v1857_v32 = vpop.f32.mrb[22].mxu0  ;;  %v394_v20 = vld [vmem:[#allocation2 + $0x30] sm:$0xff]  ;;  %v395_v25 = vld [vmem:[#allocation2 + $0x38] sm:$0xff] }
 0x167   : > { %v1794_v35 = vpop.f32.mrb[23].mxu1  ;;  %v1858_v21 = vpop.f32.mrb[23].mxu0 }
 0x168   : > { %1384 = vst [vmem:[#allocation2 + $0x8] sm:$0xff] %v1368_v26  ;;  %v1216_v36 = vadd.f32 %v1792_v29, %v2447_v33  ;;  %v1795_v37 = vadd.f32 %v1794_v35, %v1793_v31  ;;  %v1859_v27 = vadd.f32 %v1858_v21, %v1857_v32 }
 0x16a   : > { %v1313_v41 = vadd.f32 %v1856_v30, %v1216_v36  ;;  %v1219_v42 = vadd.f32 %v1795_v37, %v2451_v39 }
 0x16c   : > { %v1369_v44 = vadd.f32 %v1313_v41, %v390_v38  ;;  %v1316_v47 = vadd.f32 %v1859_v27, %v1219_v42  ;;  %v1796_v48 = vpop.f32.mrb[24].mxu1  ;;  %v1860_v49 = vpop.f32.mrb[24].mxu0 }
 0x16d   : > { %v1797_v50 = vpop.f32.mrb[25].mxu1  ;;  %v1861_v53 = vpop.f32.mrb[25].mxu0 }
 0x16e   : > { %1385 = vst [vmem:[#allocation2 + $0x10] sm:$0xff] %v1369_v44  ;;  %v1370_v54 = vadd.f32 %v1316_v47, %v391_v43  ;;  %v1798_v55 = vadd.f32 %v1797_v50, %v1796_v48  ;;  %v1862_v56 = vadd.f32 %v1861_v53, %v1860_v49  ;;  %v1799_v59 = vpop.f32.mrb[26].mxu1  ;;  %v1863_v60 = vpop.f32.mrb[26].mxu0  ;;  %v396_v44 = vld [vmem:[#allocation2 + $0x40] sm:$0xff]  ;;  %v397_v49 = vld [vmem:[#allocation2 + $0x48] sm:$0xff] }
 0x16f   : > { %v1800_v33 = vpop.f32.mrb[27].mxu1  ;;  %v1864_v61 = vpop.f32.mrb[27].mxu0 }
 0x170   : > { %1386 = vst [vmem:[#allocation2 + $0x18] sm:$0xff] %v1370_v54  ;;  %v1224_v62 = vadd.f32 %v1798_v55, %v2455_v45  ;;  %v1801_v1 = vadd.f32 %v1800_v33, %v1799_v59  ;;  %v1865_v39 = vadd.f32 %v1864_v61, %v1863_v60 }
 0x172   : > { %v1321_v3 = vadd.f32 %v1862_v56, %v1224_v62  ;;  %v1227_v4 = vadd.f32 %v1801_v1, %v2459_v51 }
 0x174   : > { %v1371_v6 = vadd.f32 %v1321_v3, %v392_v2  ;;  %v1324_v7 = vadd.f32 %v1865_v39, %v1227_v4  ;;  %v1802_v8 = vpop.f32.mrb[28].mxu1  ;;  %v1866_v9 = vpop.f32.mrb[28].mxu0  ;;  %v398_v4 = vld [vmem:[#allocation2 + $0x50] sm:$0xff] }
 0x175   : > { %v1803_v10 = vpop.f32.mrb[29].mxu1  ;;  %v1867_v11 = vpop.f32.mrb[29].mxu0 }
 0x176   : > { %1387 = vst [vmem:[#allocation2 + $0x20] sm:$0xff] %v1371_v6  ;;  %v1372_v12 = vadd.f32 %v1324_v7, %v393_v5  ;;  %v1804_v13 = vadd.f32 %v1803_v10, %v1802_v8  ;;  %v1868_v14 = vadd.f32 %v1867_v11, %v1866_v9  ;;  %v1805_v15 = vpop.f32.mrb[30].mxu1  ;;  %v1869_v16 = vpop.f32.mrb[30].mxu0  ;;  %v399_v7 = vld [vmem:[#allocation2 + $0x58] sm:$0xff] }
 0x177   : > { %v1806_v45 = vpop.f32.mrb[31].mxu1  ;;  %v1870_v17 = vpop.f32.mrb[31].mxu0 }
 0x178   : > { %1388 = vst [vmem:[#allocation2 + $0x28] sm:$0xff] %v1372_v12  ;;  %v1232_v18 = vadd.f32 %v1804_v13, %v2463_v57  ;;  %v1807_v19 = vadd.f32 %v1806_v45, %v1805_v15  ;;  %v1871_v51 = vadd.f32 %v1870_v17, %v1869_v16 }
 0x17a   : > { %v1329_v23 = vadd.f32 %v1868_v14, %v1232_v18  ;;  %v1235_v24 = vadd.f32 %v1807_v19, %v2467_v63 }
 0x17c   : > { %v1373_v26 = vadd.f32 %v1329_v23, %v394_v20  ;;  %v1332_v29 = vadd.f32 %v1871_v51, %v1235_v24  ;;  %v1808_v30 = vpop.f32.mrb[32].mxu1  ;;  %v1872_v31 = vpop.f32.mrb[32].mxu0  ;;  %v400_v20 = vld [vmem:[#allocation2 + $0x60] sm:$0xff] }
 0x17d   : > { %v1809_v32 = vpop.f32.mrb[33].mxu1  ;;  %v1873_v35 = vpop.f32.mrb[33].mxu0 }
 0x17e   : > { %1389 = vst [vmem:[#allocation2 + $0x30] sm:$0xff] %v1373_v26  ;;  %v1374_v21 = vadd.f32 %v1332_v29, %v395_v25  ;;  %v1810_v36 = vadd.f32 %v1809_v32, %v1808_v30  ;;  %v1874_v37 = vadd.f32 %v1873_v35, %v1872_v31  ;;  %v1811_v27 = vpop.f32.mrb[34].mxu1  ;;  %v1875_v38 = vpop.f32.mrb[34].mxu0  ;;  %v401_v25 = vld [vmem:[#allocation2 + $0x68] sm:$0xff] }
 0x17f   : > { %v1812_v57 = vpop.f32.mrb[35].mxu1  ;;  %v1876_v41 = vpop.f32.mrb[35].mxu0 }
 0x180   : > { %1390 = vst [vmem:[#allocation2 + $0x38] sm:$0xff] %v1374_v21  ;;  %v1240_v42 = vadd.f32 %v1810_v36, %v2443_v22  ;;  %v1813_v43 = vadd.f32 %v1812_v57, %v1811_v27  ;;  %v1877_v63 = vadd.f32 %v1876_v41, %v1875_v38 }
 0x182   : > { %v1337_v47 = vadd.f32 %v1874_v37, %v1240_v42  ;;  %v1243_v48 = vadd.f32 %v1813_v43, %v2445_v28  ;;  %v402_v43 = vld [vmem:[#allocation2 + $0x70] sm:$0xff] }
 0x184   : > { %v1375_v50 = vadd.f32 %v1337_v47, %v396_v44  ;;  %v1340_v53 = vadd.f32 %v1877_v63, %v1243_v48  ;;  %v1814_v54 = vpop.f32.mrb[36].mxu1  ;;  %v1878_v55 = vpop.f32.mrb[36].mxu0  ;;  %v403_v47 = vld [vmem:[#allocation2 + $0x78] sm:$0xff] }
 0x185   : > { %v1815_v56 = vpop.f32.mrb[37].mxu1  ;;  %v1879_v59 = vpop.f32.mrb[37].mxu0 }
 0x186   : > { %1391 = vst [vmem:[#allocation2 + $0x40] sm:$0xff] %v1375_v50  ;;  %v1376_v60 = vadd.f32 %v1340_v53, %v397_v49  ;;  %v1816_v33 = vadd.f32 %v1815_v56, %v1814_v54  ;;  %v1880_v61 = vadd.f32 %v1879_v59, %v1878_v55  ;;  %v1817_v62 = vpop.f32.mrb[38].mxu1  ;;  %v1881_v1 = vpop.f32.mrb[38].mxu0  ;;  %v1403_v53 = vld [vmem:[#allocation2] sm:$0xff] (!%p1700_p13)  ;;  %v1404_v54 = vld [vmem:[#allocation2 + $0x8] sm:$0xff] (!%p1700_p13)  ;;  %v1405_v59 = vld [vmem:[#allocation2 + $0x10] sm:$0xff] (!%p1700_p13) }
 0x187   : > { %v1818_v22 = vpop.f32.mrb[39].mxu1  ;;  %v1882_v39 = vpop.f32.mrb[39].mxu0 }
 0x188   : > { %1392 = vst [vmem:[#allocation2 + $0x48] sm:$0xff] %v1376_v60  ;;  %v1248_v2 = vadd.f32 %v1816_v33, %v2449_v34  ;;  %v1819_v3 = vadd.f32 %v1818_v22, %v1817_v62  ;;  %v1883_v28 = vadd.f32 %v1882_v39, %v1881_v1  ;;  %v1406_v60 = vld [vmem:[#allocation2 + $0x18] sm:$0xff] (!%p1700_p13)  ;;  %v1408_v1 = vld [vmem:[#allocation2 + $0x28] sm:$0xff] (!%p1700_p13)  ;;  %v1409_v22 = vld [vmem:[#allocation2 + $0x30] sm:$0xff] (!%p1700_p13) }
 0x189   : > { %v1410_v39 = vld [vmem:[#allocation2 + $0x38] sm:$0xff] (!%p1700_p13) }
 0x18a   : > { %v1345_v5 = vadd.f32 %v1880_v61, %v1248_v2  ;;  %v1251_v6 = vadd.f32 %v1819_v3, %v2453_v40 }
 0x18c   : > { %v1377_v8 = vadd.f32 %v1345_v5, %v398_v4  ;;  %v1348_v9 = vadd.f32 %v1883_v28, %v1251_v6  ;;  %v1820_v10 = vpop.f32.mrb[40].mxu1  ;;  %v1884_v11 = vpop.f32.mrb[40].mxu0 }
 0x18d   : > { %v1821_v12 = vpop.f32.mrb[41].mxu1  ;;  %v1885_v13 = vpop.f32.mrb[41].mxu0  ;;  %v1411_v5 = vld [vmem:[#allocation2 + $0x40] sm:$0xff] (!%p1700_p13) }
 0x18e   : > { %1393 = vst [vmem:[#allocation2 + $0x50] sm:$0xff] %v1377_v8  ;;  %v1378_v14 = vadd.f32 %v1348_v9, %v399_v7  ;;  %v1822_v15 = vadd.f32 %v1821_v12, %v1820_v10  ;;  %v1886_v16 = vadd.f32 %v1885_v13, %v1884_v11  ;;  %v1823_v45 = vpop.f32.mrb[42].mxu1  ;;  %v1887_v17 = vpop.f32.mrb[42].mxu0 }
 0x18f   : > { %v1824_v34 = vpop.f32.mrb[43].mxu1  ;;  %v1888_v18 = vpop.f32.mrb[43].mxu0  ;;  %v1412_v6 = vld [vmem:[#allocation2 + $0x48] sm:$0xff] (!%p1700_p13) }
 0x190   : > { %1394 = vst [vmem:[#allocation2 + $0x58] sm:$0xff] %v1378_v14  ;;  %v1256_v19 = vadd.f32 %v1822_v15, %v2457_v46  ;;  %v1825_v51 = vadd.f32 %v1824_v34, %v1823_v45  ;;  %v1889_v40 = vadd.f32 %v1888_v18, %v1887_v17 }
 0x192   : > { %v1353_v23 = vadd.f32 %v1886_v16, %v1256_v19  ;;  %v1259_v24 = vadd.f32 %v1825_v51, %v2461_v52 }
 0x194   : > { %v1379_v26 = vadd.f32 %v1353_v23, %v400_v20  ;;  %v1356_v29 = vadd.f32 %v1889_v40, %v1259_v24  ;;  %v1826_v30 = vpop.f32.mrb[44].mxu1  ;;  %v1890_v31 = vpop.f32.mrb[44].mxu0 }
 0x195   : > { %v1827_v32 = vpop.f32.mrb[45].mxu1  ;;  %v1891_v35 = vpop.f32.mrb[45].mxu0  ;;  %v1413_v7 = vld [vmem:[#allocation2 + $0x50] sm:$0xff] (!%p1700_p13) }
 0x196   : > { %1395 = vst [vmem:[#allocation2 + $0x60] sm:$0xff] %v1379_v26  ;;  %v1380_v21 = vadd.f32 %v1356_v29, %v401_v25  ;;  %v1828_v36 = vadd.f32 %v1827_v32, %v1826_v30  ;;  %v1892_v37 = vadd.f32 %v1891_v35, %v1890_v31  ;;  %v1829_v27 = vpop.f32.mrb[46].mxu1  ;;  %v1893_v38 = vpop.f32.mrb[46].mxu0 }
 0x197   : > { %v1830_v46 = vpop.f32.mrb[47].mxu1  ;;  %v1894_v57 = vpop.f32.mrb[47].mxu0  ;;  %v1414_v12 = vld [vmem:[#allocation2 + $0x58] sm:$0xff] (!%p1700_p13) }
 0x198   : > { %1396 = vst [vmem:[#allocation2 + $0x68] sm:$0xff] %v1380_v21  ;;  %v1264_v41 = vadd.f32 %v1828_v36, %v2465_v58  ;;  %v1831_v42 = vadd.f32 %v1830_v46, %v1829_v27  ;;  %v1895_v52 = vadd.f32 %v1894_v57, %v1893_v38  ;;  %v1701_v58 = vld [vmem:[%s2528_s2] ss:$0 sm:$0xff] (!%p1700_p13) }
 0x199   : > { %v1426_v55 = vadd.f32 (!%p1700_p13), %v1701_v58, %v1403_v53  ;;  %v1427_v56 = vadd.f32 (!%p1700_p13), %v1701_v58, %v1404_v54  ;;  %v1428_v33 = vadd.f32 (!%p1700_p13), %v1701_v58, %v1405_v59  ;;  %v1429_v61 = vadd.f32 (!%p1700_p13), %v1701_v58, %v1406_v60 }
 0x19a   : > { %v1361_v63 = vadd.f32 %v1892_v37, %v1264_v41  ;;  %v1267_v44 = vadd.f32 %v1831_v42, %v2469_v0  ;;  %1402 = sbr.rel (%p1700_p13) target bundleno = 429 (0x1ad), region = 63  ;;  %v1407_v0 = vld [vmem:[#allocation2 + $0x20] sm:$0xff] (!%p1700_p13)  ;;  %v1431_v28 = vadd.f32 (!%p1700_p13), %v1701_v58, %v1408_v1  ;;  %v1432_v4 = vadd.f32 (!%p1700_p13), %v1701_v58, %v1409_v22 }
 0x19b   : > { %v1430_v62 = vadd.f32 (!%p1700_p13), %v1701_v58, %v1407_v0  ;;  %v1442_v2 = vmax.f32 (!%p1700_p13), %v1426_v55, 0.0  ;;  %v1443_v3 = vmax.f32 (!%p1700_p13), %v1427_v56, 0.0  ;;  %v1444_v8 = vmax.f32 (!%p1700_p13), %v1428_v33, 0.0 }
 0x19c   : > { %v1381_v48 = vadd.f32 %v1361_v63, %v402_v43  ;;  %v1364_v49 = vadd.f32 %v1895_v52, %v1267_v44  ;;  %v1445_v9 = vmax.f32 (!%p1700_p13), %v1429_v61, 0.0  ;;  %v1433_v11 = vadd.f32 (!%p1700_p13), %v1701_v58, %v1410_v39 }
 0x19d   : > { %v1446_v10 = vmax.f32 (!%p1700_p13), %v1430_v62, 0.0  ;;  %v1415_v13 = vld [vmem:[#allocation2 + $0x60] sm:$0xff] (!%p1700_p13)  ;;  %1458 = vst [vmem:[%s2342_s30] sm:$0xff] (!%p1700_p13), %v1442_v2  ;;  %1459 = vst [vmem:[%s2342_s30 + $0x8] sm:$0xff] (!%p1700_p13), %v1443_v3  ;;  %v1447_v15 = vmax.f32 (!%p1700_p13), %v1431_v28, 0.0  ;;  %v1448_v16 = vmax.f32 (!%p1700_p13), %v1432_v4, 0.0  ;;  %v1434_v45 = vadd.f32 (!%p1700_p13), %v1701_v58, %v1411_v5 }
 0x19e   : > { %1397 = vst [vmem:[#allocation2 + $0x70] sm:$0xff] %v1381_v48  ;;  %v1382_v50 = vadd.f32 %v1364_v49, %v403_v47  ;;  %v1435_v17 = vadd.f32 (!%p1700_p13), %v1701_v58, %v1412_v6  ;;  %1460 = vst [vmem:[%s2342_s30 + $0x10] sm:$0xff] (!%p1700_p13), %v1444_v8  ;;  %v1449_v19 = vmax.f32 (!%p1700_p13), %v1433_v11, 0.0  ;;  %v1436_v51 = vadd.f32 (!%p1700_p13), %v1701_v58, %v1413_v7 }
 0x19f   : > { %v1416_v14 = vld [vmem:[#allocation2 + $0x68] sm:$0xff] (!%p1700_p13)  ;;  %1461 = vst [vmem:[%s2342_s30 + $0x18] sm:$0xff] (!%p1700_p13), %v1445_v9  ;;  %1462 = vst [vmem:[%s2342_s30 + $0x20] sm:$0xff] (!%p1700_p13), %v1446_v10  ;;  %v1437_v40 = vadd.f32 (!%p1700_p13), %v1701_v58, %v1414_v12  ;;  %v1438_v20 = vadd.f32 (!%p1700_p13), %v1701_v58, %v1415_v13  ;;  %v1450_v23 = vmax.f32 (!%p1700_p13), %v1434_v45, 0.0 }
 0x1a0   : > { %1398 = vst [vmem:[#allocation2 + $0x78] sm:$0xff] %v1382_v50  ;;  %1463 = vst [vmem:[%s2342_s30 + $0x28] sm:$0xff] (!%p1700_p13), %v1447_v15  ;;  %v1451_v24 = vmax.f32 (!%p1700_p13), %v1435_v17, 0.0  ;;  %v1439_v25 = vadd.f32 (!%p1700_p13), %v1701_v58, %v1416_v14  ;;  %v1452_v29 = vmax.f32 (!%p1700_p13), %v1436_v51, 0.0 }
 0x1a1   : > { %1464 = vst [vmem:[%s2342_s30 + $0x30] sm:$0xff] %v1448_v16  ;;  %1465 = vst [vmem:[%s2342_s30 + $0x38] sm:$0xff] %v1449_v19  ;;  %v1453_v30 = vmax.f32 %v1437_v40, 0.0  ;;  %v1454_v31 = vmax.f32 %v1438_v20, 0.0 }
 0x1a2   : > { %1466 = vst [vmem:[%s2342_s30 + $0x40] sm:$0xff] %v1450_v23  ;;  %1467 = vst [vmem:[%s2342_s30 + $0x48] sm:$0xff] %v1451_v24  ;;  %v1455_v35 = vmax.f32 %v1439_v25, 0.0 }
 0x1a3   : > { %1468 = vst [vmem:[%s2342_s30 + $0x50] sm:$0xff] %v1452_v29  ;;  %1469 = vst [vmem:[%s2342_s30 + $0x58] sm:$0xff] %v1453_v30 }
 0x1a4   : > { %1470 = vst [vmem:[%s2342_s30 + $0x60] sm:$0xff] %v1454_v31  ;;  %1471 = vst [vmem:[%s2342_s30 + $0x68] sm:$0xff] %v1455_v35 }
 0x1a5   : > { %v1417_v34 = vld [vmem:[#allocation2 + $0x70] sm:$0xff] }
 0x1a6   : > { %v1440_v26 = vadd.f32 %v1701_v58, %v1417_v34 }
 0x1a7   : > { %v1418_v18 = vld [vmem:[#allocation2 + $0x78] sm:$0xff] }
 0x1a8   : > { %v1441_v32 = vadd.f32 %v1701_v58, %v1418_v18  ;;  %v1456_v21 = vmax.f32 %v1440_v26, 0.0 }
 0x1aa   : > { %v1457_v36 = vmax.f32 %v1441_v32, 0.0  ;;  %1472 = vst [vmem:[%s2342_s30 + $0x70] sm:$0xff] %v1456_v21 }
 0x1ac   : > { %1473 = vst [vmem:[%s2342_s30 + $0x78] sm:$0xff] %v1457_v36 }
 0x1ad PF: > { %s13_s18 = sadd.s32 1, %s2146_s18   ;;  %s2530_s12 = smov %s2126_s13 }
 0x1ae   : > { %p10_p0 = scmp.ge.s32.totalorder %s13_s18, 14   ;;  %s2531_s13 = smov %s2220_s25 }
 0x1af   : > { %s2532_s14 = smov %s2138_s16  ;;  %s2533_s15 = smov %s2142_s17 }
 0x1b0   : > { %s2534_s16 = smov %s2537_s19  ;;  %s2535_s17 = smov %s2541_s20 }
 0x1b1   :  { %12 = sbr.rel (!%p10_p0) target bundleno = 4 (0x4), region = 104 }

</bundles_post_ra>
